<compile_context>
chip_gen: v5e
topology: v5e:2x2
jax: 0.10.0
libtpu: 0.0.40
codegen_flags: <defaults>
</compile_context>

<pallas_src>
import functools

import jax
import jax.numpy as jnp
from jax.experimental import pallas as pl
from jax.experimental.pallas import tpu as pltpu


# ---------------------------------------------------------------------------
# Pallas kernel: one batch element of a 3x3 conv via 9-tap accumulation
# ---------------------------------------------------------------------------
def _conv3x3_tap_kernel(xph_ref, w_ref, b_ref, o_ref, *, stride, relu, kh, kw,
                        ho, wo, compute_dtype):
    """xph_ref: (1, stride*stride, Hq, Wq, Cin) phase-split padded activation
       w_ref:   (kh*kw, Cin, Cout)              VMEM-resident weights
       b_ref:   (1, Cout)                       VMEM-resident bias
       o_ref:   (1, Ho, Wo, Cout)               output block (this image)
    """
    cin = w_ref.shape[1]
    cout = w_ref.shape[2]

    # Hoisted once per grid step (weights are already VMEM-resident).
    bias_row = jnp.zeros((wo, cout), jnp.float32) + b_ref[...].astype(jnp.float32)
    w_taps = [
        w_ref[t].astype(jnp.float32 if cin == 1 else compute_dtype)
        for t in range(kh * kw)
    ]

    def compute_row(r):
        acc = bias_row
        for dh in range(kh):
            for dw in range(kw):
                phase = (dh % stride) * stride + (dw % stride)
                # Tap (dh, dw) of the strided conv lives in phase
                # (dh%s, dw%s) at row offset dh//s, col offset dw//s.
                a = xph_ref[0, phase, dh // stride + r,
                            pl.ds(dw // stride, wo), :]          # (wo, Cin)
                wt = w_taps[dh * kw + dw]                        # (Cin, Cout)
                if cin == 1:
                    # K=1 "matmul" == broadcast multiply -> keep it on the VPU.
                    acc = acc + a.astype(jnp.float32) * wt
                else:
                    acc = acc + jnp.dot(a.astype(compute_dtype), wt,
                                        preferred_element_type=jnp.float32)
        if relu:
            acc = jnp.maximum(acc, 0.0)
        return acc.astype(o_ref.dtype)

    if ho <= 8:
        # Tiny spatial extent (demo path): fully static unroll, static indices.
        for r in range(ho):
            o_ref[0, r, :, :] = compute_row(r)
    else:
        def body(r, carry):
            o_ref[0, r, :, :] = compute_row(r)
            return carry

        jax.lax.fori_loop(0, ho, body, 0)


# ---------------------------------------------------------------------------
# Conv2D wrapper: pad + phase-split (cheap XLA glue, 1x activation bytes)
# ---------------------------------------------------------------------------
def conv2d_pallas(x, w_hwio, b, *, stride, relu, compute_dtype=jnp.float32):
    # x: (N, H, W, Cin) f32 NHWC ; w_hwio: (3, 3, Cin, Cout) ; b: (Cout,)
    n, h, w, cin = x.shape
    kh, kw, _, cout = w_hwio.shape
    pad = (kh - 1) // 2
    ho = (h + 2 * pad - kh) // stride + 1
    wo = (w + 2 * pad - kw) // stride + 1

    # SAME-style zero padding of the PyTorch layer ...
    xp = jnp.pad(x, ((0, 0), (pad, pad), (pad, pad), (0, 0)))
    hp, wp = h + 2 * pad, w + 2 * pad
    hq = -(-hp // stride)
    wq = -(-wp // stride)
    xp = jnp.pad(xp, ((0, 0), (0, hq * stride - hp), (0, wq * stride - wp), (0, 0)))
    # ... then phase-split so every kernel tap becomes a contiguous slice.
    xph = xp.reshape(n, hq, stride, wq, stride, cin)
    xph = jnp.transpose(xph, (0, 2, 4, 1, 3, 5)).reshape(
        n, stride * stride, hq, wq, cin)

    wmat = w_hwio.reshape(kh * kw, cin, cout)
    bmat = b.reshape(1, cout)

    itemsize = 4
    cost = pl.CostEstimate(
        flops=2 * n * ho * wo * cout * cin * kh * kw,
        transcendentals=0,
        bytes_accessed=(xph.size + wmat.size + bmat.size + n * ho * wo * cout)
        * itemsize,
    )

    kernel = functools.partial(
        _conv3x3_tap_kernel, stride=stride, relu=relu, kh=kh, kw=kw,
        ho=ho, wo=wo, compute_dtype=compute_dtype)

    out = pl.pallas_call(
        kernel,
        grid=(n,),
        in_specs=[
            pl.BlockSpec((1, stride * stride, hq, wq, cin),
                         lambda i: (i, 0, 0, 0, 0)),
            pl.BlockSpec((kh * kw, cin, cout), lambda i: (0, 0, 0)),
            pl.BlockSpec((1, cout), lambda i: (0, 0)),
        ],
        out_specs=pl.BlockSpec((1, ho, wo, cout), lambda i: (i, 0, 0, 0)),
        out_shape=jax.ShapeDtypeStruct((n, ho, wo, cout), jnp.float32),
        compiler_params=pltpu.CompilerParams(
            dimension_semantics=("parallel",)),
        cost_estimate=cost,
    )(xph, wmat, bmat)
    return out


# ---------------------------------------------------------------------------
# Parameters (deterministic; mirrors kaiming_normal_ weight / uniform bias)
# ---------------------------------------------------------------------------
_LAYER_CFG = [
    # (Cin, Cout, stride, relu)
    (1, 8, 2, True),
    (8, 16, 2, True),
    (16, 32, 2, True),
    (32, 64, 2, True),
    (64, 1, 1, False),
]


def init_params(key, k=3):
    params = []
    for cin, cout, _, _ in _LAYER_CFG:
        key, kw_, kb_ = jax.random.split(key, 3)
        fan_in = cin * k * k
        w = jax.random.normal(kw_, (k, k, cin, cout), jnp.float32) * jnp.sqrt(
            2.0 / fan_in)
        bound = 1.0 / jnp.sqrt(fan_in)
        b = jax.random.uniform(kb_, (cout,), jnp.float32,
                               minval=-bound, maxval=bound)
        params.append((w, b))
    return params


# ---------------------------------------------------------------------------
# Discriminator forward
# ---------------------------------------------------------------------------
def discriminator_forward(params, image_nchw, *, compute_dtype=jnp.float32):
    # image_nchw: (N, 1, H, W), same convention as PyTorch.
    x = jnp.transpose(image_nchw, (0, 2, 3, 1)).astype(jnp.float32) - 0.5
    for (w, b), (_, _, stride, relu) in zip(params, _LAYER_CFG):
        x = conv2d_pallas(x, w, b, stride=stride, relu=relu,
                          compute_dtype=compute_dtype)

    # Back to NCHW for parity with the PyTorch return value.
    x_nchw = jnp.transpose(x, (0, 3, 1, 2))
    # Global mean over the tiny final feature map: cheaper as plain XLA than
    # a dedicated pallas_call (per review).
    mean = jnp.mean(x)
    return mean, x_nchw


# ---------------------------------------------------------------------------
if __name__ == "__main__":
    key = jax.random.PRNGKey(0)
    k_params, k_img = jax.random.split(key)

    params = init_params(k_params)
    # Small input consistent with the module: batch=2, 1 channel, 16x16 image.
    image = jax.random.uniform(k_img, (2, 1, 16, 16), jnp.float32)

    fwd = jax.jit(discriminator_forward)
    mean_out, feat_map = fwd(params, image)
    jax.block_until_ready((mean_out, feat_map))

    assert feat_map.shape == (2, 1, 1, 1), feat_map.shape
    assert mean_out.shape == (), mean_out.shape
    print("KERNEL_OK")
</pallas_src>

<mosaic_0001>
module attributes {stable_mosaic.version = 11 : i64} {
  func.func @_conv3x3_tap_kernel(%arg0: i32, %arg1: memref<1x4x9x9x1xf32, #tpu.memory_space<vmem>>, %arg2: memref<9x1x8xf32, #tpu.memory_space<vmem>>, %arg3: memref<1x8xf32, #tpu.memory_space<vmem>>, %arg4: memref<1x8x8x8xf32, #tpu.memory_space<vmem>>) attributes {dimension_semantics = [#tpu.dimension_semantics<parallel>], iteration_bounds = array<i64: 2>, scalar_prefetch = 0 : i64, scratch_operands = 0 : i64, tpu.core_type = #tpu.core_type<tc>, window_params = [{transform_indices = @transform_0, window_bounds = array<i64: 1, 4, 9, 9, 1>}, {pipeline_mode = #tpu.pipeline_mode<synchronous>, transform_indices = @transform_1, window_bounds = array<i64: 9, 1, 8>}, {pipeline_mode = #tpu.pipeline_mode<synchronous>, transform_indices = @transform_2, window_bounds = array<i64: 1, 8>}, {transform_indices = @transform_3, window_bounds = array<i64: 1, 8, 8, 8>}]} {
    %cst = arith.constant 0.000000e+00 : f32
    %0 = vector.broadcast %cst : f32 to vector<8x8xf32>
    %c0 = arith.constant 0 : index
    %c0_0 = arith.constant 0 : index
    %1 = vector.load %arg3[%c0, %c0_0] : memref<1x8xf32, #tpu.memory_space<vmem>>, vector<1x8xf32>
    %2 = vector.broadcast %1 : vector<1x8xf32> to vector<8x8xf32>
    %3 = arith.addf %0, %2 : vector<8x8xf32>
    %c0_1 = arith.constant 0 : index
    %c0_2 = arith.constant 0 : index
    %c0_3 = arith.constant 0 : index
    %4 = vector.load %arg2[%c0_1, %c0_2, %c0_3] : memref<9x1x8xf32, #tpu.memory_space<vmem>>, vector<1x1x8xf32>
    %5 = vector.shape_cast %4 : vector<1x1x8xf32> to vector<1x8xf32>
    %c1 = arith.constant 1 : index
    %c0_4 = arith.constant 0 : index
    %c0_5 = arith.constant 0 : index
    %6 = vector.load %arg2[%c1, %c0_4, %c0_5] : memref<9x1x8xf32, #tpu.memory_space<vmem>>, vector<1x1x8xf32>
    %7 = vector.shape_cast %6 : vector<1x1x8xf32> to vector<1x8xf32>
    %c2 = arith.constant 2 : index
    %c0_6 = arith.constant 0 : index
    %c0_7 = arith.constant 0 : index
    %8 = vector.load %arg2[%c2, %c0_6, %c0_7] : memref<9x1x8xf32, #tpu.memory_space<vmem>>, vector<1x1x8xf32>
    %9 = vector.shape_cast %8 : vector<1x1x8xf32> to vector<1x8xf32>
    %c3 = arith.constant 3 : index
    %c0_8 = arith.constant 0 : index
    %c0_9 = arith.constant 0 : index
    %10 = vector.load %arg2[%c3, %c0_8, %c0_9] : memref<9x1x8xf32, #tpu.memory_space<vmem>>, vector<1x1x8xf32>
    %11 = vector.shape_cast %10 : vector<1x1x8xf32> to vector<1x8xf32>
    %c4 = arith.constant 4 : index
    %c0_10 = arith.constant 0 : index
    %c0_11 = arith.constant 0 : index
    %12 = vector.load %arg2[%c4, %c0_10, %c0_11] : memref<9x1x8xf32, #tpu.memory_space<vmem>>, vector<1x1x8xf32>
    %13 = vector.shape_cast %12 : vector<1x1x8xf32> to vector<1x8xf32>
    %c5 = arith.constant 5 : index
    %c0_12 = arith.constant 0 : index
    %c0_13 = arith.constant 0 : index
    %14 = vector.load %arg2[%c5, %c0_12, %c0_13] : memref<9x1x8xf32, #tpu.memory_space<vmem>>, vector<1x1x8xf32>
    %15 = vector.shape_cast %14 : vector<1x1x8xf32> to vector<1x8xf32>
    %c6 = arith.constant 6 : index
    %c0_14 = arith.constant 0 : index
    %c0_15 = arith.constant 0 : index
    %16 = vector.load %arg2[%c6, %c0_14, %c0_15] : memref<9x1x8xf32, #tpu.memory_space<vmem>>, vector<1x1x8xf32>
    %17 = vector.shape_cast %16 : vector<1x1x8xf32> to vector<1x8xf32>
    %c7 = arith.constant 7 : index
    %c0_16 = arith.constant 0 : index
    %c0_17 = arith.constant 0 : index
    %18 = vector.load %arg2[%c7, %c0_16, %c0_17] : memref<9x1x8xf32, #tpu.memory_space<vmem>>, vector<1x1x8xf32>
    %19 = vector.shape_cast %18 : vector<1x1x8xf32> to vector<1x8xf32>
    %c8 = arith.constant 8 : index
    %c0_18 = arith.constant 0 : index
    %c0_19 = arith.constant 0 : index
    %20 = vector.load %arg2[%c8, %c0_18, %c0_19] : memref<9x1x8xf32, #tpu.memory_space<vmem>>, vector<1x1x8xf32>
    %21 = vector.shape_cast %20 : vector<1x1x8xf32> to vector<1x8xf32>
    %c0_20 = arith.constant 0 : index
    %c0_21 = arith.constant 0 : index
    %c0_22 = arith.constant 0 : index
    %c0_23 = arith.constant 0 : index
    %c0_24 = arith.constant 0 : index
    %22 = vector.load %arg1[%c0_20, %c0_21, %c0_22, %c0_23, %c0_24] : memref<1x4x9x9x1xf32, #tpu.memory_space<vmem>>, vector<1x1x1x8x1xf32>
    %23 = vector.shape_cast %22 : vector<1x1x1x8x1xf32> to vector<8x1xf32>
    %24 = vector.broadcast %23 : vector<8x1xf32> to vector<8x8xf32>
    %25 = vector.broadcast %5 : vector<1x8xf32> to vector<8x8xf32>
    %26 = arith.mulf %24, %25 : vector<8x8xf32>
    %27 = arith.addf %3, %26 : vector<8x8xf32>
    %c0_25 = arith.constant 0 : index
    %c1_26 = arith.constant 1 : index
    %c0_27 = arith.constant 0 : index
    %c0_28 = arith.constant 0 : index
    %c0_29 = arith.constant 0 : index
    %28 = vector.load %arg1[%c0_25, %c1_26, %c0_27, %c0_28, %c0_29] : memref<1x4x9x9x1xf32, #tpu.memory_space<vmem>>, vector<1x1x1x8x1xf32>
    %29 = vector.shape_cast %28 : vector<1x1x1x8x1xf32> to vector<8x1xf32>
    %30 = vector.broadcast %29 : vector<8x1xf32> to vector<8x8xf32>
    %31 = vector.broadcast %7 : vector<1x8xf32> to vector<8x8xf32>
    %32 = arith.mulf %30, %31 : vector<8x8xf32>
    %33 = arith.addf %27, %32 : vector<8x8xf32>
    %c0_30 = arith.constant 0 : index
    %c0_31 = arith.constant 0 : index
    %c0_32 = arith.constant 0 : index
    %c1_33 = arith.constant 1 : index
    %c0_34 = arith.constant 0 : index
    %34 = vector.load %arg1[%c0_30, %c0_31, %c0_32, %c1_33, %c0_34] : memref<1x4x9x9x1xf32, #tpu.memory_space<vmem>>, vector<1x1x1x8x1xf32>
    %35 = vector.shape_cast %34 : vector<1x1x1x8x1xf32> to vector<8x1xf32>
    %36 = vector.broadcast %35 : vector<8x1xf32> to vector<8x8xf32>
    %37 = vector.broadcast %9 : vector<1x8xf32> to vector<8x8xf32>
    %38 = arith.mulf %36, %37 : vector<8x8xf32>
    %39 = arith.addf %33, %38 : vector<8x8xf32>
    %c0_35 = arith.constant 0 : index
    %c2_36 = arith.constant 2 : index
    %c0_37 = arith.constant 0 : index
    %c0_38 = arith.constant 0 : index
    %c0_39 = arith.constant 0 : index
    %40 = vector.load %arg1[%c0_35, %c2_36, %c0_37, %c0_38, %c0_39] : memref<1x4x9x9x1xf32, #tpu.memory_space<vmem>>, vector<1x1x1x8x1xf32>
    %41 = vector.shape_cast %40 : vector<1x1x1x8x1xf32> to vector<8x1xf32>
    %42 = vector.broadcast %41 : vector<8x1xf32> to vector<8x8xf32>
    %43 = vector.broadcast %11 : vector<1x8xf32> to vector<8x8xf32>
    %44 = arith.mulf %42, %43 : vector<8x8xf32>
    %45 = arith.addf %39, %44 : vector<8x8xf32>
    %c0_40 = arith.constant 0 : index
    %c3_41 = arith.constant 3 : index
    %c0_42 = arith.constant 0 : index
    %c0_43 = arith.constant 0 : index
    %c0_44 = arith.constant 0 : index
    %46 = vector.load %arg1[%c0_40, %c3_41, %c0_42, %c0_43, %c0_44] : memref<1x4x9x9x1xf32, #tpu.memory_space<vmem>>, vector<1x1x1x8x1xf32>
    %47 = vector.shape_cast %46 : vector<1x1x1x8x1xf32> to vector<8x1xf32>
    %48 = vector.broadcast %47 : vector<8x1xf32> to vector<8x8xf32>
    %49 = vector.broadcast %13 : vector<1x8xf32> to vector<8x8xf32>
    %50 = arith.mulf %48, %49 : vector<8x8xf32>
    %51 = arith.addf %45, %50 : vector<8x8xf32>
    %c0_45 = arith.constant 0 : index
    %c2_46 = arith.constant 2 : index
    %c0_47 = arith.constant 0 : index
    %c1_48 = arith.constant 1 : index
    %c0_49 = arith.constant 0 : index
    %52 = vector.load %arg1[%c0_45, %c2_46, %c0_47, %c1_48, %c0_49] : memref<1x4x9x9x1xf32, #tpu.memory_space<vmem>>, vector<1x1x1x8x1xf32>
    %53 = vector.shape_cast %52 : vector<1x1x1x8x1xf32> to vector<8x1xf32>
    %54 = vector.broadcast %53 : vector<8x1xf32> to vector<8x8xf32>
    %55 = vector.broadcast %15 : vector<1x8xf32> to vector<8x8xf32>
    %56 = arith.mulf %54, %55 : vector<8x8xf32>
    %57 = arith.addf %51, %56 : vector<8x8xf32>
    %c0_50 = arith.constant 0 : index
    %c0_51 = arith.constant 0 : index
    %c1_52 = arith.constant 1 : index
    %c0_53 = arith.constant 0 : index
    %c0_54 = arith.constant 0 : index
    %58 = vector.load %arg1[%c0_50, %c0_51, %c1_52, %c0_53, %c0_54] : memref<1x4x9x9x1xf32, #tpu.memory_space<vmem>>, vector<1x1x1x8x1xf32>
    %59 = vector.shape_cast %58 : vector<1x1x1x8x1xf32> to vector<8x1xf32>
    %60 = vector.broadcast %59 : vector<8x1xf32> to vector<8x8xf32>
    %61 = vector.broadcast %17 : vector<1x8xf32> to vector<8x8xf32>
    %62 = arith.mulf %60, %61 : vector<8x8xf32>
    %63 = arith.addf %57, %62 : vector<8x8xf32>
    %c0_55 = arith.constant 0 : index
    %c1_56 = arith.constant 1 : index
    %c1_57 = arith.constant 1 : index
    %c0_58 = arith.constant 0 : index
    %c0_59 = arith.constant 0 : index
    %64 = vector.load %arg1[%c0_55, %c1_56, %c1_57, %c0_58, %c0_59] : memref<1x4x9x9x1xf32, #tpu.memory_space<vmem>>, vector<1x1x1x8x1xf32>
    %65 = vector.shape_cast %64 : vector<1x1x1x8x1xf32> to vector<8x1xf32>
    %66 = vector.broadcast %65 : vector<8x1xf32> to vector<8x8xf32>
    %67 = vector.broadcast %19 : vector<1x8xf32> to vector<8x8xf32>
    %68 = arith.mulf %66, %67 : vector<8x8xf32>
    %69 = arith.addf %63, %68 : vector<8x8xf32>
    %c0_60 = arith.constant 0 : index
    %c0_61 = arith.constant 0 : index
    %c1_62 = arith.constant 1 : index
    %c1_63 = arith.constant 1 : index
    %c0_64 = arith.constant 0 : index
    %70 = vector.load %arg1[%c0_60, %c0_61, %c1_62, %c1_63, %c0_64] : memref<1x4x9x9x1xf32, #tpu.memory_space<vmem>>, vector<1x1x1x8x1xf32>
    %71 = vector.shape_cast %70 : vector<1x1x1x8x1xf32> to vector<8x1xf32>
    %72 = vector.broadcast %71 : vector<8x1xf32> to vector<8x8xf32>
    %73 = vector.broadcast %21 : vector<1x8xf32> to vector<8x8xf32>
    %74 = arith.mulf %72, %73 : vector<8x8xf32>
    %75 = arith.addf %69, %74 : vector<8x8xf32>
    %cst_65 = arith.constant 0.000000e+00 : f32
    %76 = vector.broadcast %cst_65 : f32 to vector<8x8xf32>
    %77 = arith.maximumf %75, %76 : vector<8x8xf32>
    %c0_66 = arith.constant 0 : index
    %c0_67 = arith.constant 0 : index
    %c0_68 = arith.constant 0 : index
    %c0_69 = arith.constant 0 : index
    %78 = vector.load %arg4[%c0_66, %c0_67, %c0_68, %c0_69] : memref<1x8x8x8xf32, #tpu.memory_space<vmem>>, vector<1x1x8x8xf32>
    %79 = vector.shape_cast %78 : vector<1x1x8x8xf32> to vector<8x8xf32>
    %80 = vector.shape_cast %77 : vector<8x8xf32> to vector<1x1x8x8xf32>
    tpu.vector_store %arg4[%c0_66, %c0_67, %c0_68, %c0_69], %80 {strides = array<i32>} : memref<1x8x8x8xf32, #tpu.memory_space<vmem>>, vector<1x1x8x8xf32>,
    %c0_70 = arith.constant 0 : index
    %c0_71 = arith.constant 0 : index
    %c1_72 = arith.constant 1 : index
    %c0_73 = arith.constant 0 : index
    %c0_74 = arith.constant 0 : index
    %81 = vector.load %arg1[%c0_70, %c0_71, %c1_72, %c0_73, %c0_74] : memref<1x4x9x9x1xf32, #tpu.memory_space<vmem>>, vector<1x1x1x8x1xf32>
    %82 = vector.shape_cast %81 : vector<1x1x1x8x1xf32> to vector<8x1xf32>
    %83 = vector.broadcast %82 : vector<8x1xf32> to vector<8x8xf32>
    %84 = vector.broadcast %5 : vector<1x8xf32> to vector<8x8xf32>
    %85 = arith.mulf %83, %84 : vector<8x8xf32>
    %86 = arith.addf %3, %85 : vector<8x8xf32>
    %c0_75 = arith.constant 0 : index
    %c1_76 = arith.constant 1 : index
    %c1_77 = arith.constant 1 : index
    %c0_78 = arith.constant 0 : index
    %c0_79 = arith.constant 0 : index
    %87 = vector.load %arg1[%c0_75, %c1_76, %c1_77, %c0_78, %c0_79] : memref<1x4x9x9x1xf32, #tpu.memory_space<vmem>>, vector<1x1x1x8x1xf32>
    %88 = vector.shape_cast %87 : vector<1x1x1x8x1xf32> to vector<8x1xf32>
    %89 = vector.broadcast %88 : vector<8x1xf32> to vector<8x8xf32>
    %90 = vector.broadcast %7 : vector<1x8xf32> to vector<8x8xf32>
    %91 = arith.mulf %89, %90 : vector<8x8xf32>
    %92 = arith.addf %86, %91 : vector<8x8xf32>
    %c0_80 = arith.constant 0 : index
    %c0_81 = arith.constant 0 : index
    %c1_82 = arith.constant 1 : index
    %c1_83 = arith.constant 1 : index
    %c0_84 = arith.constant 0 : index
    %93 = vector.load %arg1[%c0_80, %c0_81, %c1_82, %c1_83, %c0_84] : memref<1x4x9x9x1xf32, #tpu.memory_space<vmem>>, vector<1x1x1x8x1xf32>
    %94 = vector.shape_cast %93 : vector<1x1x1x8x1xf32> to vector<8x1xf32>
    %95 = vector.broadcast %94 : vector<8x1xf32> to vector<8x8xf32>
    %96 = vector.broadcast %9 : vector<1x8xf32> to vector<8x8xf32>
    %97 = arith.mulf %95, %96 : vector<8x8xf32>
    %98 = arith.addf %92, %97 : vector<8x8xf32>
    %c0_85 = arith.constant 0 : index
    %c2_86 = arith.constant 2 : index
    %c1_87 = arith.constant 1 : index
    %c0_88 = arith.constant 0 : index
    %c0_89 = arith.constant 0 : index
    %99 = vector.load %arg1[%c0_85, %c2_86, %c1_87, %c0_88, %c0_89] : memref<1x4x9x9x1xf32, #tpu.memory_space<vmem>>, vector<1x1x1x8x1xf32>
    %100 = vector.shape_cast %99 : vector<1x1x1x8x1xf32> to vector<8x1xf32>
    %101 = vector.broadcast %100 : vector<8x1xf32> to vector<8x8xf32>
    %102 = vector.broadcast %11 : vector<1x8xf32> to vector<8x8xf32>
    %103 = arith.mulf %101, %102 : vector<8x8xf32>
    %104 = arith.addf %98, %103 : vector<8x8xf32>
    %c0_90 = arith.constant 0 : index
    %c3_91 = arith.constant 3 : index
    %c1_92 = arith.constant 1 : index
    %c0_93 = arith.constant 0 : index
    %c0_94 = arith.constant 0 : index
    %105 = vector.load %arg1[%c0_90, %c3_91, %c1_92, %c0_93, %c0_94] : memref<1x4x9x9x1xf32, #tpu.memory_space<vmem>>, vector<1x1x1x8x1xf32>
    %106 = vector.shape_cast %105 : vector<1x1x1x8x1xf32> to vector<8x1xf32>
    %107 = vector.broadcast %106 : vector<8x1xf32> to vector<8x8xf32>
    %108 = vector.broadcast %13 : vector<1x8xf32> to vector<8x8xf32>
    %109 = arith.mulf %107, %108 : vector<8x8xf32>
    %110 = arith.addf %104, %109 : vector<8x8xf32>
    %c0_95 = arith.constant 0 : index
    %c2_96 = arith.constant 2 : index
    %c1_97 = arith.constant 1 : index
    %c1_98 = arith.constant 1 : index
    %c0_99 = arith.constant 0 : index
    %111 = vector.load %arg1[%c0_95, %c2_96, %c1_97, %c1_98, %c0_99] : memref<1x4x9x9x1xf32, #tpu.memory_space<vmem>>, vector<1x1x1x8x1xf32>
    %112 = vector.shape_cast %111 : vector<1x1x1x8x1xf32> to vector<8x1xf32>
    %113 = vector.broadcast %112 : vector<8x1xf32> to vector<8x8xf32>
    %114 = vector.broadcast %15 : vector<1x8xf32> to vector<8x8xf32>
    %115 = arith.mulf %113, %114 : vector<8x8xf32>
    %116 = arith.addf %110, %115 : vector<8x8xf32>
    %c0_100 = arith.constant 0 : index
    %c0_101 = arith.constant 0 : index
    %c2_102 = arith.constant 2 : index
    %c0_103 = arith.constant 0 : index
    %c0_104 = arith.constant 0 : index
    %117 = vector.load %arg1[%c0_100, %c0_101, %c2_102, %c0_103, %c0_104] : memref<1x4x9x9x1xf32, #tpu.memory_space<vmem>>, vector<1x1x1x8x1xf32>
    %118 = vector.shape_cast %117 : vector<1x1x1x8x1xf32> to vector<8x1xf32>
    %119 = vector.broadcast %118 : vector<8x1xf32> to vector<8x8xf32>
    %120 = vector.broadcast %17 : vector<1x8xf32> to vector<8x8xf32>
    %121 = arith.mulf %119, %120 : vector<8x8xf32>
    %122 = arith.addf %116, %121 : vector<8x8xf32>
    %c0_105 = arith.constant 0 : index
    %c1_106 = arith.constant 1 : index
    %c2_107 = arith.constant 2 : index
    %c0_108 = arith.constant 0 : index
    %c0_109 = arith.constant 0 : index
    %123 = vector.load %arg1[%c0_105, %c1_106, %c2_107, %c0_108, %c0_109] : memref<1x4x9x9x1xf32, #tpu.memory_space<vmem>>, vector<1x1x1x8x1xf32>
    %124 = vector.shape_cast %123 : vector<1x1x1x8x1xf32> to vector<8x1xf32>
    %125 = vector.broadcast %124 : vector<8x1xf32> to vector<8x8xf32>
    %126 = vector.broadcast %19 : vector<1x8xf32> to vector<8x8xf32>
    %127 = arith.mulf %125, %126 : vector<8x8xf32>
    %128 = arith.addf %122, %127 : vector<8x8xf32>
    %c0_110 = arith.constant 0 : index
    %c0_111 = arith.constant 0 : index
    %c2_112 = arith.constant 2 : index
    %c1_113 = arith.constant 1 : index
    %c0_114 = arith.constant 0 : index
    %129 = vector.load %arg1[%c0_110, %c0_111, %c2_112, %c1_113, %c0_114] : memref<1x4x9x9x1xf32, #tpu.memory_space<vmem>>, vector<1x1x1x8x1xf32>
    %130 = vector.shape_cast %129 : vector<1x1x1x8x1xf32> to vector<8x1xf32>
    %131 = vector.broadcast %130 : vector<8x1xf32> to vector<8x8xf32>
    %132 = vector.broadcast %21 : vector<1x8xf32> to vector<8x8xf32>
    %133 = arith.mulf %131, %132 : vector<8x8xf32>
    %134 = arith.addf %128, %133 : vector<8x8xf32>
    %cst_115 = arith.constant 0.000000e+00 : f32
    %135 = vector.broadcast %cst_115 : f32 to vector<8x8xf32>
    %136 = arith.maximumf %134, %135 : vector<8x8xf32>
    %c0_116 = arith.constant 0 : index
    %c1_117 = arith.constant 1 : index
    %c0_118 = arith.constant 0 : index
    %c0_119 = arith.constant 0 : index
    %137 = vector.load %arg4[%c0_116, %c1_117, %c0_118, %c0_119] : memref<1x8x8x8xf32, #tpu.memory_space<vmem>>, vector<1x1x8x8xf32>
    %138 = vector.shape_cast %137 : vector<1x1x8x8xf32> to vector<8x8xf32>
    %139 = vector.shape_cast %136 : vector<8x8xf32> to vector<1x1x8x8xf32>
    tpu.vector_store %arg4[%c0_116, %c1_117, %c0_118, %c0_119], %139 {strides = array<i32>} : memref<1x8x8x8xf32, #tpu.memory_space<vmem>>, vector<1x1x8x8xf32>,
    %c0_120 = arith.constant 0 : index
    %c0_121 = arith.constant 0 : index
    %c2_122 = arith.constant 2 : index
    %c0_123 = arith.constant 0 : index
    %c0_124 = arith.constant 0 : index
    %140 = vector.load %arg1[%c0_120, %c0_121, %c2_122, %c0_123, %c0_124] : memref<1x4x9x9x1xf32, #tpu.memory_space<vmem>>, vector<1x1x1x8x1xf32>
    %141 = vector.shape_cast %140 : vector<1x1x1x8x1xf32> to vector<8x1xf32>
    %142 = vector.broadcast %141 : vector<8x1xf32> to vector<8x8xf32>
    %143 = vector.broadcast %5 : vector<1x8xf32> to vector<8x8xf32>
    %144 = arith.mulf %142, %143 : vector<8x8xf32>
    %145 = arith.addf %3, %144 : vector<8x8xf32>
    %c0_125 = arith.constant 0 : index
    %c1_126 = arith.constant 1 : index
    %c2_127 = arith.constant 2 : index
    %c0_128 = arith.constant 0 : index
    %c0_129 = arith.constant 0 : index
    %146 = vector.load %arg1[%c0_125, %c1_126, %c2_127, %c0_128, %c0_129] : memref<1x4x9x9x1xf32, #tpu.memory_space<vmem>>, vector<1x1x1x8x1xf32>
    %147 = vector.shape_cast %146 : vector<1x1x1x8x1xf32> to vector<8x1xf32>
    %148 = vector.broadcast %147 : vector<8x1xf32> to vector<8x8xf32>
    %149 = vector.broadcast %7 : vector<1x8xf32> to vector<8x8xf32>
    %150 = arith.mulf %148, %149 : vector<8x8xf32>
    %151 = arith.addf %145, %150 : vector<8x8xf32>
    %c0_130 = arith.constant 0 : index
    %c0_131 = arith.constant 0 : index
    %c2_132 = arith.constant 2 : index
    %c1_133 = arith.constant 1 : index
    %c0_134 = arith.constant 0 : index
    %152 = vector.load %arg1[%c0_130, %c0_131, %c2_132, %c1_133, %c0_134] : memref<1x4x9x9x1xf32, #tpu.memory_space<vmem>>, vector<1x1x1x8x1xf32>
    %153 = vector.shape_cast %152 : vector<1x1x1x8x1xf32> to vector<8x1xf32>
    %154 = vector.broadcast %153 : vector<8x1xf32> to vector<8x8xf32>
    %155 = vector.broadcast %9 : vector<1x8xf32> to vector<8x8xf32>
    %156 = arith.mulf %154, %155 : vector<8x8xf32>
    %157 = arith.addf %151, %156 : vector<8x8xf32>
    %c0_135 = arith.constant 0 : index
    %c2_136 = arith.constant 2 : index
    %c2_137 = arith.constant 2 : index
    %c0_138 = arith.constant 0 : index
    %c0_139 = arith.constant 0 : index
    %158 = vector.load %arg1[%c0_135, %c2_136, %c2_137, %c0_138, %c0_139] : memref<1x4x9x9x1xf32, #tpu.memory_space<vmem>>, vector<1x1x1x8x1xf32>
    %159 = vector.shape_cast %158 : vector<1x1x1x8x1xf32> to vector<8x1xf32>
    %160 = vector.broadcast %159 : vector<8x1xf32> to vector<8x8xf32>
    %161 = vector.broadcast %11 : vector<1x8xf32> to vector<8x8xf32>
    %162 = arith.mulf %160, %161 : vector<8x8xf32>
    %163 = arith.addf %157, %162 : vector<8x8xf32>
    %c0_140 = arith.constant 0 : index
    %c3_141 = arith.constant 3 : index
    %c2_142 = arith.constant 2 : index
    %c0_143 = arith.constant 0 : index
    %c0_144 = arith.constant 0 : index
    %164 = vector.load %arg1[%c0_140, %c3_141, %c2_142, %c0_143, %c0_144] : memref<1x4x9x9x1xf32, #tpu.memory_space<vmem>>, vector<1x1x1x8x1xf32>
    %165 = vector.shape_cast %164 : vector<1x1x1x8x1xf32> to vector<8x1xf32>
    %166 = vector.broadcast %165 : vector<8x1xf32> to vector<8x8xf32>
    %167 = vector.broadcast %13 : vector<1x8xf32> to vector<8x8xf32>
    %168 = arith.mulf %166, %167 : vector<8x8xf32>
    %169 = arith.addf %163, %168 : vector<8x8xf32>
    %c0_145 = arith.constant 0 : index
    %c2_146 = arith.constant 2 : index
    %c2_147 = arith.constant 2 : index
    %c1_148 = arith.constant 1 : index
    %c0_149 = arith.constant 0 : index
    %170 = vector.load %arg1[%c0_145, %c2_146, %c2_147, %c1_148, %c0_149] : memref<1x4x9x9x1xf32, #tpu.memory_space<vmem>>, vector<1x1x1x8x1xf32>
    %171 = vector.shape_cast %170 : vector<1x1x1x8x1xf32> to vector<8x1xf32>
    %172 = vector.broadcast %171 : vector<8x1xf32> to vector<8x8xf32>
    %173 = vector.broadcast %15 : vector<1x8xf32> to vector<8x8xf32>
    %174 = arith.mulf %172, %173 : vector<8x8xf32>
    %175 = arith.addf %169, %174 : vector<8x8xf32>
    %c0_150 = arith.constant 0 : index
    %c0_151 = arith.constant 0 : index
    %c3_152 = arith.constant 3 : index
    %c0_153 = arith.constant 0 : index
    %c0_154 = arith.constant 0 : index
    %176 = vector.load %arg1[%c0_150, %c0_151, %c3_152, %c0_153, %c0_154] : memref<1x4x9x9x1xf32, #tpu.memory_space<vmem>>, vector<1x1x1x8x1xf32>
    %177 = vector.shape_cast %176 : vector<1x1x1x8x1xf32> to vector<8x1xf32>
    %178 = vector.broadcast %177 : vector<8x1xf32> to vector<8x8xf32>
    %179 = vector.broadcast %17 : vector<1x8xf32> to vector<8x8xf32>
    %180 = arith.mulf %178, %179 : vector<8x8xf32>
    %181 = arith.addf %175, %180 : vector<8x8xf32>
    %c0_155 = arith.constant 0 : index
    %c1_156 = arith.constant 1 : index
    %c3_157 = arith.constant 3 : index
    %c0_158 = arith.constant 0 : index
    %c0_159 = arith.constant 0 : index
    %182 = vector.load %arg1[%c0_155, %c1_156, %c3_157, %c0_158, %c0_159] : memref<1x4x9x9x1xf32, #tpu.memory_space<vmem>>, vector<1x1x1x8x1xf32>
    %183 = vector.shape_cast %182 : vector<1x1x1x8x1xf32> to vector<8x1xf32>
    %184 = vector.broadcast %183 : vector<8x1xf32> to vector<8x8xf32>
    %185 = vector.broadcast %19 : vector<1x8xf32> to vector<8x8xf32>
    %186 = arith.mulf %184, %185 : vector<8x8xf32>
    %187 = arith.addf %181, %186 : vector<8x8xf32>
    %c0_160 = arith.constant 0 : index
    %c0_161 = arith.constant 0 : index
    %c3_162 = arith.constant 3 : index
    %c1_163 = arith.constant 1 : index
    %c0_164 = arith.constant 0 : index
    %188 = vector.load %arg1[%c0_160, %c0_161, %c3_162, %c1_163, %c0_164] : memref<1x4x9x9x1xf32, #tpu.memory_space<vmem>>, vector<1x1x1x8x1xf32>
    %189 = vector.shape_cast %188 : vector<1x1x1x8x1xf32> to vector<8x1xf32>
    %190 = vector.broadcast %189 : vector<8x1xf32> to vector<8x8xf32>
    %191 = vector.broadcast %21 : vector<1x8xf32> to vector<8x8xf32>
    %192 = arith.mulf %190, %191 : vector<8x8xf32>
    %193 = arith.addf %187, %192 : vector<8x8xf32>
    %cst_165 = arith.constant 0.000000e+00 : f32
    %194 = vector.broadcast %cst_165 : f32 to vector<8x8xf32>
    %195 = arith.maximumf %193, %194 : vector<8x8xf32>
    %c0_166 = arith.constant 0 : index
    %c2_167 = arith.constant 2 : index
    %c0_168 = arith.constant 0 : index
    %c0_169 = arith.constant 0 : index
    %196 = vector.load %arg4[%c0_166, %c2_167, %c0_168, %c0_169] : memref<1x8x8x8xf32, #tpu.memory_space<vmem>>, vector<1x1x8x8xf32>
    %197 = vector.shape_cast %196 : vector<1x1x8x8xf32> to vector<8x8xf32>
    %198 = vector.shape_cast %195 : vector<8x8xf32> to vector<1x1x8x8xf32>
    tpu.vector_store %arg4[%c0_166, %c2_167, %c0_168, %c0_169], %198 {strides = array<i32>} : memref<1x8x8x8xf32, #tpu.memory_space<vmem>>, vector<1x1x8x8xf32>,
    %c0_170 = arith.constant 0 : index
    %c0_171 = arith.constant 0 : index
    %c3_172 = arith.constant 3 : index
    %c0_173 = arith.constant 0 : index
    %c0_174 = arith.constant 0 : index
    %199 = vector.load %arg1[%c0_170, %c0_171, %c3_172, %c0_173, %c0_174] : memref<1x4x9x9x1xf32, #tpu.memory_space<vmem>>, vector<1x1x1x8x1xf32>
    %200 = vector.shape_cast %199 : vector<1x1x1x8x1xf32> to vector<8x1xf32>
    %201 = vector.broadcast %200 : vector<8x1xf32> to vector<8x8xf32>
    %202 = vector.broadcast %5 : vector<1x8xf32> to vector<8x8xf32>
    %203 = arith.mulf %201, %202 : vector<8x8xf32>
    %204 = arith.addf %3, %203 : vector<8x8xf32>
    %c0_175 = arith.constant 0 : index
    %c1_176 = arith.constant 1 : index
    %c3_177 = arith.constant 3 : index
    %c0_178 = arith.constant 0 : index
    %c0_179 = arith.constant 0 : index
    %205 = vector.load %arg1[%c0_175, %c1_176, %c3_177, %c0_178, %c0_179] : memref<1x4x9x9x1xf32, #tpu.memory_space<vmem>>, vector<1x1x1x8x1xf32>
    %206 = vector.shape_cast %205 : vector<1x1x1x8x1xf32> to vector<8x1xf32>
    %207 = vector.broadcast %206 : vector<8x1xf32> to vector<8x8xf32>
    %208 = vector.broadcast %7 : vector<1x8xf32> to vector<8x8xf32>
    %209 = arith.mulf %207, %208 : vector<8x8xf32>
    %210 = arith.addf %204, %209 : vector<8x8xf32>
    %c0_180 = arith.constant 0 : index
    %c0_181 = arith.constant 0 : index
    %c3_182 = arith.constant 3 : index
    %c1_183 = arith.constant 1 : index
    %c0_184 = arith.constant 0 : index
    %211 = vector.load %arg1[%c0_180, %c0_181, %c3_182, %c1_183, %c0_184] : memref<1x4x9x9x1xf32, #tpu.memory_space<vmem>>, vector<1x1x1x8x1xf32>
    %212 = vector.shape_cast %211 : vector<1x1x1x8x1xf32> to vector<8x1xf32>
    %213 = vector.broadcast %212 : vector<8x1xf32> to vector<8x8xf32>
    %214 = vector.broadcast %9 : vector<1x8xf32> to vector<8x8xf32>
    %215 = arith.mulf %213, %214 : vector<8x8xf32>
    %216 = arith.addf %210, %215 : vector<8x8xf32>
    %c0_185 = arith.constant 0 : index
    %c2_186 = arith.constant 2 : index
    %c3_187 = arith.constant 3 : index
    %c0_188 = arith.constant 0 : index
    %c0_189 = arith.constant 0 : index
    %217 = vector.load %arg1[%c0_185, %c2_186, %c3_187, %c0_188, %c0_189] : memref<1x4x9x9x1xf32, #tpu.memory_space<vmem>>, vector<1x1x1x8x1xf32>
    %218 = vector.shape_cast %217 : vector<1x1x1x8x1xf32> to vector<8x1xf32>
    %219 = vector.broadcast %218 : vector<8x1xf32> to vector<8x8xf32>
    %220 = vector.broadcast %11 : vector<1x8xf32> to vector<8x8xf32>
    %221 = arith.mulf %219, %220 : vector<8x8xf32>
    %222 = arith.addf %216, %221 : vector<8x8xf32>
    %c0_190 = arith.constant 0 : index
    %c3_191 = arith.constant 3 : index
    %c3_192 = arith.constant 3 : index
    %c0_193 = arith.constant 0 : index
    %c0_194 = arith.constant 0 : index
    %223 = vector.load %arg1[%c0_190, %c3_191, %c3_192, %c0_193, %c0_194] : memref<1x4x9x9x1xf32, #tpu.memory_space<vmem>>, vector<1x1x1x8x1xf32>
    %224 = vector.shape_cast %223 : vector<1x1x1x8x1xf32> to vector<8x1xf32>
    %225 = vector.broadcast %224 : vector<8x1xf32> to vector<8x8xf32>
    %226 = vector.broadcast %13 : vector<1x8xf32> to vector<8x8xf32>
    %227 = arith.mulf %225, %226 : vector<8x8xf32>
    %228 = arith.addf %222, %227 : vector<8x8xf32>
    %c0_195 = arith.constant 0 : index
    %c2_196 = arith.constant 2 : index
    %c3_197 = arith.constant 3 : index
    %c1_198 = arith.constant 1 : index
    %c0_199 = arith.constant 0 : index
    %229 = vector.load %arg1[%c0_195, %c2_196, %c3_197, %c1_198, %c0_199] : memref<1x4x9x9x1xf32, #tpu.memory_space<vmem>>, vector<1x1x1x8x1xf32>
    %230 = vector.shape_cast %229 : vector<1x1x1x8x1xf32> to vector<8x1xf32>
    %231 = vector.broadcast %230 : vector<8x1xf32> to vector<8x8xf32>
    %232 = vector.broadcast %15 : vector<1x8xf32> to vector<8x8xf32>
    %233 = arith.mulf %231, %232 : vector<8x8xf32>
    %234 = arith.addf %228, %233 : vector<8x8xf32>
    %c0_200 = arith.constant 0 : index
    %c0_201 = arith.constant 0 : index
    %c4_202 = arith.constant 4 : index
    %c0_203 = arith.constant 0 : index
    %c0_204 = arith.constant 0 : index
    %235 = vector.load %arg1[%c0_200, %c0_201, %c4_202, %c0_203, %c0_204] : memref<1x4x9x9x1xf32, #tpu.memory_space<vmem>>, vector<1x1x1x8x1xf32>
    %236 = vector.shape_cast %235 : vector<1x1x1x8x1xf32> to vector<8x1xf32>
    %237 = vector.broadcast %236 : vector<8x1xf32> to vector<8x8xf32>
    %238 = vector.broadcast %17 : vector<1x8xf32> to vector<8x8xf32>
    %239 = arith.mulf %237, %238 : vector<8x8xf32>
    %240 = arith.addf %234, %239 : vector<8x8xf32>
    %c0_205 = arith.constant 0 : index
    %c1_206 = arith.constant 1 : index
    %c4_207 = arith.constant 4 : index
    %c0_208 = arith.constant 0 : index
    %c0_209 = arith.constant 0 : index
    %241 = vector.load %arg1[%c0_205, %c1_206, %c4_207, %c0_208, %c0_209] : memref<1x4x9x9x1xf32, #tpu.memory_space<vmem>>, vector<1x1x1x8x1xf32>
    %242 = vector.shape_cast %241 : vector<1x1x1x8x1xf32> to vector<8x1xf32>
    %243 = vector.broadcast %242 : vector<8x1xf32> to vector<8x8xf32>
    %244 = vector.broadcast %19 : vector<1x8xf32> to vector<8x8xf32>
    %245 = arith.mulf %243, %244 : vector<8x8xf32>
    %246 = arith.addf %240, %245 : vector<8x8xf32>
    %c0_210 = arith.constant 0 : index
    %c0_211 = arith.constant 0 : index
    %c4_212 = arith.constant 4 : index
    %c1_213 = arith.constant 1 : index
    %c0_214 = arith.constant 0 : index
    %247 = vector.load %arg1[%c0_210, %c0_211, %c4_212, %c1_213, %c0_214] : memref<1x4x9x9x1xf32, #tpu.memory_space<vmem>>, vector<1x1x1x8x1xf32>
    %248 = vector.shape_cast %247 : vector<1x1x1x8x1xf32> to vector<8x1xf32>
    %249 = vector.broadcast %248 : vector<8x1xf32> to vector<8x8xf32>
    %250 = vector.broadcast %21 : vector<1x8xf32> to vector<8x8xf32>
    %251 = arith.mulf %249, %250 : vector<8x8xf32>
    %252 = arith.addf %246, %251 : vector<8x8xf32>
    %cst_215 = arith.constant 0.000000e+00 : f32
    %253 = vector.broadcast %cst_215 : f32 to vector<8x8xf32>
    %254 = arith.maximumf %252, %253 : vector<8x8xf32>
    %c0_216 = arith.constant 0 : index
    %c3_217 = arith.constant 3 : index
    %c0_218 = arith.constant 0 : index
    %c0_219 = arith.constant 0 : index
    %255 = vector.load %arg4[%c0_216, %c3_217, %c0_218, %c0_219] : memref<1x8x8x8xf32, #tpu.memory_space<vmem>>, vector<1x1x8x8xf32>
    %256 = vector.shape_cast %255 : vector<1x1x8x8xf32> to vector<8x8xf32>
    %257 = vector.shape_cast %254 : vector<8x8xf32> to vector<1x1x8x8xf32>
    tpu.vector_store %arg4[%c0_216, %c3_217, %c0_218, %c0_219], %257 {strides = array<i32>} : memref<1x8x8x8xf32, #tpu.memory_space<vmem>>, vector<1x1x8x8xf32>,
    %c0_220 = arith.constant 0 : index
    %c0_221 = arith.constant 0 : index
    %c4_222 = arith.constant 4 : index
    %c0_223 = arith.constant 0 : index
    %c0_224 = arith.constant 0 : index
    %258 = vector.load %arg1[%c0_220, %c0_221, %c4_222, %c0_223, %c0_224] : memref<1x4x9x9x1xf32, #tpu.memory_space<vmem>>, vector<1x1x1x8x1xf32>
    %259 = vector.shape_cast %258 : vector<1x1x1x8x1xf32> to vector<8x1xf32>
    %260 = vector.broadcast %259 : vector<8x1xf32> to vector<8x8xf32>
    %261 = vector.broadcast %5 : vector<1x8xf32> to vector<8x8xf32>
    %262 = arith.mulf %260, %261 : vector<8x8xf32>
    %263 = arith.addf %3, %262 : vector<8x8xf32>
    %c0_225 = arith.constant 0 : index
    %c1_226 = arith.constant 1 : index
    %c4_227 = arith.constant 4 : index
    %c0_228 = arith.constant 0 : index
    %c0_229 = arith.constant 0 : index
    %264 = vector.load %arg1[%c0_225, %c1_226, %c4_227, %c0_228, %c0_229] : memref<1x4x9x9x1xf32, #tpu.memory_space<vmem>>, vector<1x1x1x8x1xf32>
    %265 = vector.shape_cast %264 : vector<1x1x1x8x1xf32> to vector<8x1xf32>
    %266 = vector.broadcast %265 : vector<8x1xf32> to vector<8x8xf32>
    %267 = vector.broadcast %7 : vector<1x8xf32> to vector<8x8xf32>
    %268 = arith.mulf %266, %267 : vector<8x8xf32>
    %269 = arith.addf %263, %268 : vector<8x8xf32>
    %c0_230 = arith.constant 0 : index
    %c0_231 = arith.constant 0 : index
    %c4_232 = arith.constant 4 : index
    %c1_233 = arith.constant 1 : index
    %c0_234 = arith.constant 0 : index
    %270 = vector.load %arg1[%c0_230, %c0_231, %c4_232, %c1_233, %c0_234] : memref<1x4x9x9x1xf32, #tpu.memory_space<vmem>>, vector<1x1x1x8x1xf32>
    %271 = vector.shape_cast %270 : vector<1x1x1x8x1xf32> to vector<8x1xf32>
    %272 = vector.broadcast %271 : vector<8x1xf32> to vector<8x8xf32>
    %273 = vector.broadcast %9 : vector<1x8xf32> to vector<8x8xf32>
    %274 = arith.mulf %272, %273 : vector<8x8xf32>
    %275 = arith.addf %269, %274 : vector<8x8xf32>
    %c0_235 = arith.constant 0 : index
    %c2_236 = arith.constant 2 : index
    %c4_237 = arith.constant 4 : index
    %c0_238 = arith.constant 0 : index
    %c0_239 = arith.constant 0 : index
    %276 = vector.load %arg1[%c0_235, %c2_236, %c4_237, %c0_238, %c0_239] : memref<1x4x9x9x1xf32, #tpu.memory_space<vmem>>, vector<1x1x1x8x1xf32>
    %277 = vector.shape_cast %276 : vector<1x1x1x8x1xf32> to vector<8x1xf32>
    %278 = vector.broadcast %277 : vector<8x1xf32> to vector<8x8xf32>
    %279 = vector.broadcast %11 : vector<1x8xf32> to vector<8x8xf32>
    %280 = arith.mulf %278, %279 : vector<8x8xf32>
    %281 = arith.addf %275, %280 : vector<8x8xf32>
    %c0_240 = arith.constant 0 : index
    %c3_241 = arith.constant 3 : index
    %c4_242 = arith.constant 4 : index
    %c0_243 = arith.constant 0 : index
    %c0_244 = arith.constant 0 : index
    %282 = vector.load %arg1[%c0_240, %c3_241, %c4_242, %c0_243, %c0_244] : memref<1x4x9x9x1xf32, #tpu.memory_space<vmem>>, vector<1x1x1x8x1xf32>
    %283 = vector.shape_cast %282 : vector<1x1x1x8x1xf32> to vector<8x1xf32>
    %284 = vector.broadcast %283 : vector<8x1xf32> to vector<8x8xf32>
    %285 = vector.broadcast %13 : vector<1x8xf32> to vector<8x8xf32>
    %286 = arith.mulf %284, %285 : vector<8x8xf32>
    %287 = arith.addf %281, %286 : vector<8x8xf32>
    %c0_245 = arith.constant 0 : index
    %c2_246 = arith.constant 2 : index
    %c4_247 = arith.constant 4 : index
    %c1_248 = arith.constant 1 : index
    %c0_249 = arith.constant 0 : index
    %288 = vector.load %arg1[%c0_245, %c2_246, %c4_247, %c1_248, %c0_249] : memref<1x4x9x9x1xf32, #tpu.memory_space<vmem>>, vector<1x1x1x8x1xf32>
    %289 = vector.shape_cast %288 : vector<1x1x1x8x1xf32> to vector<8x1xf32>
    %290 = vector.broadcast %289 : vector<8x1xf32> to vector<8x8xf32>
    %291 = vector.broadcast %15 : vector<1x8xf32> to vector<8x8xf32>
    %292 = arith.mulf %290, %291 : vector<8x8xf32>
    %293 = arith.addf %287, %292 : vector<8x8xf32>
    %c0_250 = arith.constant 0 : index
    %c0_251 = arith.constant 0 : index
    %c5_252 = arith.constant 5 : index
    %c0_253 = arith.constant 0 : index
    %c0_254 = arith.constant 0 : index
    %294 = vector.load %arg1[%c0_250, %c0_251, %c5_252, %c0_253, %c0_254] : memref<1x4x9x9x1xf32, #tpu.memory_space<vmem>>, vector<1x1x1x8x1xf32>
    %295 = vector.shape_cast %294 : vector<1x1x1x8x1xf32> to vector<8x1xf32>
    %296 = vector.broadcast %295 : vector<8x1xf32> to vector<8x8xf32>
    %297 = vector.broadcast %17 : vector<1x8xf32> to vector<8x8xf32>
    %298 = arith.mulf %296, %297 : vector<8x8xf32>
    %299 = arith.addf %293, %298 : vector<8x8xf32>
    %c0_255 = arith.constant 0 : index
    %c1_256 = arith.constant 1 : index
    %c5_257 = arith.constant 5 : index
    %c0_258 = arith.constant 0 : index
    %c0_259 = arith.constant 0 : index
    %300 = vector.load %arg1[%c0_255, %c1_256, %c5_257, %c0_258, %c0_259] : memref<1x4x9x9x1xf32, #tpu.memory_space<vmem>>, vector<1x1x1x8x1xf32>
    %301 = vector.shape_cast %300 : vector<1x1x1x8x1xf32> to vector<8x1xf32>
    %302 = vector.broadcast %301 : vector<8x1xf32> to vector<8x8xf32>
    %303 = vector.broadcast %19 : vector<1x8xf32> to vector<8x8xf32>
    %304 = arith.mulf %302, %303 : vector<8x8xf32>
    %305 = arith.addf %299, %304 : vector<8x8xf32>
    %c0_260 = arith.constant 0 : index
    %c0_261 = arith.constant 0 : index
    %c5_262 = arith.constant 5 : index
    %c1_263 = arith.constant 1 : index
    %c0_264 = arith.constant 0 : index
    %306 = vector.load %arg1[%c0_260, %c0_261, %c5_262, %c1_263, %c0_264] : memref<1x4x9x9x1xf32, #tpu.memory_space<vmem>>, vector<1x1x1x8x1xf32>
    %307 = vector.shape_cast %306 : vector<1x1x1x8x1xf32> to vector<8x1xf32>
    %308 = vector.broadcast %307 : vector<8x1xf32> to vector<8x8xf32>
    %309 = vector.broadcast %21 : vector<1x8xf32> to vector<8x8xf32>
    %310 = arith.mulf %308, %309 : vector<8x8xf32>
    %311 = arith.addf %305, %310 : vector<8x8xf32>
    %cst_265 = arith.constant 0.000000e+00 : f32
    %312 = vector.broadcast %cst_265 : f32 to vector<8x8xf32>
    %313 = arith.maximumf %311, %312 : vector<8x8xf32>
    %c0_266 = arith.constant 0 : index
    %c4_267 = arith.constant 4 : index
    %c0_268 = arith.constant 0 : index
    %c0_269 = arith.constant 0 : index
    %314 = vector.load %arg4[%c0_266, %c4_267, %c0_268, %c0_269] : memref<1x8x8x8xf32, #tpu.memory_space<vmem>>, vector<1x1x8x8xf32>
    %315 = vector.shape_cast %314 : vector<1x1x8x8xf32> to vector<8x8xf32>
    %316 = vector.shape_cast %313 : vector<8x8xf32> to vector<1x1x8x8xf32>
    tpu.vector_store %arg4[%c0_266, %c4_267, %c0_268, %c0_269], %316 {strides = array<i32>} : memref<1x8x8x8xf32, #tpu.memory_space<vmem>>, vector<1x1x8x8xf32>,
    %c0_270 = arith.constant 0 : index
    %c0_271 = arith.constant 0 : index
    %c5_272 = arith.constant 5 : index
    %c0_273 = arith.constant 0 : index
    %c0_274 = arith.constant 0 : index
    %317 = vector.load %arg1[%c0_270, %c0_271, %c5_272, %c0_273, %c0_274] : memref<1x4x9x9x1xf32, #tpu.memory_space<vmem>>, vector<1x1x1x8x1xf32>
    %318 = vector.shape_cast %317 : vector<1x1x1x8x1xf32> to vector<8x1xf32>
    %319 = vector.broadcast %318 : vector<8x1xf32> to vector<8x8xf32>
    %320 = vector.broadcast %5 : vector<1x8xf32> to vector<8x8xf32>
    %321 = arith.mulf %319, %320 : vector<8x8xf32>
    %322 = arith.addf %3, %321 : vector<8x8xf32>
    %c0_275 = arith.constant 0 : index
    %c1_276 = arith.constant 1 : index
    %c5_277 = arith.constant 5 : index
    %c0_278 = arith.constant 0 : index
    %c0_279 = arith.constant 0 : index
    %323 = vector.load %arg1[%c0_275, %c1_276, %c5_277, %c0_278, %c0_279] : memref<1x4x9x9x1xf32, #tpu.memory_space<vmem>>, vector<1x1x1x8x1xf32>
    %324 = vector.shape_cast %323 : vector<1x1x1x8x1xf32> to vector<8x1xf32>
    %325 = vector.broadcast %324 : vector<8x1xf32> to vector<8x8xf32>
    %326 = vector.broadcast %7 : vector<1x8xf32> to vector<8x8xf32>
    %327 = arith.mulf %325, %326 : vector<8x8xf32>
    %328 = arith.addf %322, %327 : vector<8x8xf32>
    %c0_280 = arith.constant 0 : index
    %c0_281 = arith.constant 0 : index
    %c5_282 = arith.constant 5 : index
    %c1_283 = arith.constant 1 : index
    %c0_284 = arith.constant 0 : index
    %329 = vector.load %arg1[%c0_280, %c0_281, %c5_282, %c1_283, %c0_284] : memref<1x4x9x9x1xf32, #tpu.memory_space<vmem>>, vector<1x1x1x8x1xf32>
    %330 = vector.shape_cast %329 : vector<1x1x1x8x1xf32> to vector<8x1xf32>
    %331 = vector.broadcast %330 : vector<8x1xf32> to vector<8x8xf32>
    %332 = vector.broadcast %9 : vector<1x8xf32> to vector<8x8xf32>
    %333 = arith.mulf %331, %332 : vector<8x8xf32>
    %334 = arith.addf %328, %333 : vector<8x8xf32>
    %c0_285 = arith.constant 0 : index
    %c2_286 = arith.constant 2 : index
    %c5_287 = arith.constant 5 : index
    %c0_288 = arith.constant 0 : index
    %c0_289 = arith.constant 0 : index
    %335 = vector.load %arg1[%c0_285, %c2_286, %c5_287, %c0_288, %c0_289] : memref<1x4x9x9x1xf32, #tpu.memory_space<vmem>>, vector<1x1x1x8x1xf32>
    %336 = vector.shape_cast %335 : vector<1x1x1x8x1xf32> to vector<8x1xf32>
    %337 = vector.broadcast %336 : vector<8x1xf32> to vector<8x8xf32>
    %338 = vector.broadcast %11 : vector<1x8xf32> to vector<8x8xf32>
    %339 = arith.mulf %337, %338 : vector<8x8xf32>
    %340 = arith.addf %334, %339 : vector<8x8xf32>
    %c0_290 = arith.constant 0 : index
    %c3_291 = arith.constant 3 : index
    %c5_292 = arith.constant 5 : index
    %c0_293 = arith.constant 0 : index
    %c0_294 = arith.constant 0 : index
    %341 = vector.load %arg1[%c0_290, %c3_291, %c5_292, %c0_293, %c0_294] : memref<1x4x9x9x1xf32, #tpu.memory_space<vmem>>, vector<1x1x1x8x1xf32>
    %342 = vector.shape_cast %341 : vector<1x1x1x8x1xf32> to vector<8x1xf32>
    %343 = vector.broadcast %342 : vector<8x1xf32> to vector<8x8xf32>
    %344 = vector.broadcast %13 : vector<1x8xf32> to vector<8x8xf32>
    %345 = arith.mulf %343, %344 : vector<8x8xf32>
    %346 = arith.addf %340, %345 : vector<8x8xf32>
    %c0_295 = arith.constant 0 : index
    %c2_296 = arith.constant 2 : index
    %c5_297 = arith.constant 5 : index
    %c1_298 = arith.constant 1 : index
    %c0_299 = arith.constant 0 : index
    %347 = vector.load %arg1[%c0_295, %c2_296, %c5_297, %c1_298, %c0_299] : memref<1x4x9x9x1xf32, #tpu.memory_space<vmem>>, vector<1x1x1x8x1xf32>
    %348 = vector.shape_cast %347 : vector<1x1x1x8x1xf32> to vector<8x1xf32>
    %349 = vector.broadcast %348 : vector<8x1xf32> to vector<8x8xf32>
    %350 = vector.broadcast %15 : vector<1x8xf32> to vector<8x8xf32>
    %351 = arith.mulf %349, %350 : vector<8x8xf32>
    %352 = arith.addf %346, %351 : vector<8x8xf32>
    %c0_300 = arith.constant 0 : index
    %c0_301 = arith.constant 0 : index
    %c6_302 = arith.constant 6 : index
    %c0_303 = arith.constant 0 : index
    %c0_304 = arith.constant 0 : index
    %353 = vector.load %arg1[%c0_300, %c0_301, %c6_302, %c0_303, %c0_304] : memref<1x4x9x9x1xf32, #tpu.memory_space<vmem>>, vector<1x1x1x8x1xf32>
    %354 = vector.shape_cast %353 : vector<1x1x1x8x1xf32> to vector<8x1xf32>
    %355 = vector.broadcast %354 : vector<8x1xf32> to vector<8x8xf32>
    %356 = vector.broadcast %17 : vector<1x8xf32> to vector<8x8xf32>
    %357 = arith.mulf %355, %356 : vector<8x8xf32>
    %358 = arith.addf %352, %357 : vector<8x8xf32>
    %c0_305 = arith.constant 0 : index
    %c1_306 = arith.constant 1 : index
    %c6_307 = arith.constant 6 : index
    %c0_308 = arith.constant 0 : index
    %c0_309 = arith.constant 0 : index
    %359 = vector.load %arg1[%c0_305, %c1_306, %c6_307, %c0_308, %c0_309] : memref<1x4x9x9x1xf32, #tpu.memory_space<vmem>>, vector<1x1x1x8x1xf32>
    %360 = vector.shape_cast %359 : vector<1x1x1x8x1xf32> to vector<8x1xf32>
    %361 = vector.broadcast %360 : vector<8x1xf32> to vector<8x8xf32>
    %362 = vector.broadcast %19 : vector<1x8xf32> to vector<8x8xf32>
    %363 = arith.mulf %361, %362 : vector<8x8xf32>
    %364 = arith.addf %358, %363 : vector<8x8xf32>
    %c0_310 = arith.constant 0 : index
    %c0_311 = arith.constant 0 : index
    %c6_312 = arith.constant 6 : index
    %c1_313 = arith.constant 1 : index
    %c0_314 = arith.constant 0 : index
    %365 = vector.load %arg1[%c0_310, %c0_311, %c6_312, %c1_313, %c0_314] : memref<1x4x9x9x1xf32, #tpu.memory_space<vmem>>, vector<1x1x1x8x1xf32>
    %366 = vector.shape_cast %365 : vector<1x1x1x8x1xf32> to vector<8x1xf32>
    %367 = vector.broadcast %366 : vector<8x1xf32> to vector<8x8xf32>
    %368 = vector.broadcast %21 : vector<1x8xf32> to vector<8x8xf32>
    %369 = arith.mulf %367, %368 : vector<8x8xf32>
    %370 = arith.addf %364, %369 : vector<8x8xf32>
    %cst_315 = arith.constant 0.000000e+00 : f32
    %371 = vector.broadcast %cst_315 : f32 to vector<8x8xf32>
    %372 = arith.maximumf %370, %371 : vector<8x8xf32>
    %c0_316 = arith.constant 0 : index
    %c5_317 = arith.constant 5 : index
    %c0_318 = arith.constant 0 : index
    %c0_319 = arith.constant 0 : index
    %373 = vector.load %arg4[%c0_316, %c5_317, %c0_318, %c0_319] : memref<1x8x8x8xf32, #tpu.memory_space<vmem>>, vector<1x1x8x8xf32>
    %374 = vector.shape_cast %373 : vector<1x1x8x8xf32> to vector<8x8xf32>
    %375 = vector.shape_cast %372 : vector<8x8xf32> to vector<1x1x8x8xf32>
    tpu.vector_store %arg4[%c0_316, %c5_317, %c0_318, %c0_319], %375 {strides = array<i32>} : memref<1x8x8x8xf32, #tpu.memory_space<vmem>>, vector<1x1x8x8xf32>,
    %c0_320 = arith.constant 0 : index
    %c0_321 = arith.constant 0 : index
    %c6_322 = arith.constant 6 : index
    %c0_323 = arith.constant 0 : index
    %c0_324 = arith.constant 0 : index
    %376 = vector.load %arg1[%c0_320, %c0_321, %c6_322, %c0_323, %c0_324] : memref<1x4x9x9x1xf32, #tpu.memory_space<vmem>>, vector<1x1x1x8x1xf32>
    %377 = vector.shape_cast %376 : vector<1x1x1x8x1xf32> to vector<8x1xf32>
    %378 = vector.broadcast %377 : vector<8x1xf32> to vector<8x8xf32>
    %379 = vector.broadcast %5 : vector<1x8xf32> to vector<8x8xf32>
    %380 = arith.mulf %378, %379 : vector<8x8xf32>
    %381 = arith.addf %3, %380 : vector<8x8xf32>
    %c0_325 = arith.constant 0 : index
    %c1_326 = arith.constant 1 : index
    %c6_327 = arith.constant 6 : index
    %c0_328 = arith.constant 0 : index
    %c0_329 = arith.constant 0 : index
    %382 = vector.load %arg1[%c0_325, %c1_326, %c6_327, %c0_328, %c0_329] : memref<1x4x9x9x1xf32, #tpu.memory_space<vmem>>, vector<1x1x1x8x1xf32>
    %383 = vector.shape_cast %382 : vector<1x1x1x8x1xf32> to vector<8x1xf32>
    %384 = vector.broadcast %383 : vector<8x1xf32> to vector<8x8xf32>
    %385 = vector.broadcast %7 : vector<1x8xf32> to vector<8x8xf32>
    %386 = arith.mulf %384, %385 : vector<8x8xf32>
    %387 = arith.addf %381, %386 : vector<8x8xf32>
    %c0_330 = arith.constant 0 : index
    %c0_331 = arith.constant 0 : index
    %c6_332 = arith.constant 6 : index
    %c1_333 = arith.constant 1 : index
    %c0_334 = arith.constant 0 : index
    %388 = vector.load %arg1[%c0_330, %c0_331, %c6_332, %c1_333, %c0_334] : memref<1x4x9x9x1xf32, #tpu.memory_space<vmem>>, vector<1x1x1x8x1xf32>
    %389 = vector.shape_cast %388 : vector<1x1x1x8x1xf32> to vector<8x1xf32>
    %390 = vector.broadcast %389 : vector<8x1xf32> to vector<8x8xf32>
    %391 = vector.broadcast %9 : vector<1x8xf32> to vector<8x8xf32>
    %392 = arith.mulf %390, %391 : vector<8x8xf32>
    %393 = arith.addf %387, %392 : vector<8x8xf32>
    %c0_335 = arith.constant 0 : index
    %c2_336 = arith.constant 2 : index
    %c6_337 = arith.constant 6 : index
    %c0_338 = arith.constant 0 : index
    %c0_339 = arith.constant 0 : index
    %394 = vector.load %arg1[%c0_335, %c2_336, %c6_337, %c0_338, %c0_339] : memref<1x4x9x9x1xf32, #tpu.memory_space<vmem>>, vector<1x1x1x8x1xf32>
    %395 = vector.shape_cast %394 : vector<1x1x1x8x1xf32> to vector<8x1xf32>
    %396 = vector.broadcast %395 : vector<8x1xf32> to vector<8x8xf32>
    %397 = vector.broadcast %11 : vector<1x8xf32> to vector<8x8xf32>
    %398 = arith.mulf %396, %397 : vector<8x8xf32>
    %399 = arith.addf %393, %398 : vector<8x8xf32>
    %c0_340 = arith.constant 0 : index
    %c3_341 = arith.constant 3 : index
    %c6_342 = arith.constant 6 : index
    %c0_343 = arith.constant 0 : index
    %c0_344 = arith.constant 0 : index
    %400 = vector.load %arg1[%c0_340, %c3_341, %c6_342, %c0_343, %c0_344] : memref<1x4x9x9x1xf32, #tpu.memory_space<vmem>>, vector<1x1x1x8x1xf32>
    %401 = vector.shape_cast %400 : vector<1x1x1x8x1xf32> to vector<8x1xf32>
    %402 = vector.broadcast %401 : vector<8x1xf32> to vector<8x8xf32>
    %403 = vector.broadcast %13 : vector<1x8xf32> to vector<8x8xf32>
    %404 = arith.mulf %402, %403 : vector<8x8xf32>
    %405 = arith.addf %399, %404 : vector<8x8xf32>
    %c0_345 = arith.constant 0 : index
    %c2_346 = arith.constant 2 : index
    %c6_347 = arith.constant 6 : index
    %c1_348 = arith.constant 1 : index
    %c0_349 = arith.constant 0 : index
    %406 = vector.load %arg1[%c0_345, %c2_346, %c6_347, %c1_348, %c0_349] : memref<1x4x9x9x1xf32, #tpu.memory_space<vmem>>, vector<1x1x1x8x1xf32>
    %407 = vector.shape_cast %406 : vector<1x1x1x8x1xf32> to vector<8x1xf32>
    %408 = vector.broadcast %407 : vector<8x1xf32> to vector<8x8xf32>
    %409 = vector.broadcast %15 : vector<1x8xf32> to vector<8x8xf32>
    %410 = arith.mulf %408, %409 : vector<8x8xf32>
    %411 = arith.addf %405, %410 : vector<8x8xf32>
    %c0_350 = arith.constant 0 : index
    %c0_351 = arith.constant 0 : index
    %c7_352 = arith.constant 7 : index
    %c0_353 = arith.constant 0 : index
    %c0_354 = arith.constant 0 : index
    %412 = vector.load %arg1[%c0_350, %c0_351, %c7_352, %c0_353, %c0_354] : memref<1x4x9x9x1xf32, #tpu.memory_space<vmem>>, vector<1x1x1x8x1xf32>
    %413 = vector.shape_cast %412 : vector<1x1x1x8x1xf32> to vector<8x1xf32>
    %414 = vector.broadcast %413 : vector<8x1xf32> to vector<8x8xf32>
    %415 = vector.broadcast %17 : vector<1x8xf32> to vector<8x8xf32>
    %416 = arith.mulf %414, %415 : vector<8x8xf32>
    %417 = arith.addf %411, %416 : vector<8x8xf32>
    %c0_355 = arith.constant 0 : index
    %c1_356 = arith.constant 1 : index
    %c7_357 = arith.constant 7 : index
    %c0_358 = arith.constant 0 : index
    %c0_359 = arith.constant 0 : index
    %418 = vector.load %arg1[%c0_355, %c1_356, %c7_357, %c0_358, %c0_359] : memref<1x4x9x9x1xf32, #tpu.memory_space<vmem>>, vector<1x1x1x8x1xf32>
    %419 = vector.shape_cast %418 : vector<1x1x1x8x1xf32> to vector<8x1xf32>
    %420 = vector.broadcast %419 : vector<8x1xf32> to vector<8x8xf32>
    %421 = vector.broadcast %19 : vector<1x8xf32> to vector<8x8xf32>
    %422 = arith.mulf %420, %421 : vector<8x8xf32>
    %423 = arith.addf %417, %422 : vector<8x8xf32>
    %c0_360 = arith.constant 0 : index
    %c0_361 = arith.constant 0 : index
    %c7_362 = arith.constant 7 : index
    %c1_363 = arith.constant 1 : index
    %c0_364 = arith.constant 0 : index
    %424 = vector.load %arg1[%c0_360, %c0_361, %c7_362, %c1_363, %c0_364] : memref<1x4x9x9x1xf32, #tpu.memory_space<vmem>>, vector<1x1x1x8x1xf32>
    %425 = vector.shape_cast %424 : vector<1x1x1x8x1xf32> to vector<8x1xf32>
    %426 = vector.broadcast %425 : vector<8x1xf32> to vector<8x8xf32>
    %427 = vector.broadcast %21 : vector<1x8xf32> to vector<8x8xf32>
    %428 = arith.mulf %426, %427 : vector<8x8xf32>
    %429 = arith.addf %423, %428 : vector<8x8xf32>
    %cst_365 = arith.constant 0.000000e+00 : f32
    %430 = vector.broadcast %cst_365 : f32 to vector<8x8xf32>
    %431 = arith.maximumf %429, %430 : vector<8x8xf32>
    %c0_366 = arith.constant 0 : index
    %c6_367 = arith.constant 6 : index
    %c0_368 = arith.constant 0 : index
    %c0_369 = arith.constant 0 : index
    %432 = vector.load %arg4[%c0_366, %c6_367, %c0_368, %c0_369] : memref<1x8x8x8xf32, #tpu.memory_space<vmem>>, vector<1x1x8x8xf32>
    %433 = vector.shape_cast %432 : vector<1x1x8x8xf32> to vector<8x8xf32>
    %434 = vector.shape_cast %431 : vector<8x8xf32> to vector<1x1x8x8xf32>
    tpu.vector_store %arg4[%c0_366, %c6_367, %c0_368, %c0_369], %434 {strides = array<i32>} : memref<1x8x8x8xf32, #tpu.memory_space<vmem>>, vector<1x1x8x8xf32>,
    %c0_370 = arith.constant 0 : index
    %c0_371 = arith.constant 0 : index
    %c7_372 = arith.constant 7 : index
    %c0_373 = arith.constant 0 : index
    %c0_374 = arith.constant 0 : index
    %435 = vector.load %arg1[%c0_370, %c0_371, %c7_372, %c0_373, %c0_374] : memref<1x4x9x9x1xf32, #tpu.memory_space<vmem>>, vector<1x1x1x8x1xf32>
    %436 = vector.shape_cast %435 : vector<1x1x1x8x1xf32> to vector<8x1xf32>
    %437 = vector.broadcast %436 : vector<8x1xf32> to vector<8x8xf32>
    %438 = vector.broadcast %5 : vector<1x8xf32> to vector<8x8xf32>
    %439 = arith.mulf %437, %438 : vector<8x8xf32>
    %440 = arith.addf %3, %439 : vector<8x8xf32>
    %c0_375 = arith.constant 0 : index
    %c1_376 = arith.constant 1 : index
    %c7_377 = arith.constant 7 : index
    %c0_378 = arith.constant 0 : index
    %c0_379 = arith.constant 0 : index
    %441 = vector.load %arg1[%c0_375, %c1_376, %c7_377, %c0_378, %c0_379] : memref<1x4x9x9x1xf32, #tpu.memory_space<vmem>>, vector<1x1x1x8x1xf32>
    %442 = vector.shape_cast %441 : vector<1x1x1x8x1xf32> to vector<8x1xf32>
    %443 = vector.broadcast %442 : vector<8x1xf32> to vector<8x8xf32>
    %444 = vector.broadcast %7 : vector<1x8xf32> to vector<8x8xf32>
    %445 = arith.mulf %443, %444 : vector<8x8xf32>
    %446 = arith.addf %440, %445 : vector<8x8xf32>
    %c0_380 = arith.constant 0 : index
    %c0_381 = arith.constant 0 : index
    %c7_382 = arith.constant 7 : index
    %c1_383 = arith.constant 1 : index
    %c0_384 = arith.constant 0 : index
    %447 = vector.load %arg1[%c0_380, %c0_381, %c7_382, %c1_383, %c0_384] : memref<1x4x9x9x1xf32, #tpu.memory_space<vmem>>, vector<1x1x1x8x1xf32>
    %448 = vector.shape_cast %447 : vector<1x1x1x8x1xf32> to vector<8x1xf32>
    %449 = vector.broadcast %448 : vector<8x1xf32> to vector<8x8xf32>
    %450 = vector.broadcast %9 : vector<1x8xf32> to vector<8x8xf32>
    %451 = arith.mulf %449, %450 : vector<8x8xf32>
    %452 = arith.addf %446, %451 : vector<8x8xf32>
    %c0_385 = arith.constant 0 : index
    %c2_386 = arith.constant 2 : index
    %c7_387 = arith.constant 7 : index
    %c0_388 = arith.constant 0 : index
    %c0_389 = arith.constant 0 : index
    %453 = vector.load %arg1[%c0_385, %c2_386, %c7_387, %c0_388, %c0_389] : memref<1x4x9x9x1xf32, #tpu.memory_space<vmem>>, vector<1x1x1x8x1xf32>
    %454 = vector.shape_cast %453 : vector<1x1x1x8x1xf32> to vector<8x1xf32>
    %455 = vector.broadcast %454 : vector<8x1xf32> to vector<8x8xf32>
    %456 = vector.broadcast %11 : vector<1x8xf32> to vector<8x8xf32>
    %457 = arith.mulf %455, %456 : vector<8x8xf32>
    %458 = arith.addf %452, %457 : vector<8x8xf32>
    %c0_390 = arith.constant 0 : index
    %c3_391 = arith.constant 3 : index
    %c7_392 = arith.constant 7 : index
    %c0_393 = arith.constant 0 : index
    %c0_394 = arith.constant 0 : index
    %459 = vector.load %arg1[%c0_390, %c3_391, %c7_392, %c0_393, %c0_394] : memref<1x4x9x9x1xf32, #tpu.memory_space<vmem>>, vector<1x1x1x8x1xf32>
    %460 = vector.shape_cast %459 : vector<1x1x1x8x1xf32> to vector<8x1xf32>
    %461 = vector.broadcast %460 : vector<8x1xf32> to vector<8x8xf32>
    %462 = vector.broadcast %13 : vector<1x8xf32> to vector<8x8xf32>
    %463 = arith.mulf %461, %462 : vector<8x8xf32>
    %464 = arith.addf %458, %463 : vector<8x8xf32>
    %c0_395 = arith.constant 0 : index
    %c2_396 = arith.constant 2 : index
    %c7_397 = arith.constant 7 : index
    %c1_398 = arith.constant 1 : index
    %c0_399 = arith.constant 0 : index
    %465 = vector.load %arg1[%c0_395, %c2_396, %c7_397, %c1_398, %c0_399] : memref<1x4x9x9x1xf32, #tpu.memory_space<vmem>>, vector<1x1x1x8x1xf32>
    %466 = vector.shape_cast %465 : vector<1x1x1x8x1xf32> to vector<8x1xf32>
    %467 = vector.broadcast %466 : vector<8x1xf32> to vector<8x8xf32>
    %468 = vector.broadcast %15 : vector<1x8xf32> to vector<8x8xf32>
    %469 = arith.mulf %467, %468 : vector<8x8xf32>
    %470 = arith.addf %464, %469 : vector<8x8xf32>
    %c0_400 = arith.constant 0 : index
    %c0_401 = arith.constant 0 : index
    %c8_402 = arith.constant 8 : index
    %c0_403 = arith.constant 0 : index
    %c0_404 = arith.constant 0 : index
    %471 = vector.load %arg1[%c0_400, %c0_401, %c8_402, %c0_403, %c0_404] : memref<1x4x9x9x1xf32, #tpu.memory_space<vmem>>, vector<1x1x1x8x1xf32>
    %472 = vector.shape_cast %471 : vector<1x1x1x8x1xf32> to vector<8x1xf32>
    %473 = vector.broadcast %472 : vector<8x1xf32> to vector<8x8xf32>
    %474 = vector.broadcast %17 : vector<1x8xf32> to vector<8x8xf32>
    %475 = arith.mulf %473, %474 : vector<8x8xf32>
    %476 = arith.addf %470, %475 : vector<8x8xf32>
    %c0_405 = arith.constant 0 : index
    %c1_406 = arith.constant 1 : index
    %c8_407 = arith.constant 8 : index
    %c0_408 = arith.constant 0 : index
    %c0_409 = arith.constant 0 : index
    %477 = vector.load %arg1[%c0_405, %c1_406, %c8_407, %c0_408, %c0_409] : memref<1x4x9x9x1xf32, #tpu.memory_space<vmem>>, vector<1x1x1x8x1xf32>
    %478 = vector.shape_cast %477 : vector<1x1x1x8x1xf32> to vector<8x1xf32>
    %479 = vector.broadcast %478 : vector<8x1xf32> to vector<8x8xf32>
    %480 = vector.broadcast %19 : vector<1x8xf32> to vector<8x8xf32>
    %481 = arith.mulf %479, %480 : vector<8x8xf32>
    %482 = arith.addf %476, %481 : vector<8x8xf32>
    %c0_410 = arith.constant 0 : index
    %c0_411 = arith.constant 0 : index
    %c8_412 = arith.constant 8 : index
    %c1_413 = arith.constant 1 : index
    %c0_414 = arith.constant 0 : index
    %483 = vector.load %arg1[%c0_410, %c0_411, %c8_412, %c1_413, %c0_414] : memref<1x4x9x9x1xf32, #tpu.memory_space<vmem>>, vector<1x1x1x8x1xf32>
    %484 = vector.shape_cast %483 : vector<1x1x1x8x1xf32> to vector<8x1xf32>
    %485 = vector.broadcast %484 : vector<8x1xf32> to vector<8x8xf32>
    %486 = vector.broadcast %21 : vector<1x8xf32> to vector<8x8xf32>
    %487 = arith.mulf %485, %486 : vector<8x8xf32>
    %488 = arith.addf %482, %487 : vector<8x8xf32>
    %cst_415 = arith.constant 0.000000e+00 : f32
    %489 = vector.broadcast %cst_415 : f32 to vector<8x8xf32>
    %490 = arith.maximumf %488, %489 : vector<8x8xf32>
    %c0_416 = arith.constant 0 : index
    %c7_417 = arith.constant 7 : index
    %c0_418 = arith.constant 0 : index
    %c0_419 = arith.constant 0 : index
    %491 = vector.load %arg4[%c0_416, %c7_417, %c0_418, %c0_419] : memref<1x8x8x8xf32, #tpu.memory_space<vmem>>, vector<1x1x8x8xf32>
    %492 = vector.shape_cast %491 : vector<1x1x8x8xf32> to vector<8x8xf32>
    %493 = vector.shape_cast %490 : vector<8x8xf32> to vector<1x1x8x8xf32>
    tpu.vector_store %arg4[%c0_416, %c7_417, %c0_418, %c0_419], %493 {strides = array<i32>} : memref<1x8x8x8xf32, #tpu.memory_space<vmem>>, vector<1x1x8x8xf32>,
    return
  }
  func.func @transform_0(%arg0: i32) -> (i32, i32, i32, i32, i32) {
    %c0_i32 = arith.constant 0 : i32
    %c0_i32_0 = arith.constant 0 : i32
    %c0_i32_1 = arith.constant 0 : i32
    %c0_i32_2 = arith.constant 0 : i32
    %c0_i32_3 = arith.constant 0 : i32
    return %arg0, %c0_i32, %c0_i32_0, %c0_i32_1, %c0_i32_2 : i32, i32, i32, i32, i32
  }
  func.func @transform_1(%arg0: i32) -> (i32, i32, i32) {
    %c0_i32 = arith.constant 0 : i32
    %c0_i32_0 = arith.constant 0 : i32
    %c0_i32_1 = arith.constant 0 : i32
    %c0_i32_2 = arith.constant 0 : i32
    return %c0_i32, %c0_i32_0, %c0_i32_1 : i32, i32, i32
  }
  func.func @transform_2(%arg0: i32) -> (i32, i32) {
    %c0_i32 = arith.constant 0 : i32
    %c0_i32_0 = arith.constant 0 : i32
    %c0_i32_1 = arith.constant 0 : i32
    return %c0_i32, %c0_i32_0 : i32, i32
  }
  func.func @transform_3(%arg0: i32) -> (i32, i32, i32, i32) {
    %c0_i32 = arith.constant 0 : i32
    %c0_i32_0 = arith.constant 0 : i32
    %c0_i32_1 = arith.constant 0 : i32
    %c0_i32_2 = arith.constant 0 : i32
    return %arg0, %c0_i32, %c0_i32_0, %c0_i32_1 : i32, i32, i32, i32
  }
}

module attributes {stable_mosaic.version = 11 : i64} {
  func.func @_conv3x3_tap_kernel(%arg0: i32, %arg1: memref<1x4x5x5x8xf32, #tpu.memory_space<vmem>>, %arg2: memref<9x8x16xf32, #tpu.memory_space<vmem>>, %arg3: memref<1x16xf32, #tpu.memory_space<vmem>>, %arg4: memref<1x4x4x16xf32, #tpu.memory_space<vmem>>) attributes {dimension_semantics = [#tpu.dimension_semantics<parallel>], iteration_bounds = array<i64: 2>, scalar_prefetch = 0 : i64, scratch_operands = 0 : i64, tpu.core_type = #tpu.core_type<tc>, window_params = [{transform_indices = @transform_0, window_bounds = array<i64: 1, 4, 5, 5, 8>}, {pipeline_mode = #tpu.pipeline_mode<synchronous>, transform_indices = @transform_1, window_bounds = array<i64: 9, 8, 16>}, {pipeline_mode = #tpu.pipeline_mode<synchronous>, transform_indices = @transform_2, window_bounds = array<i64: 1, 16>}, {transform_indices = @transform_3, window_bounds = array<i64: 1, 4, 4, 16>}]} {
    %cst = arith.constant 0.000000e+00 : f32
    %0 = vector.broadcast %cst : f32 to vector<4x16xf32>
    %c0 = arith.constant 0 : index
    %c0_0 = arith.constant 0 : index
    %1 = vector.load %arg3[%c0, %c0_0] : memref<1x16xf32, #tpu.memory_space<vmem>>, vector<1x16xf32>
    %2 = vector.broadcast %1 : vector<1x16xf32> to vector<4x16xf32>
    %3 = arith.addf %0, %2 : vector<4x16xf32>
    %c0_1 = arith.constant 0 : index
    %c0_2 = arith.constant 0 : index
    %c0_3 = arith.constant 0 : index
    %4 = vector.load %arg2[%c0_1, %c0_2, %c0_3] : memref<9x8x16xf32, #tpu.memory_space<vmem>>, vector<1x8x16xf32>
    %5 = vector.shape_cast %4 : vector<1x8x16xf32> to vector<8x16xf32>
    %c1 = arith.constant 1 : index
    %c0_4 = arith.constant 0 : index
    %c0_5 = arith.constant 0 : index
    %6 = vector.load %arg2[%c1, %c0_4, %c0_5] : memref<9x8x16xf32, #tpu.memory_space<vmem>>, vector<1x8x16xf32>
    %7 = vector.shape_cast %6 : vector<1x8x16xf32> to vector<8x16xf32>
    %c2 = arith.constant 2 : index
    %c0_6 = arith.constant 0 : index
    %c0_7 = arith.constant 0 : index
    %8 = vector.load %arg2[%c2, %c0_6, %c0_7] : memref<9x8x16xf32, #tpu.memory_space<vmem>>, vector<1x8x16xf32>
    %9 = vector.shape_cast %8 : vector<1x8x16xf32> to vector<8x16xf32>
    %c3 = arith.constant 3 : index
    %c0_8 = arith.constant 0 : index
    %c0_9 = arith.constant 0 : index
    %10 = vector.load %arg2[%c3, %c0_8, %c0_9] : memref<9x8x16xf32, #tpu.memory_space<vmem>>, vector<1x8x16xf32>
    %11 = vector.shape_cast %10 : vector<1x8x16xf32> to vector<8x16xf32>
    %c4 = arith.constant 4 : index
    %c0_10 = arith.constant 0 : index
    %c0_11 = arith.constant 0 : index
    %12 = vector.load %arg2[%c4, %c0_10, %c0_11] : memref<9x8x16xf32, #tpu.memory_space<vmem>>, vector<1x8x16xf32>
    %13 = vector.shape_cast %12 : vector<1x8x16xf32> to vector<8x16xf32>
    %c5 = arith.constant 5 : index
    %c0_12 = arith.constant 0 : index
    %c0_13 = arith.constant 0 : index
    %14 = vector.load %arg2[%c5, %c0_12, %c0_13] : memref<9x8x16xf32, #tpu.memory_space<vmem>>, vector<1x8x16xf32>
    %15 = vector.shape_cast %14 : vector<1x8x16xf32> to vector<8x16xf32>
    %c6 = arith.constant 6 : index
    %c0_14 = arith.constant 0 : index
    %c0_15 = arith.constant 0 : index
    %16 = vector.load %arg2[%c6, %c0_14, %c0_15] : memref<9x8x16xf32, #tpu.memory_space<vmem>>, vector<1x8x16xf32>
    %17 = vector.shape_cast %16 : vector<1x8x16xf32> to vector<8x16xf32>
    %c7 = arith.constant 7 : index
    %c0_16 = arith.constant 0 : index
    %c0_17 = arith.constant 0 : index
    %18 = vector.load %arg2[%c7, %c0_16, %c0_17] : memref<9x8x16xf32, #tpu.memory_space<vmem>>, vector<1x8x16xf32>
    %19 = vector.shape_cast %18 : vector<1x8x16xf32> to vector<8x16xf32>
    %c8 = arith.constant 8 : index
    %c0_18 = arith.constant 0 : index
    %c0_19 = arith.constant 0 : index
    %20 = vector.load %arg2[%c8, %c0_18, %c0_19] : memref<9x8x16xf32, #tpu.memory_space<vmem>>, vector<1x8x16xf32>
    %21 = vector.shape_cast %20 : vector<1x8x16xf32> to vector<8x16xf32>
    %c0_20 = arith.constant 0 : index
    %c0_21 = arith.constant 0 : index
    %c0_22 = arith.constant 0 : index
    %c0_23 = arith.constant 0 : index
    %c0_24 = arith.constant 0 : index
    %22 = vector.load %arg1[%c0_20, %c0_21, %c0_22, %c0_23, %c0_24] : memref<1x4x5x5x8xf32, #tpu.memory_space<vmem>>, vector<1x1x1x4x8xf32>
    %23 = vector.shape_cast %22 : vector<1x1x1x4x8xf32> to vector<4x8xf32>
    %cst_25 = arith.constant dense<0.000000e+00> : vector<4x16xf32>
    %24 = tpu.matmul %23, %5, %cst_25 {dimension_numbers = #tpu.dot_dimension_numbers<[1], [0], [0], [1], [0, 0, 1, 1], [], []>} : vector<4x8xf32>, vector<8x16xf32>, vector<4x16xf32> -> vector<4x16xf32>
    %25 = arith.addf %3, %24 : vector<4x16xf32>
    %c0_26 = arith.constant 0 : index
    %c1_27 = arith.constant 1 : index
    %c0_28 = arith.constant 0 : index
    %c0_29 = arith.constant 0 : index
    %c0_30 = arith.constant 0 : index
    %26 = vector.load %arg1[%c0_26, %c1_27, %c0_28, %c0_29, %c0_30] : memref<1x4x5x5x8xf32, #tpu.memory_space<vmem>>, vector<1x1x1x4x8xf32>
    %27 = vector.shape_cast %26 : vector<1x1x1x4x8xf32> to vector<4x8xf32>
    %cst_31 = arith.constant dense<0.000000e+00> : vector<4x16xf32>
    %28 = tpu.matmul %27, %7, %cst_31 {dimension_numbers = #tpu.dot_dimension_numbers<[1], [0], [0], [1], [0, 0, 1, 1], [], []>} : vector<4x8xf32>, vector<8x16xf32>, vector<4x16xf32> -> vector<4x16xf32>
    %29 = arith.addf %25, %28 : vector<4x16xf32>
    %c0_32 = arith.constant 0 : index
    %c0_33 = arith.constant 0 : index
    %c0_34 = arith.constant 0 : index
    %c1_35 = arith.constant 1 : index
    %c0_36 = arith.constant 0 : index
    %30 = vector.load %arg1[%c0_32, %c0_33, %c0_34, %c1_35, %c0_36] : memref<1x4x5x5x8xf32, #tpu.memory_space<vmem>>, vector<1x1x1x4x8xf32>
    %31 = vector.shape_cast %30 : vector<1x1x1x4x8xf32> to vector<4x8xf32>
    %cst_37 = arith.constant dense<0.000000e+00> : vector<4x16xf32>
    %32 = tpu.matmul %31, %9, %cst_37 {dimension_numbers = #tpu.dot_dimension_numbers<[1], [0], [0], [1], [0, 0, 1, 1], [], []>} : vector<4x8xf32>, vector<8x16xf32>, vector<4x16xf32> -> vector<4x16xf32>
    %33 = arith.addf %29, %32 : vector<4x16xf32>
    %c0_38 = arith.constant 0 : index
    %c2_39 = arith.constant 2 : index
    %c0_40 = arith.constant 0 : index
    %c0_41 = arith.constant 0 : index
    %c0_42 = arith.constant 0 : index
    %34 = vector.load %arg1[%c0_38, %c2_39, %c0_40, %c0_41, %c0_42] : memref<1x4x5x5x8xf32, #tpu.memory_space<vmem>>, vector<1x1x1x4x8xf32>
    %35 = vector.shape_cast %34 : vector<1x1x1x4x8xf32> to vector<4x8xf32>
    %cst_43 = arith.constant dense<0.000000e+00> : vector<4x16xf32>
    %36 = tpu.matmul %35, %11, %cst_43 {dimension_numbers = #tpu.dot_dimension_numbers<[1], [0], [0], [1], [0, 0, 1, 1], [], []>} : vector<4x8xf32>, vector<8x16xf32>, vector<4x16xf32> -> vector<4x16xf32>
    %37 = arith.addf %33, %36 : vector<4x16xf32>
    %c0_44 = arith.constant 0 : index
    %c3_45 = arith.constant 3 : index
    %c0_46 = arith.constant 0 : index
    %c0_47 = arith.constant 0 : index
    %c0_48 = arith.constant 0 : index
    %38 = vector.load %arg1[%c0_44, %c3_45, %c0_46, %c0_47, %c0_48] : memref<1x4x5x5x8xf32, #tpu.memory_space<vmem>>, vector<1x1x1x4x8xf32>
    %39 = vector.shape_cast %38 : vector<1x1x1x4x8xf32> to vector<4x8xf32>
    %cst_49 = arith.constant dense<0.000000e+00> : vector<4x16xf32>
    %40 = tpu.matmul %39, %13, %cst_49 {dimension_numbers = #tpu.dot_dimension_numbers<[1], [0], [0], [1], [0, 0, 1, 1], [], []>} : vector<4x8xf32>, vector<8x16xf32>, vector<4x16xf32> -> vector<4x16xf32>
    %41 = arith.addf %37, %40 : vector<4x16xf32>
    %c0_50 = arith.constant 0 : index
    %c2_51 = arith.constant 2 : index
    %c0_52 = arith.constant 0 : index
    %c1_53 = arith.constant 1 : index
    %c0_54 = arith.constant 0 : index
    %42 = vector.load %arg1[%c0_50, %c2_51, %c0_52, %c1_53, %c0_54] : memref<1x4x5x5x8xf32, #tpu.memory_space<vmem>>, vector<1x1x1x4x8xf32>
    %43 = vector.shape_cast %42 : vector<1x1x1x4x8xf32> to vector<4x8xf32>
    %cst_55 = arith.constant dense<0.000000e+00> : vector<4x16xf32>
    %44 = tpu.matmul %43, %15, %cst_55 {dimension_numbers = #tpu.dot_dimension_numbers<[1], [0], [0], [1], [0, 0, 1, 1], [], []>} : vector<4x8xf32>, vector<8x16xf32>, vector<4x16xf32> -> vector<4x16xf32>
    %45 = arith.addf %41, %44 : vector<4x16xf32>
    %c0_56 = arith.constant 0 : index
    %c0_57 = arith.constant 0 : index
    %c1_58 = arith.constant 1 : index
    %c0_59 = arith.constant 0 : index
    %c0_60 = arith.constant 0 : index
    %46 = vector.load %arg1[%c0_56, %c0_57, %c1_58, %c0_59, %c0_60] : memref<1x4x5x5x8xf32, #tpu.memory_space<vmem>>, vector<1x1x1x4x8xf32>
    %47 = vector.shape_cast %46 : vector<1x1x1x4x8xf32> to vector<4x8xf32>
    %cst_61 = arith.constant dense<0.000000e+00> : vector<4x16xf32>
    %48 = tpu.matmul %47, %17, %cst_61 {dimension_numbers = #tpu.dot_dimension_numbers<[1], [0], [0], [1], [0, 0, 1, 1], [], []>} : vector<4x8xf32>, vector<8x16xf32>, vector<4x16xf32> -> vector<4x16xf32>
    %49 = arith.addf %45, %48 : vector<4x16xf32>
    %c0_62 = arith.constant 0 : index
    %c1_63 = arith.constant 1 : index
    %c1_64 = arith.constant 1 : index
    %c0_65 = arith.constant 0 : index
    %c0_66 = arith.constant 0 : index
    %50 = vector.load %arg1[%c0_62, %c1_63, %c1_64, %c0_65, %c0_66] : memref<1x4x5x5x8xf32, #tpu.memory_space<vmem>>, vector<1x1x1x4x8xf32>
    %51 = vector.shape_cast %50 : vector<1x1x1x4x8xf32> to vector<4x8xf32>
    %cst_67 = arith.constant dense<0.000000e+00> : vector<4x16xf32>
    %52 = tpu.matmul %51, %19, %cst_67 {dimension_numbers = #tpu.dot_dimension_numbers<[1], [0], [0], [1], [0, 0, 1, 1], [], []>} : vector<4x8xf32>, vector<8x16xf32>, vector<4x16xf32> -> vector<4x16xf32>
    %53 = arith.addf %49, %52 : vector<4x16xf32>
    %c0_68 = arith.constant 0 : index
    %c0_69 = arith.constant 0 : index
    %c1_70 = arith.constant 1 : index
    %c1_71 = arith.constant 1 : index
    %c0_72 = arith.constant 0 : index
    %54 = vector.load %arg1[%c0_68, %c0_69, %c1_70, %c1_71, %c0_72] : memref<1x4x5x5x8xf32, #tpu.memory_space<vmem>>, vector<1x1x1x4x8xf32>
    %55 = vector.shape_cast %54 : vector<1x1x1x4x8xf32> to vector<4x8xf32>
    %cst_73 = arith.constant dense<0.000000e+00> : vector<4x16xf32>
    %56 = tpu.matmul %55, %21, %cst_73 {dimension_numbers = #tpu.dot_dimension_numbers<[1], [0], [0], [1], [0, 0, 1, 1], [], []>} : vector<4x8xf32>, vector<8x16xf32>, vector<4x16xf32> -> vector<4x16xf32>
    %57 = arith.addf %53, %56 : vector<4x16xf32>
    %cst_74 = arith.constant 0.000000e+00 : f32
    %58 = vector.broadcast %cst_74 : f32 to vector<4x16xf32>
    %59 = arith.maximumf %57, %58 : vector<4x16xf32>
    %c0_75 = arith.constant 0 : index
    %c0_76 = arith.constant 0 : index
    %c0_77 = arith.constant 0 : index
    %c0_78 = arith.constant 0 : index
    %60 = vector.load %arg4[%c0_75, %c0_76, %c0_77, %c0_78] : memref<1x4x4x16xf32, #tpu.memory_space<vmem>>, vector<1x1x4x16xf32>
    %61 = vector.shape_cast %60 : vector<1x1x4x16xf32> to vector<4x16xf32>
    %62 = vector.shape_cast %59 : vector<4x16xf32> to vector<1x1x4x16xf32>
    tpu.vector_store %arg4[%c0_75, %c0_76, %c0_77, %c0_78], %62 {strides = array<i32>} : memref<1x4x4x16xf32, #tpu.memory_space<vmem>>, vector<1x1x4x16xf32>,
    %c0_79 = arith.constant 0 : index
    %c0_80 = arith.constant 0 : index
    %c1_81 = arith.constant 1 : index
    %c0_82 = arith.constant 0 : index
    %c0_83 = arith.constant 0 : index
    %63 = vector.load %arg1[%c0_79, %c0_80, %c1_81, %c0_82, %c0_83] : memref<1x4x5x5x8xf32, #tpu.memory_space<vmem>>, vector<1x1x1x4x8xf32>
    %64 = vector.shape_cast %63 : vector<1x1x1x4x8xf32> to vector<4x8xf32>
    %cst_84 = arith.constant dense<0.000000e+00> : vector<4x16xf32>
    %65 = tpu.matmul %64, %5, %cst_84 {dimension_numbers = #tpu.dot_dimension_numbers<[1], [0], [0], [1], [0, 0, 1, 1], [], []>} : vector<4x8xf32>, vector<8x16xf32>, vector<4x16xf32> -> vector<4x16xf32>
    %66 = arith.addf %3, %65 : vector<4x16xf32>
    %c0_85 = arith.constant 0 : index
    %c1_86 = arith.constant 1 : index
    %c1_87 = arith.constant 1 : index
    %c0_88 = arith.constant 0 : index
    %c0_89 = arith.constant 0 : index
    %67 = vector.load %arg1[%c0_85, %c1_86, %c1_87, %c0_88, %c0_89] : memref<1x4x5x5x8xf32, #tpu.memory_space<vmem>>, vector<1x1x1x4x8xf32>
    %68 = vector.shape_cast %67 : vector<1x1x1x4x8xf32> to vector<4x8xf32>
    %cst_90 = arith.constant dense<0.000000e+00> : vector<4x16xf32>
    %69 = tpu.matmul %68, %7, %cst_90 {dimension_numbers = #tpu.dot_dimension_numbers<[1], [0], [0], [1], [0, 0, 1, 1], [], []>} : vector<4x8xf32>, vector<8x16xf32>, vector<4x16xf32> -> vector<4x16xf32>
    %70 = arith.addf %66, %69 : vector<4x16xf32>
    %c0_91 = arith.constant 0 : index
    %c0_92 = arith.constant 0 : index
    %c1_93 = arith.constant 1 : index
    %c1_94 = arith.constant 1 : index
    %c0_95 = arith.constant 0 : index
    %71 = vector.load %arg1[%c0_91, %c0_92, %c1_93, %c1_94, %c0_95] : memref<1x4x5x5x8xf32, #tpu.memory_space<vmem>>, vector<1x1x1x4x8xf32>
    %72 = vector.shape_cast %71 : vector<1x1x1x4x8xf32> to vector<4x8xf32>
    %cst_96 = arith.constant dense<0.000000e+00> : vector<4x16xf32>
    %73 = tpu.matmul %72, %9, %cst_96 {dimension_numbers = #tpu.dot_dimension_numbers<[1], [0], [0], [1], [0, 0, 1, 1], [], []>} : vector<4x8xf32>, vector<8x16xf32>, vector<4x16xf32> -> vector<4x16xf32>
    %74 = arith.addf %70, %73 : vector<4x16xf32>
    %c0_97 = arith.constant 0 : index
    %c2_98 = arith.constant 2 : index
    %c1_99 = arith.constant 1 : index
    %c0_100 = arith.constant 0 : index
    %c0_101 = arith.constant 0 : index
    %75 = vector.load %arg1[%c0_97, %c2_98, %c1_99, %c0_100, %c0_101] : memref<1x4x5x5x8xf32, #tpu.memory_space<vmem>>, vector<1x1x1x4x8xf32>
    %76 = vector.shape_cast %75 : vector<1x1x1x4x8xf32> to vector<4x8xf32>
    %cst_102 = arith.constant dense<0.000000e+00> : vector<4x16xf32>
    %77 = tpu.matmul %76, %11, %cst_102 {dimension_numbers = #tpu.dot_dimension_numbers<[1], [0], [0], [1], [0, 0, 1, 1], [], []>} : vector<4x8xf32>, vector<8x16xf32>, vector<4x16xf32> -> vector<4x16xf32>
    %78 = arith.addf %74, %77 : vector<4x16xf32>
    %c0_103 = arith.constant 0 : index
    %c3_104 = arith.constant 3 : index
    %c1_105 = arith.constant 1 : index
    %c0_106 = arith.constant 0 : index
    %c0_107 = arith.constant 0 : index
    %79 = vector.load %arg1[%c0_103, %c3_104, %c1_105, %c0_106, %c0_107] : memref<1x4x5x5x8xf32, #tpu.memory_space<vmem>>, vector<1x1x1x4x8xf32>
    %80 = vector.shape_cast %79 : vector<1x1x1x4x8xf32> to vector<4x8xf32>
    %cst_108 = arith.constant dense<0.000000e+00> : vector<4x16xf32>
    %81 = tpu.matmul %80, %13, %cst_108 {dimension_numbers = #tpu.dot_dimension_numbers<[1], [0], [0], [1], [0, 0, 1, 1], [], []>} : vector<4x8xf32>, vector<8x16xf32>, vector<4x16xf32> -> vector<4x16xf32>
    %82 = arith.addf %78, %81 : vector<4x16xf32>
    %c0_109 = arith.constant 0 : index
    %c2_110 = arith.constant 2 : index
    %c1_111 = arith.constant 1 : index
    %c1_112 = arith.constant 1 : index
    %c0_113 = arith.constant 0 : index
    %83 = vector.load %arg1[%c0_109, %c2_110, %c1_111, %c1_112, %c0_113] : memref<1x4x5x5x8xf32, #tpu.memory_space<vmem>>, vector<1x1x1x4x8xf32>
    %84 = vector.shape_cast %83 : vector<1x1x1x4x8xf32> to vector<4x8xf32>
    %cst_114 = arith.constant dense<0.000000e+00> : vector<4x16xf32>
    %85 = tpu.matmul %84, %15, %cst_114 {dimension_numbers = #tpu.dot_dimension_numbers<[1], [0], [0], [1], [0, 0, 1, 1], [], []>} : vector<4x8xf32>, vector<8x16xf32>, vector<4x16xf32> -> vector<4x16xf32>
    %86 = arith.addf %82, %85 : vector<4x16xf32>
    %c0_115 = arith.constant 0 : index
    %c0_116 = arith.constant 0 : index
    %c2_117 = arith.constant 2 : index
    %c0_118 = arith.constant 0 : index
    %c0_119 = arith.constant 0 : index
    %87 = vector.load %arg1[%c0_115, %c0_116, %c2_117, %c0_118, %c0_119] : memref<1x4x5x5x8xf32, #tpu.memory_space<vmem>>, vector<1x1x1x4x8xf32>
    %88 = vector.shape_cast %87 : vector<1x1x1x4x8xf32> to vector<4x8xf32>
    %cst_120 = arith.constant dense<0.000000e+00> : vector<4x16xf32>
    %89 = tpu.matmul %88, %17, %cst_120 {dimension_numbers = #tpu.dot_dimension_numbers<[1], [0], [0], [1], [0, 0, 1, 1], [], []>} : vector<4x8xf32>, vector<8x16xf32>, vector<4x16xf32> -> vector<4x16xf32>
    %90 = arith.addf %86, %89 : vector<4x16xf32>
    %c0_121 = arith.constant 0 : index
    %c1_122 = arith.constant 1 : index
    %c2_123 = arith.constant 2 : index
    %c0_124 = arith.constant 0 : index
    %c0_125 = arith.constant 0 : index
    %91 = vector.load %arg1[%c0_121, %c1_122, %c2_123, %c0_124, %c0_125] : memref<1x4x5x5x8xf32, #tpu.memory_space<vmem>>, vector<1x1x1x4x8xf32>
    %92 = vector.shape_cast %91 : vector<1x1x1x4x8xf32> to vector<4x8xf32>
    %cst_126 = arith.constant dense<0.000000e+00> : vector<4x16xf32>
    %93 = tpu.matmul %92, %19, %cst_126 {dimension_numbers = #tpu.dot_dimension_numbers<[1], [0], [0], [1], [0, 0, 1, 1], [], []>} : vector<4x8xf32>, vector<8x16xf32>, vector<4x16xf32> -> vector<4x16xf32>
    %94 = arith.addf %90, %93 : vector<4x16xf32>
    %c0_127 = arith.constant 0 : index
    %c0_128 = arith.constant 0 : index
    %c2_129 = arith.constant 2 : index
    %c1_130 = arith.constant 1 : index
    %c0_131 = arith.constant 0 : index
    %95 = vector.load %arg1[%c0_127, %c0_128, %c2_129, %c1_130, %c0_131] : memref<1x4x5x5x8xf32, #tpu.memory_space<vmem>>, vector<1x1x1x4x8xf32>
    %96 = vector.shape_cast %95 : vector<1x1x1x4x8xf32> to vector<4x8xf32>
    %cst_132 = arith.constant dense<0.000000e+00> : vector<4x16xf32>
    %97 = tpu.matmul %96, %21, %cst_132 {dimension_numbers = #tpu.dot_dimension_numbers<[1], [0], [0], [1], [0, 0, 1, 1], [], []>} : vector<4x8xf32>, vector<8x16xf32>, vector<4x16xf32> -> vector<4x16xf32>
    %98 = arith.addf %94, %97 : vector<4x16xf32>
    %cst_133 = arith.constant 0.000000e+00 : f32
    %99 = vector.broadcast %cst_133 : f32 to vector<4x16xf32>
    %100 = arith.maximumf %98, %99 : vector<4x16xf32>
    %c0_134 = arith.constant 0 : index
    %c1_135 = arith.constant 1 : index
    %c0_136 = arith.constant 0 : index
    %c0_137 = arith.constant 0 : index
    %101 = vector.load %arg4[%c0_134, %c1_135, %c0_136, %c0_137] : memref<1x4x4x16xf32, #tpu.memory_space<vmem>>, vector<1x1x4x16xf32>
    %102 = vector.shape_cast %101 : vector<1x1x4x16xf32> to vector<4x16xf32>
    %103 = vector.shape_cast %100 : vector<4x16xf32> to vector<1x1x4x16xf32>
    tpu.vector_store %arg4[%c0_134, %c1_135, %c0_136, %c0_137], %103 {strides = array<i32>} : memref<1x4x4x16xf32, #tpu.memory_space<vmem>>, vector<1x1x4x16xf32>,
    %c0_138 = arith.constant 0 : index
    %c0_139 = arith.constant 0 : index
    %c2_140 = arith.constant 2 : index
    %c0_141 = arith.constant 0 : index
    %c0_142 = arith.constant 0 : index
    %104 = vector.load %arg1[%c0_138, %c0_139, %c2_140, %c0_141, %c0_142] : memref<1x4x5x5x8xf32, #tpu.memory_space<vmem>>, vector<1x1x1x4x8xf32>
    %105 = vector.shape_cast %104 : vector<1x1x1x4x8xf32> to vector<4x8xf32>
    %cst_143 = arith.constant dense<0.000000e+00> : vector<4x16xf32>
    %106 = tpu.matmul %105, %5, %cst_143 {dimension_numbers = #tpu.dot_dimension_numbers<[1], [0], [0], [1], [0, 0, 1, 1], [], []>} : vector<4x8xf32>, vector<8x16xf32>, vector<4x16xf32> -> vector<4x16xf32>
    %107 = arith.addf %3, %106 : vector<4x16xf32>
    %c0_144 = arith.constant 0 : index
    %c1_145 = arith.constant 1 : index
    %c2_146 = arith.constant 2 : index
    %c0_147 = arith.constant 0 : index
    %c0_148 = arith.constant 0 : index
    %108 = vector.load %arg1[%c0_144, %c1_145, %c2_146, %c0_147, %c0_148] : memref<1x4x5x5x8xf32, #tpu.memory_space<vmem>>, vector<1x1x1x4x8xf32>
    %109 = vector.shape_cast %108 : vector<1x1x1x4x8xf32> to vector<4x8xf32>
    %cst_149 = arith.constant dense<0.000000e+00> : vector<4x16xf32>
    %110 = tpu.matmul %109, %7, %cst_149 {dimension_numbers = #tpu.dot_dimension_numbers<[1], [0], [0], [1], [0, 0, 1, 1], [], []>} : vector<4x8xf32>, vector<8x16xf32>, vector<4x16xf32> -> vector<4x16xf32>
    %111 = arith.addf %107, %110 : vector<4x16xf32>
    %c0_150 = arith.constant 0 : index
    %c0_151 = arith.constant 0 : index
    %c2_152 = arith.constant 2 : index
    %c1_153 = arith.constant 1 : index
    %c0_154 = arith.constant 0 : index
    %112 = vector.load %arg1[%c0_150, %c0_151, %c2_152, %c1_153, %c0_154] : memref<1x4x5x5x8xf32, #tpu.memory_space<vmem>>, vector<1x1x1x4x8xf32>
    %113 = vector.shape_cast %112 : vector<1x1x1x4x8xf32> to vector<4x8xf32>
    %cst_155 = arith.constant dense<0.000000e+00> : vector<4x16xf32>
    %114 = tpu.matmul %113, %9, %cst_155 {dimension_numbers = #tpu.dot_dimension_numbers<[1], [0], [0], [1], [0, 0, 1, 1], [], []>} : vector<4x8xf32>, vector<8x16xf32>, vector<4x16xf32> -> vector<4x16xf32>
    %115 = arith.addf %111, %114 : vector<4x16xf32>
    %c0_156 = arith.constant 0 : index
    %c2_157 = arith.constant 2 : index
    %c2_158 = arith.constant 2 : index
    %c0_159 = arith.constant 0 : index
    %c0_160 = arith.constant 0 : index
    %116 = vector.load %arg1[%c0_156, %c2_157, %c2_158, %c0_159, %c0_160] : memref<1x4x5x5x8xf32, #tpu.memory_space<vmem>>, vector<1x1x1x4x8xf32>
    %117 = vector.shape_cast %116 : vector<1x1x1x4x8xf32> to vector<4x8xf32>
    %cst_161 = arith.constant dense<0.000000e+00> : vector<4x16xf32>
    %118 = tpu.matmul %117, %11, %cst_161 {dimension_numbers = #tpu.dot_dimension_numbers<[1], [0], [0], [1], [0, 0, 1, 1], [], []>} : vector<4x8xf32>, vector<8x16xf32>, vector<4x16xf32> -> vector<4x16xf32>
    %119 = arith.addf %115, %118 : vector<4x16xf32>
    %c0_162 = arith.constant 0 : index
    %c3_163 = arith.constant 3 : index
    %c2_164 = arith.constant 2 : index
    %c0_165 = arith.constant 0 : index
    %c0_166 = arith.constant 0 : index
    %120 = vector.load %arg1[%c0_162, %c3_163, %c2_164, %c0_165, %c0_166] : memref<1x4x5x5x8xf32, #tpu.memory_space<vmem>>, vector<1x1x1x4x8xf32>
    %121 = vector.shape_cast %120 : vector<1x1x1x4x8xf32> to vector<4x8xf32>
    %cst_167 = arith.constant dense<0.000000e+00> : vector<4x16xf32>
    %122 = tpu.matmul %121, %13, %cst_167 {dimension_numbers = #tpu.dot_dimension_numbers<[1], [0], [0], [1], [0, 0, 1, 1], [], []>} : vector<4x8xf32>, vector<8x16xf32>, vector<4x16xf32> -> vector<4x16xf32>
    %123 = arith.addf %119, %122 : vector<4x16xf32>
    %c0_168 = arith.constant 0 : index
    %c2_169 = arith.constant 2 : index
    %c2_170 = arith.constant 2 : index
    %c1_171 = arith.constant 1 : index
    %c0_172 = arith.constant 0 : index
    %124 = vector.load %arg1[%c0_168, %c2_169, %c2_170, %c1_171, %c0_172] : memref<1x4x5x5x8xf32, #tpu.memory_space<vmem>>, vector<1x1x1x4x8xf32>
    %125 = vector.shape_cast %124 : vector<1x1x1x4x8xf32> to vector<4x8xf32>
    %cst_173 = arith.constant dense<0.000000e+00> : vector<4x16xf32>
    %126 = tpu.matmul %125, %15, %cst_173 {dimension_numbers = #tpu.dot_dimension_numbers<[1], [0], [0], [1], [0, 0, 1, 1], [], []>} : vector<4x8xf32>, vector<8x16xf32>, vector<4x16xf32> -> vector<4x16xf32>
    %127 = arith.addf %123, %126 : vector<4x16xf32>
    %c0_174 = arith.constant 0 : index
    %c0_175 = arith.constant 0 : index
    %c3_176 = arith.constant 3 : index
    %c0_177 = arith.constant 0 : index
    %c0_178 = arith.constant 0 : index
    %128 = vector.load %arg1[%c0_174, %c0_175, %c3_176, %c0_177, %c0_178] : memref<1x4x5x5x8xf32, #tpu.memory_space<vmem>>, vector<1x1x1x4x8xf32>
    %129 = vector.shape_cast %128 : vector<1x1x1x4x8xf32> to vector<4x8xf32>
    %cst_179 = arith.constant dense<0.000000e+00> : vector<4x16xf32>
    %130 = tpu.matmul %129, %17, %cst_179 {dimension_numbers = #tpu.dot_dimension_numbers<[1], [0], [0], [1], [0, 0, 1, 1], [], []>} : vector<4x8xf32>, vector<8x16xf32>, vector<4x16xf32> -> vector<4x16xf32>
    %131 = arith.addf %127, %130 : vector<4x16xf32>
    %c0_180 = arith.constant 0 : index
    %c1_181 = arith.constant 1 : index
    %c3_182 = arith.constant 3 : index
    %c0_183 = arith.constant 0 : index
    %c0_184 = arith.constant 0 : index
    %132 = vector.load %arg1[%c0_180, %c1_181, %c3_182, %c0_183, %c0_184] : memref<1x4x5x5x8xf32, #tpu.memory_space<vmem>>, vector<1x1x1x4x8xf32>
    %133 = vector.shape_cast %132 : vector<1x1x1x4x8xf32> to vector<4x8xf32>
    %cst_185 = arith.constant dense<0.000000e+00> : vector<4x16xf32>
    %134 = tpu.matmul %133, %19, %cst_185 {dimension_numbers = #tpu.dot_dimension_numbers<[1], [0], [0], [1], [0, 0, 1, 1], [], []>} : vector<4x8xf32>, vector<8x16xf32>, vector<4x16xf32> -> vector<4x16xf32>
    %135 = arith.addf %131, %134 : vector<4x16xf32>
    %c0_186 = arith.constant 0 : index
    %c0_187 = arith.constant 0 : index
    %c3_188 = arith.constant 3 : index
    %c1_189 = arith.constant 1 : index
    %c0_190 = arith.constant 0 : index
    %136 = vector.load %arg1[%c0_186, %c0_187, %c3_188, %c1_189, %c0_190] : memref<1x4x5x5x8xf32, #tpu.memory_space<vmem>>, vector<1x1x1x4x8xf32>
    %137 = vector.shape_cast %136 : vector<1x1x1x4x8xf32> to vector<4x8xf32>
    %cst_191 = arith.constant dense<0.000000e+00> : vector<4x16xf32>
    %138 = tpu.matmul %137, %21, %cst_191 {dimension_numbers = #tpu.dot_dimension_numbers<[1], [0], [0], [1], [0, 0, 1, 1], [], []>} : vector<4x8xf32>, vector<8x16xf32>, vector<4x16xf32> -> vector<4x16xf32>
    %139 = arith.addf %135, %138 : vector<4x16xf32>
    %cst_192 = arith.constant 0.000000e+00 : f32
    %140 = vector.broadcast %cst_192 : f32 to vector<4x16xf32>
    %141 = arith.maximumf %139, %140 : vector<4x16xf32>
    %c0_193 = arith.constant 0 : index
    %c2_194 = arith.constant 2 : index
    %c0_195 = arith.constant 0 : index
    %c0_196 = arith.constant 0 : index
    %142 = vector.load %arg4[%c0_193, %c2_194, %c0_195, %c0_196] : memref<1x4x4x16xf32, #tpu.memory_space<vmem>>, vector<1x1x4x16xf32>
    %143 = vector.shape_cast %142 : vector<1x1x4x16xf32> to vector<4x16xf32>
    %144 = vector.shape_cast %141 : vector<4x16xf32> to vector<1x1x4x16xf32>
    tpu.vector_store %arg4[%c0_193, %c2_194, %c0_195, %c0_196], %144 {strides = array<i32>} : memref<1x4x4x16xf32, #tpu.memory_space<vmem>>, vector<1x1x4x16xf32>,
    %c0_197 = arith.constant 0 : index
    %c0_198 = arith.constant 0 : index
    %c3_199 = arith.constant 3 : index
    %c0_200 = arith.constant 0 : index
    %c0_201 = arith.constant 0 : index
    %145 = vector.load %arg1[%c0_197, %c0_198, %c3_199, %c0_200, %c0_201] : memref<1x4x5x5x8xf32, #tpu.memory_space<vmem>>, vector<1x1x1x4x8xf32>
    %146 = vector.shape_cast %145 : vector<1x1x1x4x8xf32> to vector<4x8xf32>
    %cst_202 = arith.constant dense<0.000000e+00> : vector<4x16xf32>
    %147 = tpu.matmul %146, %5, %cst_202 {dimension_numbers = #tpu.dot_dimension_numbers<[1], [0], [0], [1], [0, 0, 1, 1], [], []>} : vector<4x8xf32>, vector<8x16xf32>, vector<4x16xf32> -> vector<4x16xf32>
    %148 = arith.addf %3, %147 : vector<4x16xf32>
    %c0_203 = arith.constant 0 : index
    %c1_204 = arith.constant 1 : index
    %c3_205 = arith.constant 3 : index
    %c0_206 = arith.constant 0 : index
    %c0_207 = arith.constant 0 : index
    %149 = vector.load %arg1[%c0_203, %c1_204, %c3_205, %c0_206, %c0_207] : memref<1x4x5x5x8xf32, #tpu.memory_space<vmem>>, vector<1x1x1x4x8xf32>
    %150 = vector.shape_cast %149 : vector<1x1x1x4x8xf32> to vector<4x8xf32>
    %cst_208 = arith.constant dense<0.000000e+00> : vector<4x16xf32>
    %151 = tpu.matmul %150, %7, %cst_208 {dimension_numbers = #tpu.dot_dimension_numbers<[1], [0], [0], [1], [0, 0, 1, 1], [], []>} : vector<4x8xf32>, vector<8x16xf32>, vector<4x16xf32> -> vector<4x16xf32>
    %152 = arith.addf %148, %151 : vector<4x16xf32>
    %c0_209 = arith.constant 0 : index
    %c0_210 = arith.constant 0 : index
    %c3_211 = arith.constant 3 : index
    %c1_212 = arith.constant 1 : index
    %c0_213 = arith.constant 0 : index
    %153 = vector.load %arg1[%c0_209, %c0_210, %c3_211, %c1_212, %c0_213] : memref<1x4x5x5x8xf32, #tpu.memory_space<vmem>>, vector<1x1x1x4x8xf32>
    %154 = vector.shape_cast %153 : vector<1x1x1x4x8xf32> to vector<4x8xf32>
    %cst_214 = arith.constant dense<0.000000e+00> : vector<4x16xf32>
    %155 = tpu.matmul %154, %9, %cst_214 {dimension_numbers = #tpu.dot_dimension_numbers<[1], [0], [0], [1], [0, 0, 1, 1], [], []>} : vector<4x8xf32>, vector<8x16xf32>, vector<4x16xf32> -> vector<4x16xf32>
    %156 = arith.addf %152, %155 : vector<4x16xf32>
    %c0_215 = arith.constant 0 : index
    %c2_216 = arith.constant 2 : index
    %c3_217 = arith.constant 3 : index
    %c0_218 = arith.constant 0 : index
    %c0_219 = arith.constant 0 : index
    %157 = vector.load %arg1[%c0_215, %c2_216, %c3_217, %c0_218, %c0_219] : memref<1x4x5x5x8xf32, #tpu.memory_space<vmem>>, vector<1x1x1x4x8xf32>
    %158 = vector.shape_cast %157 : vector<1x1x1x4x8xf32> to vector<4x8xf32>
    %cst_220 = arith.constant dense<0.000000e+00> : vector<4x16xf32>
    %159 = tpu.matmul %158, %11, %cst_220 {dimension_numbers = #tpu.dot_dimension_numbers<[1], [0], [0], [1], [0, 0, 1, 1], [], []>} : vector<4x8xf32>, vector<8x16xf32>, vector<4x16xf32> -> vector<4x16xf32>
    %160 = arith.addf %156, %159 : vector<4x16xf32>
    %c0_221 = arith.constant 0 : index
    %c3_222 = arith.constant 3 : index
    %c3_223 = arith.constant 3 : index
    %c0_224 = arith.constant 0 : index
    %c0_225 = arith.constant 0 : index
    %161 = vector.load %arg1[%c0_221, %c3_222, %c3_223, %c0_224, %c0_225] : memref<1x4x5x5x8xf32, #tpu.memory_space<vmem>>, vector<1x1x1x4x8xf32>
    %162 = vector.shape_cast %161 : vector<1x1x1x4x8xf32> to vector<4x8xf32>
    %cst_226 = arith.constant dense<0.000000e+00> : vector<4x16xf32>
    %163 = tpu.matmul %162, %13, %cst_226 {dimension_numbers = #tpu.dot_dimension_numbers<[1], [0], [0], [1], [0, 0, 1, 1], [], []>} : vector<4x8xf32>, vector<8x16xf32>, vector<4x16xf32> -> vector<4x16xf32>
    %164 = arith.addf %160, %163 : vector<4x16xf32>
    %c0_227 = arith.constant 0 : index
    %c2_228 = arith.constant 2 : index
    %c3_229 = arith.constant 3 : index
    %c1_230 = arith.constant 1 : index
    %c0_231 = arith.constant 0 : index
    %165 = vector.load %arg1[%c0_227, %c2_228, %c3_229, %c1_230, %c0_231] : memref<1x4x5x5x8xf32, #tpu.memory_space<vmem>>, vector<1x1x1x4x8xf32>
    %166 = vector.shape_cast %165 : vector<1x1x1x4x8xf32> to vector<4x8xf32>
    %cst_232 = arith.constant dense<0.000000e+00> : vector<4x16xf32>
    %167 = tpu.matmul %166, %15, %cst_232 {dimension_numbers = #tpu.dot_dimension_numbers<[1], [0], [0], [1], [0, 0, 1, 1], [], []>} : vector<4x8xf32>, vector<8x16xf32>, vector<4x16xf32> -> vector<4x16xf32>
    %168 = arith.addf %164, %167 : vector<4x16xf32>
    %c0_233 = arith.constant 0 : index
    %c0_234 = arith.constant 0 : index
    %c4_235 = arith.constant 4 : index
    %c0_236 = arith.constant 0 : index
    %c0_237 = arith.constant 0 : index
    %169 = vector.load %arg1[%c0_233, %c0_234, %c4_235, %c0_236, %c0_237] : memref<1x4x5x5x8xf32, #tpu.memory_space<vmem>>, vector<1x1x1x4x8xf32>
    %170 = vector.shape_cast %169 : vector<1x1x1x4x8xf32> to vector<4x8xf32>
    %cst_238 = arith.constant dense<0.000000e+00> : vector<4x16xf32>
    %171 = tpu.matmul %170, %17, %cst_238 {dimension_numbers = #tpu.dot_dimension_numbers<[1], [0], [0], [1], [0, 0, 1, 1], [], []>} : vector<4x8xf32>, vector<8x16xf32>, vector<4x16xf32> -> vector<4x16xf32>
    %172 = arith.addf %168, %171 : vector<4x16xf32>
    %c0_239 = arith.constant 0 : index
    %c1_240 = arith.constant 1 : index
    %c4_241 = arith.constant 4 : index
    %c0_242 = arith.constant 0 : index
    %c0_243 = arith.constant 0 : index
    %173 = vector.load %arg1[%c0_239, %c1_240, %c4_241, %c0_242, %c0_243] : memref<1x4x5x5x8xf32, #tpu.memory_space<vmem>>, vector<1x1x1x4x8xf32>
    %174 = vector.shape_cast %173 : vector<1x1x1x4x8xf32> to vector<4x8xf32>
    %cst_244 = arith.constant dense<0.000000e+00> : vector<4x16xf32>
    %175 = tpu.matmul %174, %19, %cst_244 {dimension_numbers = #tpu.dot_dimension_numbers<[1], [0], [0], [1], [0, 0, 1, 1], [], []>} : vector<4x8xf32>, vector<8x16xf32>, vector<4x16xf32> -> vector<4x16xf32>
    %176 = arith.addf %172, %175 : vector<4x16xf32>
    %c0_245 = arith.constant 0 : index
    %c0_246 = arith.constant 0 : index
    %c4_247 = arith.constant 4 : index
    %c1_248 = arith.constant 1 : index
    %c0_249 = arith.constant 0 : index
    %177 = vector.load %arg1[%c0_245, %c0_246, %c4_247, %c1_248, %c0_249] : memref<1x4x5x5x8xf32, #tpu.memory_space<vmem>>, vector<1x1x1x4x8xf32>
    %178 = vector.shape_cast %177 : vector<1x1x1x4x8xf32> to vector<4x8xf32>
    %cst_250 = arith.constant dense<0.000000e+00> : vector<4x16xf32>
    %179 = tpu.matmul %178, %21, %cst_250 {dimension_numbers = #tpu.dot_dimension_numbers<[1], [0], [0], [1], [0, 0, 1, 1], [], []>} : vector<4x8xf32>, vector<8x16xf32>, vector<4x16xf32> -> vector<4x16xf32>
    %180 = arith.addf %176, %179 : vector<4x16xf32>
    %cst_251 = arith.constant 0.000000e+00 : f32
    %181 = vector.broadcast %cst_251 : f32 to vector<4x16xf32>
    %182 = arith.maximumf %180, %181 : vector<4x16xf32>
    %c0_252 = arith.constant 0 : index
    %c3_253 = arith.constant 3 : index
    %c0_254 = arith.constant 0 : index
    %c0_255 = arith.constant 0 : index
    %183 = vector.load %arg4[%c0_252, %c3_253, %c0_254, %c0_255] : memref<1x4x4x16xf32, #tpu.memory_space<vmem>>, vector<1x1x4x16xf32>
    %184 = vector.shape_cast %183 : vector<1x1x4x16xf32> to vector<4x16xf32>
    %185 = vector.shape_cast %182 : vector<4x16xf32> to vector<1x1x4x16xf32>
    tpu.vector_store %arg4[%c0_252, %c3_253, %c0_254, %c0_255], %185 {strides = array<i32>} : memref<1x4x4x16xf32, #tpu.memory_space<vmem>>, vector<1x1x4x16xf32>,
    return
  }
  func.func @transform_0(%arg0: i32) -> (i32, i32, i32, i32, i32) {
    %c0_i32 = arith.constant 0 : i32
    %c0_i32_0 = arith.constant 0 : i32
    %c0_i32_1 = arith.constant 0 : i32
    %c0_i32_2 = arith.constant 0 : i32
    %c0_i32_3 = arith.constant 0 : i32
    return %arg0, %c0_i32, %c0_i32_0, %c0_i32_1, %c0_i32_2 : i32, i32, i32, i32, i32
  }
  func.func @transform_1(%arg0: i32) -> (i32, i32, i32) {
    %c0_i32 = arith.constant 0 : i32
    %c0_i32_0 = arith.constant 0 : i32
    %c0_i32_1 = arith.constant 0 : i32
    %c0_i32_2 = arith.constant 0 : i32
    return %c0_i32, %c0_i32_0, %c0_i32_1 : i32, i32, i32
  }
  func.func @transform_2(%arg0: i32) -> (i32, i32) {
    %c0_i32 = arith.constant 0 : i32
    %c0_i32_0 = arith.constant 0 : i32
    %c0_i32_1 = arith.constant 0 : i32
    return %c0_i32, %c0_i32_0 : i32, i32
  }
  func.func @transform_3(%arg0: i32) -> (i32, i32, i32, i32) {
    %c0_i32 = arith.constant 0 : i32
    %c0_i32_0 = arith.constant 0 : i32
    %c0_i32_1 = arith.constant 0 : i32
    %c0_i32_2 = arith.constant 0 : i32
    return %arg0, %c0_i32, %c0_i32_0, %c0_i32_1 : i32, i32, i32, i32
  }
}

module attributes {stable_mosaic.version = 11 : i64} {
  func.func @_conv3x3_tap_kernel(%arg0: i32, %arg1: memref<1x4x2x2x32xf32, #tpu.memory_space<vmem>>, %arg2: memref<9x32x64xf32, #tpu.memory_space<vmem>>, %arg3: memref<1x64xf32, #tpu.memory_space<vmem>>, %arg4: memref<1x1x1x64xf32, #tpu.memory_space<vmem>>) attributes {dimension_semantics = [#tpu.dimension_semantics<parallel>], iteration_bounds = array<i64: 2>, scalar_prefetch = 0 : i64, scratch_operands = 0 : i64, tpu.core_type = #tpu.core_type<tc>, window_params = [{transform_indices = @transform_0, window_bounds = array<i64: 1, 4, 2, 2, 32>}, {pipeline_mode = #tpu.pipeline_mode<synchronous>, transform_indices = @transform_1, window_bounds = array<i64: 9, 32, 64>}, {pipeline_mode = #tpu.pipeline_mode<synchronous>, transform_indices = @transform_2, window_bounds = array<i64: 1, 64>}, {transform_indices = @transform_3, window_bounds = array<i64: 1, 1, 1, 64>}]} {
    %cst = arith.constant 0.000000e+00 : f32
    %0 = vector.broadcast %cst : f32 to vector<1x64xf32>
    %c0 = arith.constant 0 : index
    %c0_0 = arith.constant 0 : index
    %1 = vector.load %arg3[%c0, %c0_0] : memref<1x64xf32, #tpu.memory_space<vmem>>, vector<1x64xf32>
    %2 = arith.addf %0, %1 : vector<1x64xf32>
    %c0_1 = arith.constant 0 : index
    %c0_2 = arith.constant 0 : index
    %c0_3 = arith.constant 0 : index
    %3 = vector.load %arg2[%c0_1, %c0_2, %c0_3] : memref<9x32x64xf32, #tpu.memory_space<vmem>>, vector<1x32x64xf32>
    %4 = vector.shape_cast %3 : vector<1x32x64xf32> to vector<32x64xf32>
    %c1 = arith.constant 1 : index
    %c0_4 = arith.constant 0 : index
    %c0_5 = arith.constant 0 : index
    %5 = vector.load %arg2[%c1, %c0_4, %c0_5] : memref<9x32x64xf32, #tpu.memory_space<vmem>>, vector<1x32x64xf32>
    %6 = vector.shape_cast %5 : vector<1x32x64xf32> to vector<32x64xf32>
    %c2 = arith.constant 2 : index
    %c0_6 = arith.constant 0 : index
    %c0_7 = arith.constant 0 : index
    %7 = vector.load %arg2[%c2, %c0_6, %c0_7] : memref<9x32x64xf32, #tpu.memory_space<vmem>>, vector<1x32x64xf32>
    %8 = vector.shape_cast %7 : vector<1x32x64xf32> to vector<32x64xf32>
    %c3 = arith.constant 3 : index
    %c0_8 = arith.constant 0 : index
    %c0_9 = arith.constant 0 : index
    %9 = vector.load %arg2[%c3, %c0_8, %c0_9] : memref<9x32x64xf32, #tpu.memory_space<vmem>>, vector<1x32x64xf32>
    %10 = vector.shape_cast %9 : vector<1x32x64xf32> to vector<32x64xf32>
    %c4 = arith.constant 4 : index
    %c0_10 = arith.constant 0 : index
    %c0_11 = arith.constant 0 : index
    %11 = vector.load %arg2[%c4, %c0_10, %c0_11] : memref<9x32x64xf32, #tpu.memory_space<vmem>>, vector<1x32x64xf32>
    %12 = vector.shape_cast %11 : vector<1x32x64xf32> to vector<32x64xf32>
    %c5 = arith.constant 5 : index
    %c0_12 = arith.constant 0 : index
    %c0_13 = arith.constant 0 : index
    %13 = vector.load %arg2[%c5, %c0_12, %c0_13] : memref<9x32x64xf32, #tpu.memory_space<vmem>>, vector<1x32x64xf32>
    %14 = vector.shape_cast %13 : vector<1x32x64xf32> to vector<32x64xf32>
    %c6 = arith.constant 6 : index
    %c0_14 = arith.constant 0 : index
    %c0_15 = arith.constant 0 : index
    %15 = vector.load %arg2[%c6, %c0_14, %c0_15] : memref<9x32x64xf32, #tpu.memory_space<vmem>>, vector<1x32x64xf32>
    %16 = vector.shape_cast %15 : vector<1x32x64xf32> to vector<32x64xf32>
    %c7 = arith.constant 7 : index
    %c0_16 = arith.constant 0 : index
    %c0_17 = arith.constant 0 : index
    %17 = vector.load %arg2[%c7, %c0_16, %c0_17] : memref<9x32x64xf32, #tpu.memory_space<vmem>>, vector<1x32x64xf32>
    %18 = vector.shape_cast %17 : vector<1x32x64xf32> to vector<32x64xf32>
    %c8 = arith.constant 8 : index
    %c0_18 = arith.constant 0 : index
    %c0_19 = arith.constant 0 : index
    %19 = vector.load %arg2[%c8, %c0_18, %c0_19] : memref<9x32x64xf32, #tpu.memory_space<vmem>>, vector<1x32x64xf32>
    %20 = vector.shape_cast %19 : vector<1x32x64xf32> to vector<32x64xf32>
    %c0_20 = arith.constant 0 : index
    %c0_21 = arith.constant 0 : index
    %c0_22 = arith.constant 0 : index
    %c0_23 = arith.constant 0 : index
    %c0_24 = arith.constant 0 : index
    %21 = vector.load %arg1[%c0_20, %c0_21, %c0_22, %c0_23, %c0_24] : memref<1x4x2x2x32xf32, #tpu.memory_space<vmem>>, vector<1x1x1x1x32xf32>
    %22 = vector.shape_cast %21 : vector<1x1x1x1x32xf32> to vector<1x32xf32>
    %cst_25 = arith.constant dense<0.000000e+00> : vector<1x64xf32>
    %23 = tpu.matmul %22, %4, %cst_25 {dimension_numbers = #tpu.dot_dimension_numbers<[1], [0], [0], [1], [0, 0, 1, 1], [], []>} : vector<1x32xf32>, vector<32x64xf32>, vector<1x64xf32> -> vector<1x64xf32>
    %24 = arith.addf %2, %23 : vector<1x64xf32>
    %c0_26 = arith.constant 0 : index
    %c1_27 = arith.constant 1 : index
    %c0_28 = arith.constant 0 : index
    %c0_29 = arith.constant 0 : index
    %c0_30 = arith.constant 0 : index
    %25 = vector.load %arg1[%c0_26, %c1_27, %c0_28, %c0_29, %c0_30] : memref<1x4x2x2x32xf32, #tpu.memory_space<vmem>>, vector<1x1x1x1x32xf32>
    %26 = vector.shape_cast %25 : vector<1x1x1x1x32xf32> to vector<1x32xf32>
    %cst_31 = arith.constant dense<0.000000e+00> : vector<1x64xf32>
    %27 = tpu.matmul %26, %6, %cst_31 {dimension_numbers = #tpu.dot_dimension_numbers<[1], [0], [0], [1], [0, 0, 1, 1], [], []>} : vector<1x32xf32>, vector<32x64xf32>, vector<1x64xf32> -> vector<1x64xf32>
    %28 = arith.addf %24, %27 : vector<1x64xf32>
    %c0_32 = arith.constant 0 : index
    %c0_33 = arith.constant 0 : index
    %c0_34 = arith.constant 0 : index
    %c1_35 = arith.constant 1 : index
    %c0_36 = arith.constant 0 : index
    %29 = vector.load %arg1[%c0_32, %c0_33, %c0_34, %c1_35, %c0_36] : memref<1x4x2x2x32xf32, #tpu.memory_space<vmem>>, vector<1x1x1x1x32xf32>
    %30 = vector.shape_cast %29 : vector<1x1x1x1x32xf32> to vector<1x32xf32>
    %cst_37 = arith.constant dense<0.000000e+00> : vector<1x64xf32>
    %31 = tpu.matmul %30, %8, %cst_37 {dimension_numbers = #tpu.dot_dimension_numbers<[1], [0], [0], [1], [0, 0, 1, 1], [], []>} : vector<1x32xf32>, vector<32x64xf32>, vector<1x64xf32> -> vector<1x64xf32>
    %32 = arith.addf %28, %31 : vector<1x64xf32>
    %c0_38 = arith.constant 0 : index
    %c2_39 = arith.constant 2 : index
    %c0_40 = arith.constant 0 : index
    %c0_41 = arith.constant 0 : index
    %c0_42 = arith.constant 0 : index
    %33 = vector.load %arg1[%c0_38, %c2_39, %c0_40, %c0_41, %c0_42] : memref<1x4x2x2x32xf32, #tpu.memory_space<vmem>>, vector<1x1x1x1x32xf32>
    %34 = vector.shape_cast %33 : vector<1x1x1x1x32xf32> to vector<1x32xf32>
    %cst_43 = arith.constant dense<0.000000e+00> : vector<1x64xf32>
    %35 = tpu.matmul %34, %10, %cst_43 {dimension_numbers = #tpu.dot_dimension_numbers<[1], [0], [0], [1], [0, 0, 1, 1], [], []>} : vector<1x32xf32>, vector<32x64xf32>, vector<1x64xf32> -> vector<1x64xf32>
    %36 = arith.addf %32, %35 : vector<1x64xf32>
    %c0_44 = arith.constant 0 : index
    %c3_45 = arith.constant 3 : index
    %c0_46 = arith.constant 0 : index
    %c0_47 = arith.constant 0 : index
    %c0_48 = arith.constant 0 : index
    %37 = vector.load %arg1[%c0_44, %c3_45, %c0_46, %c0_47, %c0_48] : memref<1x4x2x2x32xf32, #tpu.memory_space<vmem>>, vector<1x1x1x1x32xf32>
    %38 = vector.shape_cast %37 : vector<1x1x1x1x32xf32> to vector<1x32xf32>
    %cst_49 = arith.constant dense<0.000000e+00> : vector<1x64xf32>
    %39 = tpu.matmul %38, %12, %cst_49 {dimension_numbers = #tpu.dot_dimension_numbers<[1], [0], [0], [1], [0, 0, 1, 1], [], []>} : vector<1x32xf32>, vector<32x64xf32>, vector<1x64xf32> -> vector<1x64xf32>
    %40 = arith.addf %36, %39 : vector<1x64xf32>
    %c0_50 = arith.constant 0 : index
    %c2_51 = arith.constant 2 : index
    %c0_52 = arith.constant 0 : index
    %c1_53 = arith.constant 1 : index
    %c0_54 = arith.constant 0 : index
    %41 = vector.load %arg1[%c0_50, %c2_51, %c0_52, %c1_53, %c0_54] : memref<1x4x2x2x32xf32, #tpu.memory_space<vmem>>, vector<1x1x1x1x32xf32>
    %42 = vector.shape_cast %41 : vector<1x1x1x1x32xf32> to vector<1x32xf32>
    %cst_55 = arith.constant dense<0.000000e+00> : vector<1x64xf32>
    %43 = tpu.matmul %42, %14, %cst_55 {dimension_numbers = #tpu.dot_dimension_numbers<[1], [0], [0], [1], [0, 0, 1, 1], [], []>} : vector<1x32xf32>, vector<32x64xf32>, vector<1x64xf32> -> vector<1x64xf32>
    %44 = arith.addf %40, %43 : vector<1x64xf32>
    %c0_56 = arith.constant 0 : index
    %c0_57 = arith.constant 0 : index
    %c1_58 = arith.constant 1 : index
    %c0_59 = arith.constant 0 : index
    %c0_60 = arith.constant 0 : index
    %45 = vector.load %arg1[%c0_56, %c0_57, %c1_58, %c0_59, %c0_60] : memref<1x4x2x2x32xf32, #tpu.memory_space<vmem>>, vector<1x1x1x1x32xf32>
    %46 = vector.shape_cast %45 : vector<1x1x1x1x32xf32> to vector<1x32xf32>
    %cst_61 = arith.constant dense<0.000000e+00> : vector<1x64xf32>
    %47 = tpu.matmul %46, %16, %cst_61 {dimension_numbers = #tpu.dot_dimension_numbers<[1], [0], [0], [1], [0, 0, 1, 1], [], []>} : vector<1x32xf32>, vector<32x64xf32>, vector<1x64xf32> -> vector<1x64xf32>
    %48 = arith.addf %44, %47 : vector<1x64xf32>
    %c0_62 = arith.constant 0 : index
    %c1_63 = arith.constant 1 : index
    %c1_64 = arith.constant 1 : index
    %c0_65 = arith.constant 0 : index
    %c0_66 = arith.constant 0 : index
    %49 = vector.load %arg1[%c0_62, %c1_63, %c1_64, %c0_65, %c0_66] : memref<1x4x2x2x32xf32, #tpu.memory_space<vmem>>, vector<1x1x1x1x32xf32>
    %50 = vector.shape_cast %49 : vector<1x1x1x1x32xf32> to vector<1x32xf32>
    %cst_67 = arith.constant dense<0.000000e+00> : vector<1x64xf32>
    %51 = tpu.matmul %50, %18, %cst_67 {dimension_numbers = #tpu.dot_dimension_numbers<[1], [0], [0], [1], [0, 0, 1, 1], [], []>} : vector<1x32xf32>, vector<32x64xf32>, vector<1x64xf32> -> vector<1x64xf32>
    %52 = arith.addf %48, %51 : vector<1x64xf32>
    %c0_68 = arith.constant 0 : index
    %c0_69 = arith.constant 0 : index
    %c1_70 = arith.constant 1 : index
    %c1_71 = arith.constant 1 : index
    %c0_72 = arith.constant 0 : index
    %53 = vector.load %arg1[%c0_68, %c0_69, %c1_70, %c1_71, %c0_72] : memref<1x4x2x2x32xf32, #tpu.memory_space<vmem>>, vector<1x1x1x1x32xf32>
    %54 = vector.shape_cast %53 : vector<1x1x1x1x32xf32> to vector<1x32xf32>
    %cst_73 = arith.constant dense<0.000000e+00> : vector<1x64xf32>
    %55 = tpu.matmul %54, %20, %cst_73 {dimension_numbers = #tpu.dot_dimension_numbers<[1], [0], [0], [1], [0, 0, 1, 1], [], []>} : vector<1x32xf32>, vector<32x64xf32>, vector<1x64xf32> -> vector<1x64xf32>
    %56 = arith.addf %52, %55 : vector<1x64xf32>
    %cst_74 = arith.constant 0.000000e+00 : f32
    %57 = vector.broadcast %cst_74 : f32 to vector<1x64xf32>
    %58 = arith.maximumf %56, %57 : vector<1x64xf32>
    %c0_75 = arith.constant 0 : index
    %c0_76 = arith.constant 0 : index
    %c0_77 = arith.constant 0 : index
    %c0_78 = arith.constant 0 : index
    %59 = vector.load %arg4[%c0_75, %c0_76, %c0_77, %c0_78] : memref<1x1x1x64xf32, #tpu.memory_space<vmem>>, vector<1x1x1x64xf32>
    %60 = vector.shape_cast %59 : vector<1x1x1x64xf32> to vector<1x64xf32>
    %61 = vector.shape_cast %58 : vector<1x64xf32> to vector<1x1x1x64xf32>
    tpu.vector_store %arg4[%c0_75, %c0_76, %c0_77, %c0_78], %61 {strides = array<i32>} : memref<1x1x1x64xf32, #tpu.memory_space<vmem>>, vector<1x1x1x64xf32>,
    return
  }
  func.func @transform_0(%arg0: i32) -> (i32, i32, i32, i32, i32) {
    %c0_i32 = arith.constant 0 : i32
    %c0_i32_0 = arith.constant 0 : i32
    %c0_i32_1 = arith.constant 0 : i32
    %c0_i32_2 = arith.constant 0 : i32
    %c0_i32_3 = arith.constant 0 : i32
    return %arg0, %c0_i32, %c0_i32_0, %c0_i32_1, %c0_i32_2 : i32, i32, i32, i32, i32
  }
  func.func @transform_1(%arg0: i32) -> (i32, i32, i32) {
    %c0_i32 = arith.constant 0 : i32
    %c0_i32_0 = arith.constant 0 : i32
    %c0_i32_1 = arith.constant 0 : i32
    %c0_i32_2 = arith.constant 0 : i32
    return %c0_i32, %c0_i32_0, %c0_i32_1 : i32, i32, i32
  }
  func.func @transform_2(%arg0: i32) -> (i32, i32) {
    %c0_i32 = arith.constant 0 : i32
    %c0_i32_0 = arith.constant 0 : i32
    %c0_i32_1 = arith.constant 0 : i32
    return %c0_i32, %c0_i32_0 : i32, i32
  }
  func.func @transform_3(%arg0: i32) -> (i32, i32, i32, i32) {
    %c0_i32 = arith.constant 0 : i32
    %c0_i32_0 = arith.constant 0 : i32
    %c0_i32_1 = arith.constant 0 : i32
    %c0_i32_2 = arith.constant 0 : i32
    return %arg0, %c0_i32, %c0_i32_0, %c0_i32_1 : i32, i32, i32, i32
  }
}

module attributes {stable_mosaic.version = 11 : i64} {
  func.func @_conv3x3_tap_kernel(%arg0: i32, %arg1: memref<1x4x3x3x16xf32, #tpu.memory_space<vmem>>, %arg2: memref<9x16x32xf32, #tpu.memory_space<vmem>>, %arg3: memref<1x32xf32, #tpu.memory_space<vmem>>, %arg4: memref<1x2x2x32xf32, #tpu.memory_space<vmem>>) attributes {dimension_semantics = [#tpu.dimension_semantics<parallel>], iteration_bounds = array<i64: 2>, scalar_prefetch = 0 : i64, scratch_operands = 0 : i64, tpu.core_type = #tpu.core_type<tc>, window_params = [{transform_indices = @transform_0, window_bounds = array<i64: 1, 4, 3, 3, 16>}, {pipeline_mode = #tpu.pipeline_mode<synchronous>, transform_indices = @transform_1, window_bounds = array<i64: 9, 16, 32>}, {pipeline_mode = #tpu.pipeline_mode<synchronous>, transform_indices = @transform_2, window_bounds = array<i64: 1, 32>}, {transform_indices = @transform_3, window_bounds = array<i64: 1, 2, 2, 32>}]} {
    %cst = arith.constant 0.000000e+00 : f32
    %0 = vector.broadcast %cst : f32 to vector<2x32xf32>
    %c0 = arith.constant 0 : index
    %c0_0 = arith.constant 0 : index
    %1 = vector.load %arg3[%c0, %c0_0] : memref<1x32xf32, #tpu.memory_space<vmem>>, vector<1x32xf32>
    %2 = vector.broadcast %1 : vector<1x32xf32> to vector<2x32xf32>
    %3 = arith.addf %0, %2 : vector<2x32xf32>
    %c0_1 = arith.constant 0 : index
    %c0_2 = arith.constant 0 : index
    %c0_3 = arith.constant 0 : index
    %4 = vector.load %arg2[%c0_1, %c0_2, %c0_3] : memref<9x16x32xf32, #tpu.memory_space<vmem>>, vector<1x16x32xf32>
    %5 = vector.shape_cast %4 : vector<1x16x32xf32> to vector<16x32xf32>
    %c1 = arith.constant 1 : index
    %c0_4 = arith.constant 0 : index
    %c0_5 = arith.constant 0 : index
    %6 = vector.load %arg2[%c1, %c0_4, %c0_5] : memref<9x16x32xf32, #tpu.memory_space<vmem>>, vector<1x16x32xf32>
    %7 = vector.shape_cast %6 : vector<1x16x32xf32> to vector<16x32xf32>
    %c2 = arith.constant 2 : index
    %c0_6 = arith.constant 0 : index
    %c0_7 = arith.constant 0 : index
    %8 = vector.load %arg2[%c2, %c0_6, %c0_7] : memref<9x16x32xf32, #tpu.memory_space<vmem>>, vector<1x16x32xf32>
    %9 = vector.shape_cast %8 : vector<1x16x32xf32> to vector<16x32xf32>
    %c3 = arith.constant 3 : index
    %c0_8 = arith.constant 0 : index
    %c0_9 = arith.constant 0 : index
    %10 = vector.load %arg2[%c3, %c0_8, %c0_9] : memref<9x16x32xf32, #tpu.memory_space<vmem>>, vector<1x16x32xf32>
    %11 = vector.shape_cast %10 : vector<1x16x32xf32> to vector<16x32xf32>
    %c4 = arith.constant 4 : index
    %c0_10 = arith.constant 0 : index
    %c0_11 = arith.constant 0 : index
    %12 = vector.load %arg2[%c4, %c0_10, %c0_11] : memref<9x16x32xf32, #tpu.memory_space<vmem>>, vector<1x16x32xf32>
    %13 = vector.shape_cast %12 : vector<1x16x32xf32> to vector<16x32xf32>
    %c5 = arith.constant 5 : index
    %c0_12 = arith.constant 0 : index
    %c0_13 = arith.constant 0 : index
    %14 = vector.load %arg2[%c5, %c0_12, %c0_13] : memref<9x16x32xf32, #tpu.memory_space<vmem>>, vector<1x16x32xf32>
    %15 = vector.shape_cast %14 : vector<1x16x32xf32> to vector<16x32xf32>
    %c6 = arith.constant 6 : index
    %c0_14 = arith.constant 0 : index
    %c0_15 = arith.constant 0 : index
    %16 = vector.load %arg2[%c6, %c0_14, %c0_15] : memref<9x16x32xf32, #tpu.memory_space<vmem>>, vector<1x16x32xf32>
    %17 = vector.shape_cast %16 : vector<1x16x32xf32> to vector<16x32xf32>
    %c7 = arith.constant 7 : index
    %c0_16 = arith.constant 0 : index
    %c0_17 = arith.constant 0 : index
    %18 = vector.load %arg2[%c7, %c0_16, %c0_17] : memref<9x16x32xf32, #tpu.memory_space<vmem>>, vector<1x16x32xf32>
    %19 = vector.shape_cast %18 : vector<1x16x32xf32> to vector<16x32xf32>
    %c8 = arith.constant 8 : index
    %c0_18 = arith.constant 0 : index
    %c0_19 = arith.constant 0 : index
    %20 = vector.load %arg2[%c8, %c0_18, %c0_19] : memref<9x16x32xf32, #tpu.memory_space<vmem>>, vector<1x16x32xf32>
    %21 = vector.shape_cast %20 : vector<1x16x32xf32> to vector<16x32xf32>
    %c0_20 = arith.constant 0 : index
    %c0_21 = arith.constant 0 : index
    %c0_22 = arith.constant 0 : index
    %c0_23 = arith.constant 0 : index
    %c0_24 = arith.constant 0 : index
    %22 = vector.load %arg1[%c0_20, %c0_21, %c0_22, %c0_23, %c0_24] : memref<1x4x3x3x16xf32, #tpu.memory_space<vmem>>, vector<1x1x1x2x16xf32>
    %23 = vector.shape_cast %22 : vector<1x1x1x2x16xf32> to vector<2x16xf32>
    %cst_25 = arith.constant dense<0.000000e+00> : vector<2x32xf32>
    %24 = tpu.matmul %23, %5, %cst_25 {dimension_numbers = #tpu.dot_dimension_numbers<[1], [0], [0], [1], [0, 0, 1, 1], [], []>} : vector<2x16xf32>, vector<16x32xf32>, vector<2x32xf32> -> vector<2x32xf32>
    %25 = arith.addf %3, %24 : vector<2x32xf32>
    %c0_26 = arith.constant 0 : index
    %c1_27 = arith.constant 1 : index
    %c0_28 = arith.constant 0 : index
    %c0_29 = arith.constant 0 : index
    %c0_30 = arith.constant 0 : index
    %26 = vector.load %arg1[%c0_26, %c1_27, %c0_28, %c0_29, %c0_30] : memref<1x4x3x3x16xf32, #tpu.memory_space<vmem>>, vector<1x1x1x2x16xf32>
    %27 = vector.shape_cast %26 : vector<1x1x1x2x16xf32> to vector<2x16xf32>
    %cst_31 = arith.constant dense<0.000000e+00> : vector<2x32xf32>
    %28 = tpu.matmul %27, %7, %cst_31 {dimension_numbers = #tpu.dot_dimension_numbers<[1], [0], [0], [1], [0, 0, 1, 1], [], []>} : vector<2x16xf32>, vector<16x32xf32>, vector<2x32xf32> -> vector<2x32xf32>
    %29 = arith.addf %25, %28 : vector<2x32xf32>
    %c0_32 = arith.constant 0 : index
    %c0_33 = arith.constant 0 : index
    %c0_34 = arith.constant 0 : index
    %c1_35 = arith.constant 1 : index
    %c0_36 = arith.constant 0 : index
    %30 = vector.load %arg1[%c0_32, %c0_33, %c0_34, %c1_35, %c0_36] : memref<1x4x3x3x16xf32, #tpu.memory_space<vmem>>, vector<1x1x1x2x16xf32>
    %31 = vector.shape_cast %30 : vector<1x1x1x2x16xf32> to vector<2x16xf32>
    %cst_37 = arith.constant dense<0.000000e+00> : vector<2x32xf32>
    %32 = tpu.matmul %31, %9, %cst_37 {dimension_numbers = #tpu.dot_dimension_numbers<[1], [0], [0], [1], [0, 0, 1, 1], [], []>} : vector<2x16xf32>, vector<16x32xf32>, vector<2x32xf32> -> vector<2x32xf32>
    %33 = arith.addf %29, %32 : vector<2x32xf32>
    %c0_38 = arith.constant 0 : index
    %c2_39 = arith.constant 2 : index
    %c0_40 = arith.constant 0 : index
    %c0_41 = arith.constant 0 : index
    %c0_42 = arith.constant 0 : index
    %34 = vector.load %arg1[%c0_38, %c2_39, %c0_40, %c0_41, %c0_42] : memref<1x4x3x3x16xf32, #tpu.memory_space<vmem>>, vector<1x1x1x2x16xf32>
    %35 = vector.shape_cast %34 : vector<1x1x1x2x16xf32> to vector<2x16xf32>
    %cst_43 = arith.constant dense<0.000000e+00> : vector<2x32xf32>
    %36 = tpu.matmul %35, %11, %cst_43 {dimension_numbers = #tpu.dot_dimension_numbers<[1], [0], [0], [1], [0, 0, 1, 1], [], []>} : vector<2x16xf32>, vector<16x32xf32>, vector<2x32xf32> -> vector<2x32xf32>
    %37 = arith.addf %33, %36 : vector<2x32xf32>
    %c0_44 = arith.constant 0 : index
    %c3_45 = arith.constant 3 : index
    %c0_46 = arith.constant 0 : index
    %c0_47 = arith.constant 0 : index
    %c0_48 = arith.constant 0 : index
    %38 = vector.load %arg1[%c0_44, %c3_45, %c0_46, %c0_47, %c0_48] : memref<1x4x3x3x16xf32, #tpu.memory_space<vmem>>, vector<1x1x1x2x16xf32>
    %39 = vector.shape_cast %38 : vector<1x1x1x2x16xf32> to vector<2x16xf32>
    %cst_49 = arith.constant dense<0.000000e+00> : vector<2x32xf32>
    %40 = tpu.matmul %39, %13, %cst_49 {dimension_numbers = #tpu.dot_dimension_numbers<[1], [0], [0], [1], [0, 0, 1, 1], [], []>} : vector<2x16xf32>, vector<16x32xf32>, vector<2x32xf32> -> vector<2x32xf32>
    %41 = arith.addf %37, %40 : vector<2x32xf32>
    %c0_50 = arith.constant 0 : index
    %c2_51 = arith.constant 2 : index
    %c0_52 = arith.constant 0 : index
    %c1_53 = arith.constant 1 : index
    %c0_54 = arith.constant 0 : index
    %42 = vector.load %arg1[%c0_50, %c2_51, %c0_52, %c1_53, %c0_54] : memref<1x4x3x3x16xf32, #tpu.memory_space<vmem>>, vector<1x1x1x2x16xf32>
    %43 = vector.shape_cast %42 : vector<1x1x1x2x16xf32> to vector<2x16xf32>
    %cst_55 = arith.constant dense<0.000000e+00> : vector<2x32xf32>
    %44 = tpu.matmul %43, %15, %cst_55 {dimension_numbers = #tpu.dot_dimension_numbers<[1], [0], [0], [1], [0, 0, 1, 1], [], []>} : vector<2x16xf32>, vector<16x32xf32>, vector<2x32xf32> -> vector<2x32xf32>
    %45 = arith.addf %41, %44 : vector<2x32xf32>
    %c0_56 = arith.constant 0 : index
    %c0_57 = arith.constant 0 : index
    %c1_58 = arith.constant 1 : index
    %c0_59 = arith.constant 0 : index
    %c0_60 = arith.constant 0 : index
    %46 = vector.load %arg1[%c0_56, %c0_57, %c1_58, %c0_59, %c0_60] : memref<1x4x3x3x16xf32, #tpu.memory_space<vmem>>, vector<1x1x1x2x16xf32>
    %47 = vector.shape_cast %46 : vector<1x1x1x2x16xf32> to vector<2x16xf32>
    %cst_61 = arith.constant dense<0.000000e+00> : vector<2x32xf32>
    %48 = tpu.matmul %47, %17, %cst_61 {dimension_numbers = #tpu.dot_dimension_numbers<[1], [0], [0], [1], [0, 0, 1, 1], [], []>} : vector<2x16xf32>, vector<16x32xf32>, vector<2x32xf32> -> vector<2x32xf32>
    %49 = arith.addf %45, %48 : vector<2x32xf32>
    %c0_62 = arith.constant 0 : index
    %c1_63 = arith.constant 1 : index
    %c1_64 = arith.constant 1 : index
    %c0_65 = arith.constant 0 : index
    %c0_66 = arith.constant 0 : index
    %50 = vector.load %arg1[%c0_62, %c1_63, %c1_64, %c0_65, %c0_66] : memref<1x4x3x3x16xf32, #tpu.memory_space<vmem>>, vector<1x1x1x2x16xf32>
    %51 = vector.shape_cast %50 : vector<1x1x1x2x16xf32> to vector<2x16xf32>
    %cst_67 = arith.constant dense<0.000000e+00> : vector<2x32xf32>
    %52 = tpu.matmul %51, %19, %cst_67 {dimension_numbers = #tpu.dot_dimension_numbers<[1], [0], [0], [1], [0, 0, 1, 1], [], []>} : vector<2x16xf32>, vector<16x32xf32>, vector<2x32xf32> -> vector<2x32xf32>
    %53 = arith.addf %49, %52 : vector<2x32xf32>
    %c0_68 = arith.constant 0 : index
    %c0_69 = arith.constant 0 : index
    %c1_70 = arith.constant 1 : index
    %c1_71 = arith.constant 1 : index
    %c0_72 = arith.constant 0 : index
    %54 = vector.load %arg1[%c0_68, %c0_69, %c1_70, %c1_71, %c0_72] : memref<1x4x3x3x16xf32, #tpu.memory_space<vmem>>, vector<1x1x1x2x16xf32>
    %55 = vector.shape_cast %54 : vector<1x1x1x2x16xf32> to vector<2x16xf32>
    %cst_73 = arith.constant dense<0.000000e+00> : vector<2x32xf32>
    %56 = tpu.matmul %55, %21, %cst_73 {dimension_numbers = #tpu.dot_dimension_numbers<[1], [0], [0], [1], [0, 0, 1, 1], [], []>} : vector<2x16xf32>, vector<16x32xf32>, vector<2x32xf32> -> vector<2x32xf32>
    %57 = arith.addf %53, %56 : vector<2x32xf32>
    %cst_74 = arith.constant 0.000000e+00 : f32
    %58 = vector.broadcast %cst_74 : f32 to vector<2x32xf32>
    %59 = arith.maximumf %57, %58 : vector<2x32xf32>
    %c0_75 = arith.constant 0 : index
    %c0_76 = arith.constant 0 : index
    %c0_77 = arith.constant 0 : index
    %c0_78 = arith.constant 0 : index
    %60 = vector.load %arg4[%c0_75, %c0_76, %c0_77, %c0_78] : memref<1x2x2x32xf32, #tpu.memory_space<vmem>>, vector<1x1x2x32xf32>
    %61 = vector.shape_cast %60 : vector<1x1x2x32xf32> to vector<2x32xf32>
    %62 = vector.shape_cast %59 : vector<2x32xf32> to vector<1x1x2x32xf32>
    tpu.vector_store %arg4[%c0_75, %c0_76, %c0_77, %c0_78], %62 {strides = array<i32>} : memref<1x2x2x32xf32, #tpu.memory_space<vmem>>, vector<1x1x2x32xf32>,
    %c0_79 = arith.constant 0 : index
    %c0_80 = arith.constant 0 : index
    %c1_81 = arith.constant 1 : index
    %c0_82 = arith.constant 0 : index
    %c0_83 = arith.constant 0 : index
    %63 = vector.load %arg1[%c0_79, %c0_80, %c1_81, %c0_82, %c0_83] : memref<1x4x3x3x16xf32, #tpu.memory_space<vmem>>, vector<1x1x1x2x16xf32>
    %64 = vector.shape_cast %63 : vector<1x1x1x2x16xf32> to vector<2x16xf32>
    %cst_84 = arith.constant dense<0.000000e+00> : vector<2x32xf32>
    %65 = tpu.matmul %64, %5, %cst_84 {dimension_numbers = #tpu.dot_dimension_numbers<[1], [0], [0], [1], [0, 0, 1, 1], [], []>} : vector<2x16xf32>, vector<16x32xf32>, vector<2x32xf32> -> vector<2x32xf32>
    %66 = arith.addf %3, %65 : vector<2x32xf32>
    %c0_85 = arith.constant 0 : index
    %c1_86 = arith.constant 1 : index
    %c1_87 = arith.constant 1 : index
    %c0_88 = arith.constant 0 : index
    %c0_89 = arith.constant 0 : index
    %67 = vector.load %arg1[%c0_85, %c1_86, %c1_87, %c0_88, %c0_89] : memref<1x4x3x3x16xf32, #tpu.memory_space<vmem>>, vector<1x1x1x2x16xf32>
    %68 = vector.shape_cast %67 : vector<1x1x1x2x16xf32> to vector<2x16xf32>
    %cst_90 = arith.constant dense<0.000000e+00> : vector<2x32xf32>
    %69 = tpu.matmul %68, %7, %cst_90 {dimension_numbers = #tpu.dot_dimension_numbers<[1], [0], [0], [1], [0, 0, 1, 1], [], []>} : vector<2x16xf32>, vector<16x32xf32>, vector<2x32xf32> -> vector<2x32xf32>
    %70 = arith.addf %66, %69 : vector<2x32xf32>
    %c0_91 = arith.constant 0 : index
    %c0_92 = arith.constant 0 : index
    %c1_93 = arith.constant 1 : index
    %c1_94 = arith.constant 1 : index
    %c0_95 = arith.constant 0 : index
    %71 = vector.load %arg1[%c0_91, %c0_92, %c1_93, %c1_94, %c0_95] : memref<1x4x3x3x16xf32, #tpu.memory_space<vmem>>, vector<1x1x1x2x16xf32>
    %72 = vector.shape_cast %71 : vector<1x1x1x2x16xf32> to vector<2x16xf32>
    %cst_96 = arith.constant dense<0.000000e+00> : vector<2x32xf32>
    %73 = tpu.matmul %72, %9, %cst_96 {dimension_numbers = #tpu.dot_dimension_numbers<[1], [0], [0], [1], [0, 0, 1, 1], [], []>} : vector<2x16xf32>, vector<16x32xf32>, vector<2x32xf32> -> vector<2x32xf32>
    %74 = arith.addf %70, %73 : vector<2x32xf32>
    %c0_97 = arith.constant 0 : index
    %c2_98 = arith.constant 2 : index
    %c1_99 = arith.constant 1 : index
    %c0_100 = arith.constant 0 : index
    %c0_101 = arith.constant 0 : index
    %75 = vector.load %arg1[%c0_97, %c2_98, %c1_99, %c0_100, %c0_101] : memref<1x4x3x3x16xf32, #tpu.memory_space<vmem>>, vector<1x1x1x2x16xf32>
    %76 = vector.shape_cast %75 : vector<1x1x1x2x16xf32> to vector<2x16xf32>
    %cst_102 = arith.constant dense<0.000000e+00> : vector<2x32xf32>
    %77 = tpu.matmul %76, %11, %cst_102 {dimension_numbers = #tpu.dot_dimension_numbers<[1], [0], [0], [1], [0, 0, 1, 1], [], []>} : vector<2x16xf32>, vector<16x32xf32>, vector<2x32xf32> -> vector<2x32xf32>
    %78 = arith.addf %74, %77 : vector<2x32xf32>
    %c0_103 = arith.constant 0 : index
    %c3_104 = arith.constant 3 : index
    %c1_105 = arith.constant 1 : index
    %c0_106 = arith.constant 0 : index
    %c0_107 = arith.constant 0 : index
    %79 = vector.load %arg1[%c0_103, %c3_104, %c1_105, %c0_106, %c0_107] : memref<1x4x3x3x16xf32, #tpu.memory_space<vmem>>, vector<1x1x1x2x16xf32>
    %80 = vector.shape_cast %79 : vector<1x1x1x2x16xf32> to vector<2x16xf32>
    %cst_108 = arith.constant dense<0.000000e+00> : vector<2x32xf32>
    %81 = tpu.matmul %80, %13, %cst_108 {dimension_numbers = #tpu.dot_dimension_numbers<[1], [0], [0], [1], [0, 0, 1, 1], [], []>} : vector<2x16xf32>, vector<16x32xf32>, vector<2x32xf32> -> vector<2x32xf32>
    %82 = arith.addf %78, %81 : vector<2x32xf32>
    %c0_109 = arith.constant 0 : index
    %c2_110 = arith.constant 2 : index
    %c1_111 = arith.constant 1 : index
    %c1_112 = arith.constant 1 : index
    %c0_113 = arith.constant 0 : index
    %83 = vector.load %arg1[%c0_109, %c2_110, %c1_111, %c1_112, %c0_113] : memref<1x4x3x3x16xf32, #tpu.memory_space<vmem>>, vector<1x1x1x2x16xf32>
    %84 = vector.shape_cast %83 : vector<1x1x1x2x16xf32> to vector<2x16xf32>
    %cst_114 = arith.constant dense<0.000000e+00> : vector<2x32xf32>
    %85 = tpu.matmul %84, %15, %cst_114 {dimension_numbers = #tpu.dot_dimension_numbers<[1], [0], [0], [1], [0, 0, 1, 1], [], []>} : vector<2x16xf32>, vector<16x32xf32>, vector<2x32xf32> -> vector<2x32xf32>
    %86 = arith.addf %82, %85 : vector<2x32xf32>
    %c0_115 = arith.constant 0 : index
    %c0_116 = arith.constant 0 : index
    %c2_117 = arith.constant 2 : index
    %c0_118 = arith.constant 0 : index
    %c0_119 = arith.constant 0 : index
    %87 = vector.load %arg1[%c0_115, %c0_116, %c2_117, %c0_118, %c0_119] : memref<1x4x3x3x16xf32, #tpu.memory_space<vmem>>, vector<1x1x1x2x16xf32>
    %88 = vector.shape_cast %87 : vector<1x1x1x2x16xf32> to vector<2x16xf32>
    %cst_120 = arith.constant dense<0.000000e+00> : vector<2x32xf32>
    %89 = tpu.matmul %88, %17, %cst_120 {dimension_numbers = #tpu.dot_dimension_numbers<[1], [0], [0], [1], [0, 0, 1, 1], [], []>} : vector<2x16xf32>, vector<16x32xf32>, vector<2x32xf32> -> vector<2x32xf32>
    %90 = arith.addf %86, %89 : vector<2x32xf32>
    %c0_121 = arith.constant 0 : index
    %c1_122 = arith.constant 1 : index
    %c2_123 = arith.constant 2 : index
    %c0_124 = arith.constant 0 : index
    %c0_125 = arith.constant 0 : index
    %91 = vector.load %arg1[%c0_121, %c1_122, %c2_123, %c0_124, %c0_125] : memref<1x4x3x3x16xf32, #tpu.memory_space<vmem>>, vector<1x1x1x2x16xf32>
    %92 = vector.shape_cast %91 : vector<1x1x1x2x16xf32> to vector<2x16xf32>
    %cst_126 = arith.constant dense<0.000000e+00> : vector<2x32xf32>
    %93 = tpu.matmul %92, %19, %cst_126 {dimension_numbers = #tpu.dot_dimension_numbers<[1], [0], [0], [1], [0, 0, 1, 1], [], []>} : vector<2x16xf32>, vector<16x32xf32>, vector<2x32xf32> -> vector<2x32xf32>
    %94 = arith.addf %90, %93 : vector<2x32xf32>
    %c0_127 = arith.constant 0 : index
    %c0_128 = arith.constant 0 : index
    %c2_129 = arith.constant 2 : index
    %c1_130 = arith.constant 1 : index
    %c0_131 = arith.constant 0 : index
    %95 = vector.load %arg1[%c0_127, %c0_128, %c2_129, %c1_130, %c0_131] : memref<1x4x3x3x16xf32, #tpu.memory_space<vmem>>, vector<1x1x1x2x16xf32>
    %96 = vector.shape_cast %95 : vector<1x1x1x2x16xf32> to vector<2x16xf32>
    %cst_132 = arith.constant dense<0.000000e+00> : vector<2x32xf32>
    %97 = tpu.matmul %96, %21, %cst_132 {dimension_numbers = #tpu.dot_dimension_numbers<[1], [0], [0], [1], [0, 0, 1, 1], [], []>} : vector<2x16xf32>, vector<16x32xf32>, vector<2x32xf32> -> vector<2x32xf32>
    %98 = arith.addf %94, %97 : vector<2x32xf32>
    %cst_133 = arith.constant 0.000000e+00 : f32
    %99 = vector.broadcast %cst_133 : f32 to vector<2x32xf32>
    %100 = arith.maximumf %98, %99 : vector<2x32xf32>
    %c0_134 = arith.constant 0 : index
    %c1_135 = arith.constant 1 : index
    %c0_136 = arith.constant 0 : index
    %c0_137 = arith.constant 0 : index
    %101 = vector.load %arg4[%c0_134, %c1_135, %c0_136, %c0_137] : memref<1x2x2x32xf32, #tpu.memory_space<vmem>>, vector<1x1x2x32xf32>
    %102 = vector.shape_cast %101 : vector<1x1x2x32xf32> to vector<2x32xf32>
    %103 = vector.shape_cast %100 : vector<2x32xf32> to vector<1x1x2x32xf32>
    tpu.vector_store %arg4[%c0_134, %c1_135, %c0_136, %c0_137], %103 {strides = array<i32>} : memref<1x2x2x32xf32, #tpu.memory_space<vmem>>, vector<1x1x2x32xf32>,
    return
  }
  func.func @transform_0(%arg0: i32) -> (i32, i32, i32, i32, i32) {
    %c0_i32 = arith.constant 0 : i32
    %c0_i32_0 = arith.constant 0 : i32
    %c0_i32_1 = arith.constant 0 : i32
    %c0_i32_2 = arith.constant 0 : i32
    %c0_i32_3 = arith.constant 0 : i32
    return %arg0, %c0_i32, %c0_i32_0, %c0_i32_1, %c0_i32_2 : i32, i32, i32, i32, i32
  }
  func.func @transform_1(%arg0: i32) -> (i32, i32, i32) {
    %c0_i32 = arith.constant 0 : i32
    %c0_i32_0 = arith.constant 0 : i32
    %c0_i32_1 = arith.constant 0 : i32
    %c0_i32_2 = arith.constant 0 : i32
    return %c0_i32, %c0_i32_0, %c0_i32_1 : i32, i32, i32
  }
  func.func @transform_2(%arg0: i32) -> (i32, i32) {
    %c0_i32 = arith.constant 0 : i32
    %c0_i32_0 = arith.constant 0 : i32
    %c0_i32_1 = arith.constant 0 : i32
    return %c0_i32, %c0_i32_0 : i32, i32
  }
  func.func @transform_3(%arg0: i32) -> (i32, i32, i32, i32) {
    %c0_i32 = arith.constant 0 : i32
    %c0_i32_0 = arith.constant 0 : i32
    %c0_i32_1 = arith.constant 0 : i32
    %c0_i32_2 = arith.constant 0 : i32
    return %arg0, %c0_i32, %c0_i32_0, %c0_i32_1 : i32, i32, i32, i32
  }
}

module attributes {stable_mosaic.version = 11 : i64} {
  func.func @_conv3x3_tap_kernel(%arg0: i32, %arg1: memref<1x1x3x3x64xf32, #tpu.memory_space<vmem>>, %arg2: memref<9x64x1xf32, #tpu.memory_space<vmem>>, %arg3: memref<1x1xf32, #tpu.memory_space<vmem>>, %arg4: memref<1x1x1x1xf32, #tpu.memory_space<vmem>>) attributes {dimension_semantics = [#tpu.dimension_semantics<parallel>], iteration_bounds = array<i64: 2>, scalar_prefetch = 0 : i64, scratch_operands = 0 : i64, tpu.core_type = #tpu.core_type<tc>, window_params = [{transform_indices = @transform_0, window_bounds = array<i64: 1, 1, 3, 3, 64>}, {pipeline_mode = #tpu.pipeline_mode<synchronous>, transform_indices = @transform_1, window_bounds = array<i64: 9, 64, 1>}, {pipeline_mode = #tpu.pipeline_mode<synchronous>, transform_indices = @transform_2, window_bounds = array<i64: 1, 1>}, {transform_indices = @transform_3, window_bounds = array<i64: 1, 1, 1, 1>}]} {
    %cst = arith.constant 0.000000e+00 : f32
    %0 = vector.broadcast %cst : f32 to vector<1x1xf32>
    %c0 = arith.constant 0 : index
    %c0_0 = arith.constant 0 : index
    %1 = vector.load %arg3[%c0, %c0_0] : memref<1x1xf32, #tpu.memory_space<vmem>>, vector<1x1xf32>
    %2 = arith.addf %0, %1 : vector<1x1xf32>
    %c0_1 = arith.constant 0 : index
    %c0_2 = arith.constant 0 : index
    %c0_3 = arith.constant 0 : index
    %3 = vector.load %arg2[%c0_1, %c0_2, %c0_3] : memref<9x64x1xf32, #tpu.memory_space<vmem>>, vector<1x64x1xf32>
    %4 = vector.shape_cast %3 : vector<1x64x1xf32> to vector<64x1xf32>
    %c1 = arith.constant 1 : index
    %c0_4 = arith.constant 0 : index
    %c0_5 = arith.constant 0 : index
    %5 = vector.load %arg2[%c1, %c0_4, %c0_5] : memref<9x64x1xf32, #tpu.memory_space<vmem>>, vector<1x64x1xf32>
    %6 = vector.shape_cast %5 : vector<1x64x1xf32> to vector<64x1xf32>
    %c2 = arith.constant 2 : index
    %c0_6 = arith.constant 0 : index
    %c0_7 = arith.constant 0 : index
    %7 = vector.load %arg2[%c2, %c0_6, %c0_7] : memref<9x64x1xf32, #tpu.memory_space<vmem>>, vector<1x64x1xf32>
    %8 = vector.shape_cast %7 : vector<1x64x1xf32> to vector<64x1xf32>
    %c3 = arith.constant 3 : index
    %c0_8 = arith.constant 0 : index
    %c0_9 = arith.constant 0 : index
    %9 = vector.load %arg2[%c3, %c0_8, %c0_9] : memref<9x64x1xf32, #tpu.memory_space<vmem>>, vector<1x64x1xf32>
    %10 = vector.shape_cast %9 : vector<1x64x1xf32> to vector<64x1xf32>
    %c4 = arith.constant 4 : index
    %c0_10 = arith.constant 0 : index
    %c0_11 = arith.constant 0 : index
    %11 = vector.load %arg2[%c4, %c0_10, %c0_11] : memref<9x64x1xf32, #tpu.memory_space<vmem>>, vector<1x64x1xf32>
    %12 = vector.shape_cast %11 : vector<1x64x1xf32> to vector<64x1xf32>
    %c5 = arith.constant 5 : index
    %c0_12 = arith.constant 0 : index
    %c0_13 = arith.constant 0 : index
    %13 = vector.load %arg2[%c5, %c0_12, %c0_13] : memref<9x64x1xf32, #tpu.memory_space<vmem>>, vector<1x64x1xf32>
    %14 = vector.shape_cast %13 : vector<1x64x1xf32> to vector<64x1xf32>
    %c6 = arith.constant 6 : index
    %c0_14 = arith.constant 0 : index
    %c0_15 = arith.constant 0 : index
    %15 = vector.load %arg2[%c6, %c0_14, %c0_15] : memref<9x64x1xf32, #tpu.memory_space<vmem>>, vector<1x64x1xf32>
    %16 = vector.shape_cast %15 : vector<1x64x1xf32> to vector<64x1xf32>
    %c7 = arith.constant 7 : index
    %c0_16 = arith.constant 0 : index
    %c0_17 = arith.constant 0 : index
    %17 = vector.load %arg2[%c7, %c0_16, %c0_17] : memref<9x64x1xf32, #tpu.memory_space<vmem>>, vector<1x64x1xf32>
    %18 = vector.shape_cast %17 : vector<1x64x1xf32> to vector<64x1xf32>
    %c8 = arith.constant 8 : index
    %c0_18 = arith.constant 0 : index
    %c0_19 = arith.constant 0 : index
    %19 = vector.load %arg2[%c8, %c0_18, %c0_19] : memref<9x64x1xf32, #tpu.memory_space<vmem>>, vector<1x64x1xf32>
    %20 = vector.shape_cast %19 : vector<1x64x1xf32> to vector<64x1xf32>
    %c0_20 = arith.constant 0 : index
    %c0_21 = arith.constant 0 : index
    %c0_22 = arith.constant 0 : index
    %c0_23 = arith.constant 0 : index
    %c0_24 = arith.constant 0 : index
    %21 = vector.load %arg1[%c0_20, %c0_21, %c0_22, %c0_23, %c0_24] : memref<1x1x3x3x64xf32, #tpu.memory_space<vmem>>, vector<1x1x1x1x64xf32>
    %22 = vector.shape_cast %21 : vector<1x1x1x1x64xf32> to vector<1x64xf32>
    %cst_25 = arith.constant dense<0.000000e+00> : vector<1x1xf32>
    %23 = tpu.matmul %22, %4, %cst_25 {dimension_numbers = #tpu.dot_dimension_numbers<[1], [0], [0], [1], [0, 0, 1, 1], [], []>} : vector<1x64xf32>, vector<64x1xf32>, vector<1x1xf32> -> vector<1x1xf32>
    %24 = arith.addf %2, %23 : vector<1x1xf32>
    %c0_26 = arith.constant 0 : index
    %c0_27 = arith.constant 0 : index
    %c0_28 = arith.constant 0 : index
    %c1_29 = arith.constant 1 : index
    %c0_30 = arith.constant 0 : index
    %25 = vector.load %arg1[%c0_26, %c0_27, %c0_28, %c1_29, %c0_30] : memref<1x1x3x3x64xf32, #tpu.memory_space<vmem>>, vector<1x1x1x1x64xf32>
    %26 = vector.shape_cast %25 : vector<1x1x1x1x64xf32> to vector<1x64xf32>
    %cst_31 = arith.constant dense<0.000000e+00> : vector<1x1xf32>
    %27 = tpu.matmul %26, %6, %cst_31 {dimension_numbers = #tpu.dot_dimension_numbers<[1], [0], [0], [1], [0, 0, 1, 1], [], []>} : vector<1x64xf32>, vector<64x1xf32>, vector<1x1xf32> -> vector<1x1xf32>
    %28 = arith.addf %24, %27 : vector<1x1xf32>
    %c0_32 = arith.constant 0 : index
    %c0_33 = arith.constant 0 : index
    %c0_34 = arith.constant 0 : index
    %c2_35 = arith.constant 2 : index
    %c0_36 = arith.constant 0 : index
    %29 = vector.load %arg1[%c0_32, %c0_33, %c0_34, %c2_35, %c0_36] : memref<1x1x3x3x64xf32, #tpu.memory_space<vmem>>, vector<1x1x1x1x64xf32>
    %30 = vector.shape_cast %29 : vector<1x1x1x1x64xf32> to vector<1x64xf32>
    %cst_37 = arith.constant dense<0.000000e+00> : vector<1x1xf32>
    %31 = tpu.matmul %30, %8, %cst_37 {dimension_numbers = #tpu.dot_dimension_numbers<[1], [0], [0], [1], [0, 0, 1, 1], [], []>} : vector<1x64xf32>, vector<64x1xf32>, vector<1x1xf32> -> vector<1x1xf32>
    %32 = arith.addf %28, %31 : vector<1x1xf32>
    %c0_38 = arith.constant 0 : index
    %c0_39 = arith.constant 0 : index
    %c1_40 = arith.constant 1 : index
    %c0_41 = arith.constant 0 : index
    %c0_42 = arith.constant 0 : index
    %33 = vector.load %arg1[%c0_38, %c0_39, %c1_40, %c0_41, %c0_42] : memref<1x1x3x3x64xf32, #tpu.memory_space<vmem>>, vector<1x1x1x1x64xf32>
    %34 = vector.shape_cast %33 : vector<1x1x1x1x64xf32> to vector<1x64xf32>
    %cst_43 = arith.constant dense<0.000000e+00> : vector<1x1xf32>
    %35 = tpu.matmul %34, %10, %cst_43 {dimension_numbers = #tpu.dot_dimension_numbers<[1], [0], [0], [1], [0, 0, 1, 1], [], []>} : vector<1x64xf32>, vector<64x1xf32>, vector<1x1xf32> -> vector<1x1xf32>
    %36 = arith.addf %32, %35 : vector<1x1xf32>
    %c0_44 = arith.constant 0 : index
    %c0_45 = arith.constant 0 : index
    %c1_46 = arith.constant 1 : index
    %c1_47 = arith.constant 1 : index
    %c0_48 = arith.constant 0 : index
    %37 = vector.load %arg1[%c0_44, %c0_45, %c1_46, %c1_47, %c0_48] : memref<1x1x3x3x64xf32, #tpu.memory_space<vmem>>, vector<1x1x1x1x64xf32>
    %38 = vector.shape_cast %37 : vector<1x1x1x1x64xf32> to vector<1x64xf32>
    %cst_49 = arith.constant dense<0.000000e+00> : vector<1x1xf32>
    %39 = tpu.matmul %38, %12, %cst_49 {dimension_numbers = #tpu.dot_dimension_numbers<[1], [0], [0], [1], [0, 0, 1, 1], [], []>} : vector<1x64xf32>, vector<64x1xf32>, vector<1x1xf32> -> vector<1x1xf32>
    %40 = arith.addf %36, %39 : vector<1x1xf32>
    %c0_50 = arith.constant 0 : index
    %c0_51 = arith.constant 0 : index
    %c1_52 = arith.constant 1 : index
    %c2_53 = arith.constant 2 : index
    %c0_54 = arith.constant 0 : index
    %41 = vector.load %arg1[%c0_50, %c0_51, %c1_52, %c2_53, %c0_54] : memref<1x1x3x3x64xf32, #tpu.memory_space<vmem>>, vector<1x1x1x1x64xf32>
    %42 = vector.shape_cast %41 : vector<1x1x1x1x64xf32> to vector<1x64xf32>
    %cst_55 = arith.constant dense<0.000000e+00> : vector<1x1xf32>
    %43 = tpu.matmul %42, %14, %cst_55 {dimension_numbers = #tpu.dot_dimension_numbers<[1], [0], [0], [1], [0, 0, 1, 1], [], []>} : vector<1x64xf32>, vector<64x1xf32>, vector<1x1xf32> -> vector<1x1xf32>
    %44 = arith.addf %40, %43 : vector<1x1xf32>
    %c0_56 = arith.constant 0 : index
    %c0_57 = arith.constant 0 : index
    %c2_58 = arith.constant 2 : index
    %c0_59 = arith.constant 0 : index
    %c0_60 = arith.constant 0 : index
    %45 = vector.load %arg1[%c0_56, %c0_57, %c2_58, %c0_59, %c0_60] : memref<1x1x3x3x64xf32, #tpu.memory_space<vmem>>, vector<1x1x1x1x64xf32>
    %46 = vector.shape_cast %45 : vector<1x1x1x1x64xf32> to vector<1x64xf32>
    %cst_61 = arith.constant dense<0.000000e+00> : vector<1x1xf32>
    %47 = tpu.matmul %46, %16, %cst_61 {dimension_numbers = #tpu.dot_dimension_numbers<[1], [0], [0], [1], [0, 0, 1, 1], [], []>} : vector<1x64xf32>, vector<64x1xf32>, vector<1x1xf32> -> vector<1x1xf32>
    %48 = arith.addf %44, %47 : vector<1x1xf32>
    %c0_62 = arith.constant 0 : index
    %c0_63 = arith.constant 0 : index
    %c2_64 = arith.constant 2 : index
    %c1_65 = arith.constant 1 : index
    %c0_66 = arith.constant 0 : index
    %49 = vector.load %arg1[%c0_62, %c0_63, %c2_64, %c1_65, %c0_66] : memref<1x1x3x3x64xf32, #tpu.memory_space<vmem>>, vector<1x1x1x1x64xf32>
    %50 = vector.shape_cast %49 : vector<1x1x1x1x64xf32> to vector<1x64xf32>
    %cst_67 = arith.constant dense<0.000000e+00> : vector<1x1xf32>
    %51 = tpu.matmul %50, %18, %cst_67 {dimension_numbers = #tpu.dot_dimension_numbers<[1], [0], [0], [1], [0, 0, 1, 1], [], []>} : vector<1x64xf32>, vector<64x1xf32>, vector<1x1xf32> -> vector<1x1xf32>
    %52 = arith.addf %48, %51 : vector<1x1xf32>
    %c0_68 = arith.constant 0 : index
    %c0_69 = arith.constant 0 : index
    %c2_70 = arith.constant 2 : index
    %c2_71 = arith.constant 2 : index
    %c0_72 = arith.constant 0 : index
    %53 = vector.load %arg1[%c0_68, %c0_69, %c2_70, %c2_71, %c0_72] : memref<1x1x3x3x64xf32, #tpu.memory_space<vmem>>, vector<1x1x1x1x64xf32>
    %54 = vector.shape_cast %53 : vector<1x1x1x1x64xf32> to vector<1x64xf32>
    %cst_73 = arith.constant dense<0.000000e+00> : vector<1x1xf32>
    %55 = tpu.matmul %54, %20, %cst_73 {dimension_numbers = #tpu.dot_dimension_numbers<[1], [0], [0], [1], [0, 0, 1, 1], [], []>} : vector<1x64xf32>, vector<64x1xf32>, vector<1x1xf32> -> vector<1x1xf32>
    %56 = arith.addf %52, %55 : vector<1x1xf32>
    %c0_74 = arith.constant 0 : index
    %c0_75 = arith.constant 0 : index
    %c0_76 = arith.constant 0 : index
    %c0_77 = arith.constant 0 : index
    %57 = vector.load %arg4[%c0_74, %c0_75, %c0_76, %c0_77] : memref<1x1x1x1xf32, #tpu.memory_space<vmem>>, vector<1x1x1x1xf32>
    %58 = vector.shape_cast %57 : vector<1x1x1x1xf32> to vector<1x1xf32>
    %59 = vector.shape_cast %56 : vector<1x1xf32> to vector<1x1x1x1xf32>
    tpu.vector_store %arg4[%c0_74, %c0_75, %c0_76, %c0_77], %59 {strides = array<i32>} : memref<1x1x1x1xf32, #tpu.memory_space<vmem>>, vector<1x1x1x1xf32>,
    return
  }
  func.func @transform_0(%arg0: i32) -> (i32, i32, i32, i32, i32) {
    %c0_i32 = arith.constant 0 : i32
    %c0_i32_0 = arith.constant 0 : i32
    %c0_i32_1 = arith.constant 0 : i32
    %c0_i32_2 = arith.constant 0 : i32
    %c0_i32_3 = arith.constant 0 : i32
    return %arg0, %c0_i32, %c0_i32_0, %c0_i32_1, %c0_i32_2 : i32, i32, i32, i32, i32
  }
  func.func @transform_1(%arg0: i32) -> (i32, i32, i32) {
    %c0_i32 = arith.constant 0 : i32
    %c0_i32_0 = arith.constant 0 : i32
    %c0_i32_1 = arith.constant 0 : i32
    %c0_i32_2 = arith.constant 0 : i32
    return %c0_i32, %c0_i32_0, %c0_i32_1 : i32, i32, i32
  }
  func.func @transform_2(%arg0: i32) -> (i32, i32) {
    %c0_i32 = arith.constant 0 : i32
    %c0_i32_0 = arith.constant 0 : i32
    %c0_i32_1 = arith.constant 0 : i32
    return %c0_i32, %c0_i32_0 : i32, i32
  }
  func.func @transform_3(%arg0: i32) -> (i32, i32, i32, i32) {
    %c0_i32 = arith.constant 0 : i32
    %c0_i32_0 = arith.constant 0 : i32
    %c0_i32_1 = arith.constant 0 : i32
    %c0_i32_2 = arith.constant 0 : i32
    return %arg0, %c0_i32, %c0_i32_0, %c0_i32_1 : i32, i32, i32, i32
  }
}

</mosaic_0001>

<bundles_post_ra>
// kernel: discriminator_forward.8
= control target key start
LH: loop header
LB: loop body
LE: loop exit
PB: predicated region body
PF: predicated region fallthrough
CT: control target
= control target key end

     0   :  { %s588_s12 = smov 0   ;;  %s740_s0 = inlined_call_operand.vmem [shape: f32[2,4,2,2,32], index: 0, kind: input, shape index: {}]   ;;  %s741_s1 = inlined_call_operand.vmem [shape: f32[9,32,64], index: 1, kind: input, shape index: {}]   ;;  %s742_s2 = inlined_call_operand.vmem [shape: f32[1,64], index: 2, kind: input, shape index: {}]   ;;  %s743_s3 = inlined_call_operand.vmem [shape: f32[2,1,1,64], index: 3, kind: output, shape index: {}]  }
   0x1 LB: > { %s494_s13 = sadd.s32 4294967295, %s566_s12   ;;  %p498_p0 = scmp.ge.s32.totalorder %s566_s12, 1  ;;  %s566_s12 = sphi %s588_s12, %s13_s12  }
   0x2   : > { %p137_p1 = scmp.lt.s32.totalorder %s566_s12, 3 }
   0x4   : > { %p138_p2 = pnand %p498_p0, %p137_p1 }
   0x5   : > { %p159_p3 = scmp.lt.s32.totalorder (!%p138_p2), %s494_s13, 1 }
   0x6   : > { %141 = sbr.rel (%p138_p2) target bundleno = 170 (0xaa), region = 32 }
   0xb   : > { %v508_v0 = vld [vmem:[%s741_s1 + $0x58] sm:$0xff]  ;;  %v507_v2 = vld [vmem:[%s741_s1 + $0x50] sm:$0xff]  ;;  %v506_v6 = vld [vmem:[%s741_s1 + $0x48] sm:$0xff]  ;;  %s745_s13 = smov (!%p159_p3, %s494_s13), 1  ;;  %vm214_vm0 = vcmask 261120   ;;  %vm445_vm1 = vcmask 516096  }
   0xc   : > { %v172_v1 = vld [vmem:[%s741_s1 + $0x18] sm:$0xff]  ;;  %281 = vmatpush.msra.mxu2 %v508_v0  ;;  %v171_v4 = vld [vmem:[%s741_s1 + $0x10] sm:$0xff]  ;;  %v170_v8 = vld [vmem:[%s741_s1 + $0x8] sm:$0xff]  ;;  %s551_s11 = sshll.u32 %s745_s13, 4  ;;  %s166_s19 = scalar_lea.vmem %s743_s3, %s745_s13 }
   0xd   : > { %230 = vmatpush.msra.mxu0 %v172_v1  ;;  %v512_v3 = vld [vmem:[%s741_s1 + $0x78] sm:$0xff]  ;;  %v511_v7 = vld [vmem:[%s741_s1 + $0x70] sm:$0xff]  ;;  %v510_v10 = vld [vmem:[%s741_s1 + $0x68] sm:$0xff]  ;;  %s644_s20 = scalar_lea.vmem %s740_s0, %s551_s11 }
   0xe   : > { %v504_v5 = vld [vmem:[%s741_s1 + $0x38] sm:$0xff]  ;;  %307 = vmatpush.msra.mxu3 %v512_v3  ;;  %282 = vmatpush.msra.mxu2 %v507_v2  ;;  %v503_v9 = vld [vmem:[%s741_s1 + $0x30] sm:$0xff]  ;;  %v505_v11 = vld [vmem:[%s741_s1 + $0x40] sm:$0xff] }
   0xf   : > { %256 = vmatpush.msra.mxu1 %v504_v5  ;;  %231 = vmatpush.msra.mxu0 %v171_v4  ;;  %v169_v12 = vld [vmem:[%s741_s1] sm:$0xff]  ;;  %v502_v13 = vld [vmem:[%s741_s1 + $0x28] sm:$0xff]  ;;  %v524_v16 = vld [vmem:[%s741_s1 + $0xd8] sm:$0xff] }
  0x10   : > { %308 = vmatpush.msra.mxu3 %v511_v7  ;;  %283 = vmatpush.msra.mxu2 %v506_v6  ;;  %v509_v14 = vld [vmem:[%s741_s1 + $0x60] sm:$0xff]  ;;  %v537_v18 = vld [vmem:[%s644_s20 + $0x8] sm:$0x1]  ;;  %v516_v19 = vld [vmem:[%s741_s1 + $0x98] sm:$0xff] }
  0x11   : > { %257 = vmatpush.msra.mxu1 %v503_v9  ;;  %232 = vmatpush.msra.mxu0 %v170_v8  ;;  %v265_v15 = vld [vmem:[%s644_s20 + $0x1] sm:$0x1]  ;;  %v213_v17 = vld [vmem:[%s644_s20] sm:$0x1]  ;;  %v523_v20 = vld [vmem:[%s741_s1 + $0xd0] sm:$0xff] }
  0x12   : > { %309 = vmatpush.msra.mxu3 %v510_v10  ;;  %284 = vmatpush.msra.mxu2 %v505_v11  ;;  %v528_v21 = vld [vmem:[%s741_s1 + $0xf8] sm:$0xff]  ;;  %v501_v22 = vld [vmem:[%s741_s1 + $0x20] sm:$0xff]  ;;  %v515_v23 = vld [vmem:[%s741_s1 + $0x90] sm:$0xff] }
  0x13   : > { %258 = vmatpush.msra.mxu1 %v502_v13  ;;  %233 = vmatpush.msra.mxu0 %v169_v12  ;;  %v534_v24 = vld [vmem:[%s644_s20 + $0x4] sm:$0x1]  ;;  %v522_v25 = vld [vmem:[%s741_s1 + $0xc8] sm:$0xff]  ;;  %v520_v26 = vld [vmem:[%s741_s1 + $0xb8] sm:$0xff] }
  0x14   : > { %536 = vmatmul.msk.f32.vlgmr.msra.gmra.mxu2 %vm214_vm0, %v265_v15  ;;  %310 = vmatpush.msra.mxu3 %v509_v14  ;;  %v527_v27 = vld [vmem:[%s741_s1 + $0xf0] sm:$0xff]  ;;  %v514_v28 = vld [vmem:[%s741_s1 + $0x88] sm:$0xff]  ;;  %v521_v29 = vld [vmem:[%s741_s1 + $0xc0] sm:$0xff] }
  0x15   : > { %384 = vmatpush.msrb.mxu2 %v524_v16  ;;  %533 = vmatmul.msk.f32.vlgmr.msra.gmra.mxu0 %vm214_vm0, %v213_v17  ;;  %v519_v30 = vld [vmem:[%s741_s1 + $0xb0] sm:$0xff]  ;;  %v526_v31 = vld [vmem:[%s741_s1 + $0xe8] sm:$0xff]  ;;  %v513_v32 = vld [vmem:[%s741_s1 + $0x80] sm:$0xff] }
  0x16   : > { %538 = vmatmul.msk.f32.vlgmr.msra.gmra.mxu3 %vm214_vm0, %v537_v18  ;;  %333 = vmatpush.msrb.mxu0 %v516_v19  ;;  %v543_v33 = vld [vmem:[%s644_s20 + $0x2] sm:$0x1]  ;;  %v518_v34 = vld [vmem:[%s741_s1 + $0xa8] sm:$0xff]  ;;  %v545_v37 = vld [vmem:[%s644_s20 + $0x6] sm:$0x1] }
  0x17   : > { %385 = vmatpush.msrb.mxu2 %v523_v20  ;;  %410 = vmatpush.msrb.mxu3 %v528_v21  ;;  %v525_v35 = vld [vmem:[%s741_s1 + $0xe0] sm:$0xff]  ;;  %v539_v36 = vld [vmem:[%s644_s20 + $0xc] sm:$0x1]  ;;  %v532_v39 = vld [vmem:[%s741_s1 + $0x118] sm:$0xff] }
  0x18   : > { %259 = vmatpush.msra.mxu1 %v501_v22  ;;  %334 = vmatpush.msrb.mxu0 %v515_v23  ;;  %v517_v38 = vld [vmem:[%s741_s1 + $0xa0] sm:$0xff]  ;;  %v541_v40 = vld [vmem:[%s644_s20 + $0x9] sm:$0x1]  ;;  %v531_v41 = vld [vmem:[%s741_s1 + $0x110] sm:$0xff] }
  0x19   : > { %535 = vmatmul.msk.f32.vlgmr.msra.gmra.mxu1 %vm214_vm0, %v534_v24  ;;  %386 = vmatpush.msrb.mxu2 %v522_v25  ;;  %v530_v42 = vld [vmem:[%s741_s1 + $0x108] sm:$0xff]  ;;  %v529_v43 = vld [vmem:[%s741_s1 + $0x100] sm:$0xff] }
  0x1a   : > { %358 = vmatpush.msrb.mxu1 %v520_v26  ;;  %411 = vmatpush.msrb.mxu3 %v527_v27  ;;  %v547_v44 = vld [vmem:[%s644_s20 + $0x3] sm:$0x1]  ;;  %v167_v45 = vld [vmem:[%s742_s2] sm:$0x1] }
  0x1b   : > { %335 = vmatpush.msrb.mxu0 %v514_v28  ;;  %387 = vmatpush.msrb.mxu2 %v521_v29 }
  0x1c   : > { %359 = vmatpush.msrb.mxu1 %v519_v30  ;;  %412 = vmatpush.msrb.mxu3 %v526_v31 }
  0x1d   : > { %336 = vmatpush.msrb.mxu0 %v513_v32  ;;  %544 = vmatmul.msk.f32.vlgmr.msrb.gmra.mxu2 %vm214_vm0, %v543_v33 }
  0x1e   : > { %360 = vmatpush.msrb.mxu1 %v518_v34  ;;  %413 = vmatpush.msrb.mxu3 %v525_v35 }
  0x1f   : > { %540 = vmatmul.msk.f32.vlgmr.msrb.gmra.mxu0 %vm214_vm0, %v539_v36  ;;  %546 = vmatmul.msk.f32.vlgmr.msrb.gmra.mxu3 %vm214_vm0, %v545_v37 }
  0x20   : > { %361 = vmatpush.msrb.mxu1 %v517_v38  ;;  %435 = vmatpush.msra.mxu0 %v532_v39 }
  0x21   : > { %542 = vmatmul.msk.f32.vlgmr.msrb.gmra.mxu1 %vm214_vm0, %v541_v40 }
  0x22   : > { %436 = vmatpush.msra.mxu0 %v531_v41 }
  0x24   : > { %437 = vmatpush.msra.mxu0 %v530_v42 }
  0x26   : > { %438 = vmatpush.msra.mxu0 %v529_v43 }
  0x27   : > { %548 = vmatmul.msk.f32.vlgmr.msra.gmra.mxu0 %vm214_vm0, %v547_v44 }
  0x92   : > { %v235_v46 = vpop.f32.mrf.mxu0 }
  0x93   : > { %v238_v47 = vadd.f32 %v235_v46, %v167_v45 }
  0x96   : > { %v261_v48 = vpop.f32.mrf.mxu1 }
  0x97   : > { %v264_v49 = vadd.f32 %v261_v48, %v238_v47  ;;  %v286_v50 = vpop.f32.mrf.mxu2 }
  0x99   : > { %v289_v51 = vadd.f32 %v286_v50, %v264_v49  ;;  %v312_v52 = vpop.f32.mrf.mxu3 }
  0x9b   : > { %v315_v53 = vadd.f32 %v312_v52, %v289_v51 }
  0x9c   : > { %v338_v54 = vpop.f32.mrf.mxu0 }
  0x9d   : > { %v341_v55 = vadd.f32 %v338_v54, %v315_v53 }
  0x9e   : > { %v363_v56 = vpop.f32.mrf.mxu1 }
  0x9f   : > { %v366_v57 = vadd.f32 %v363_v56, %v341_v55 }
  0xa0   : > { %v389_v58 = vpop.f32.mrf.mxu2 }
  0xa1   : > { %v392_v59 = vadd.f32 %v389_v58, %v366_v57 }
  0xa2   : > { %v415_v60 = vpop.f32.mrf.mxu3 }
  0xa3   : > { %v418_v61 = vadd.f32 %v415_v60, %v392_v59 }
  0xa4   : > { %v440_v62 = vpop.f32.mrf.mxu0 }
  0xa5   : > { %v443_v63 = vadd.f32 %v440_v62, %v418_v61 }
  0xa7   : > { %v444_v0 = vmax.f32 %v443_v63, 0.0 }
  0xa9   : > { %446 = vst.msk [vmem:[%s166_s19] sm:$0x1] %vm445_vm1, %v444_v0 }
  0xaa PF: > { %s13_s12 = sadd.s32 1, %s566_s12  }
  0xab   : > { %p10_p4 = scmp.ge.s32.totalorder %s13_s12, 4  }
  0xad   :  { %12 = sbr.rel (!%p10_p4) target bundleno = 1 (0x1), region = 75 }

// kernel: discriminator_forward.7
= control target key start
LH: loop header
LB: loop body
LE: loop exit
PB: predicated region body
PF: predicated region fallthrough
CT: control target
= control target key end

     0   :  { %s823_s12 = smov 0   ;;  %s945_s0 = inlined_call_operand.vmem [shape: f32[2,4,3,3,16], index: 0, kind: input, shape index: {}]   ;;  %s946_s1 = inlined_call_operand.vmem [shape: f32[9,16,32], index: 1, kind: input, shape index: {}]   ;;  %s947_s2 = inlined_call_operand.vmem [shape: f32[1,32], index: 2, kind: input, shape index: {}]   ;;  %s948_s3 = inlined_call_operand.vmem [shape: f32[2,2,2,32], index: 3, kind: output, shape index: {}]  }
   0x1 LB: > { %s723_s13 = sadd.s32 4294967295, %s801_s12   ;;  %p727_p0 = scmp.ge.s32.totalorder %s801_s12, 1  ;;  %s801_s12 = sphi %s823_s12, %s13_s12  }
   0x2   : > { %p137_p1 = scmp.lt.s32.totalorder %s801_s12, 3 }
   0x4   : > { %p138_p2 = pnand %p727_p0, %p137_p1 }
   0x5   : > { %p161_p3 = scmp.lt.s32.totalorder (!%p138_p2), %s723_s13, 1 }
   0x6   : > { %141 = sbr.rel (%p138_p2) target bundleno = 186 (0xba), region = 32 }
   0xb   : > { %v734_v0 = vld [vmem:[%s946_s1 + $0x28] sm:$0xff]  ;;  %v733_v2 = vld [vmem:[%s946_s1 + $0x20] sm:$0xff]  ;;  %v736_v3 = vld [vmem:[%s946_s1 + $0x38] sm:$0xff]  ;;  %s950_s13 = smov (!%p161_p3, %s723_s13), 1  ;;  %vm203_vm0 = vcmask 130048   ;;  %vm434_vm1 = vcmask 254976  }
   0xc   : > { %v177_v1 = vld [vmem:[%s946_s1 + $0x8] sm:$0xff]  ;;  %272 = vmatpush.msra.mxu2 %v734_v0  ;;  %v176_v5 = vld [vmem:[%s946_s1] sm:$0xff]  ;;  %298 = vmatpush.msra.mxu3 %v736_v3  ;;  %v732_v6 = vld [vmem:[%s946_s1 + $0x18] sm:$0xff]  ;;  %s785_s9 = smul.u32 48, %s950_s13  ;;  %s784_s4 = sshll.u32 %s950_s13, 2 }
   0xd   : > { %221 = vmatpush.msra.mxu0 %v177_v1  ;;  %v742_v4 = vld [vmem:[%s946_s1 + $0x68] sm:$0xff]  ;;  %v735_v7 = vld [vmem:[%s946_s1 + $0x30] sm:$0xff]  ;;  %v863_v9 = vld [vmem:[%s946_s1 + $0x78] sm:$0xff]  ;;  %247 = vmatpush.msra.mxu1 %v732_v6  ;;  %s170_s7 = scalar_lea.vmem %s948_s3, %s784_s4 }
   0xe   : > { %v738_v8 = vld [vmem:[%s946_s1 + $0x48] sm:$0xff]  ;;  %273 = vmatpush.msra.mxu2 %v733_v2  ;;  %v731_v10 = vld [vmem:[%s946_s1 + $0x10] sm:$0xff]  ;;  %v740_v11 = vld [vmem:[%s946_s1 + $0x58] sm:$0xff]  ;;  %299 = vmatpush.msra.mxu3 %v735_v7  ;;  %s878_s18 = scalar_lea.vmem %s945_s0, %s785_s9 }
   0xf   : > { %222 = vmatpush.msra.mxu0 %v176_v5  ;;  %v741_v12 = vld [vmem:[%s946_s1 + $0x60] sm:$0xff]  ;;  %248 = vmatpush.msra.mxu1 %v731_v10  ;;  %v743_v14 = vld [vmem:[%s946_s1 + $0x70] sm:$0xff]  ;;  %v751_v17 = vld [vmem:[%s878_s18 + $0x18] sm:$0x3] }
  0x10   : > { %375 = vmatpush.msrb.mxu2 %v742_v4  ;;  %401 = vmatpush.msrb.mxu3 %v863_v9  ;;  %v737_v13 = vld [vmem:[%s946_s1 + $0x40] sm:$0xff]  ;;  %v748_v18 = vld [vmem:[%s878_s18 + $0xc] sm:$0x3]  ;;  %v739_v19 = vld [vmem:[%s946_s1 + $0x50] sm:$0xff] }
  0x11   : > { %324 = vmatpush.msrb.mxu0 %v738_v8  ;;  %v254_v15 = vld [vmem:[%s878_s18 + $0x1] sm:$0x3]  ;;  %349 = vmatpush.msrb.mxu1 %v740_v11  ;;  %v746_v20 = vld [vmem:[%s946_s1 + $0x88] sm:$0xff]  ;;  %v757_v22 = vld [vmem:[%s878_s18 + $0x4] sm:$0x3] }
  0x12   : > { %v202_v16 = vld [vmem:[%s878_s18] sm:$0x3]  ;;  %376 = vmatpush.msrb.mxu2 %v741_v12  ;;  %752 = vmatmul.msk.f32.vlgmr.msra.gmra.mxu3 %vm203_vm0, %v751_v17  ;;  %v753_v23 = vld [vmem:[%s878_s18 + $0x24] sm:$0x3]  ;;  %v759_v24 = vld [vmem:[%s878_s18 + $0x10] sm:$0x3] }
  0x13   : > { %750 = vmatmul.msk.f32.vlgmr.msra.gmra.mxu2 %vm203_vm0, %v254_v15  ;;  %747 = vmatmul.msk.f32.vlgmr.msra.gmra.mxu0 %vm203_vm0, %v202_v16  ;;  %v745_v21 = vld [vmem:[%s946_s1 + $0x80] sm:$0xff]  ;;  %v755_v25 = vld [vmem:[%s878_s18 + $0x19] sm:$0x3]  ;;  %v765_v26 = vld [vmem:[%s878_s18 + $0x10] sm:$0x3] }
  0x14   : > { %749 = vmatmul.msk.f32.vlgmr.msra.gmra.mxu1 %vm203_vm0, %v748_v18  ;;  %325 = vmatpush.msrb.mxu0 %v737_v13  ;;  %v761_v27 = vld [vmem:[%s878_s18 + $0x5] sm:$0x3]  ;;  %v773_v30 = vld [vmem:[%s878_s18 + $0x1d] sm:$0x3]  ;;  %v775_v32 = vld [vmem:[%s878_s18 + $0x8] sm:$0x3] }
  0x15   : > { %402 = vmatpush.msrb.mxu3 %v743_v14  ;;  %350 = vmatpush.msrb.mxu1 %v739_v19  ;;  %v767_v28 = vld [vmem:[%s878_s18 + $0x5] sm:$0x3]  ;;  %v769_v31 = vld [vmem:[%s878_s18 + $0x1c] sm:$0x3]  ;;  %v771_v33 = vld [vmem:[%s878_s18 + $0x28] sm:$0x3] }
  0x16   : > { %479 = vmatpush.msra.mxu2 %v732_v6  ;;  %426 = vmatpush.msra.mxu0 %v746_v20  ;;  %v763_v29 = vld [vmem:[%s878_s18 + $0x4] sm:$0x3]  ;;  %v777_v34 = vld [vmem:[%s878_s18 + $0x14] sm:$0x3]  ;;  %v779_v35 = vld [vmem:[%s878_s18 + $0x9] sm:$0x3] }
  0x17   : > { %504 = vmatpush.msra.mxu3 %v734_v0  ;;  %454 = vmatpush.msra.mxu1 %v177_v1  ;;  %v794_v36 = vld [vmem:[%s947_s2] ss:$0 sm:$0xff] }
  0x18   : > { %480 = vmatpush.msra.mxu2 %v731_v10  ;;  %427 = vmatpush.msra.mxu0 %v745_v21 }
  0x19   : > { %505 = vmatpush.msra.mxu3 %v733_v2  ;;  %455 = vmatpush.msra.mxu1 %v176_v5 }
  0x1a   : > { %760 = vmatmul.msk.f32.vlgmr.msrb.gmra.mxu3 %vm203_vm0, %v759_v24 }
  0x1b   : > { %758 = vmatmul.msk.f32.vlgmr.msrb.gmra.mxu2 %vm203_vm0, %v757_v22  ;;  %754 = vmatmul.msk.f32.vlgmr.msrb.gmra.mxu0 %vm203_vm0, %v753_v23 }
  0x1c   : > { %756 = vmatmul.msk.f32.vlgmr.msrb.gmra.mxu1 %vm203_vm0, %v755_v25  ;;  %581 = vmatpush.msrb.mxu2 %v740_v11 }
  0x1d   : > { %530 = vmatpush.msrb.mxu0 %v736_v3  ;;  %607 = vmatpush.msrb.mxu3 %v742_v4 }
  0x1e   : > { %556 = vmatpush.msrb.mxu1 %v738_v8  ;;  %582 = vmatpush.msrb.mxu2 %v739_v19 }
  0x1f   : > { %531 = vmatpush.msrb.mxu0 %v735_v7  ;;  %608 = vmatpush.msrb.mxu3 %v741_v12 }
  0x20   : > { %557 = vmatpush.msrb.mxu1 %v737_v13 }
  0x22   : > { %768 = vmatmul.msk.f32.vlgmr.msra.gmra.mxu3 %vm203_vm0, %v767_v28 }
  0x23   : > { %766 = vmatmul.msk.f32.vlgmr.msra.gmra.mxu2 %vm203_vm0, %v765_v26  ;;  %762 = vmatmul.msk.f32.vlgmr.msra.gmra.mxu0 %vm203_vm0, %v761_v27 }
  0x24   : > { %764 = vmatmul.msk.f32.vlgmr.msra.gmra.mxu1 %vm203_vm0, %v763_v29  ;;  %633 = vmatpush.msra.mxu0 %v863_v9 }
  0x25   : > { %658 = vmatpush.msra.mxu1 %v746_v20 }
  0x26   : > { %634 = vmatpush.msra.mxu0 %v743_v14 }
  0x27   : > { %659 = vmatpush.msra.mxu1 %v745_v21 }
  0x2a   : > { %776 = vmatmul.msk.f32.vlgmr.msrb.gmra.mxu3 %vm203_vm0, %v775_v32 }
  0x2b   : > { %774 = vmatmul.msk.f32.vlgmr.msrb.gmra.mxu2 %vm203_vm0, %v773_v30  ;;  %770 = vmatmul.msk.f32.vlgmr.msrb.gmra.mxu0 %vm203_vm0, %v769_v31 }
  0x2c   : > { %772 = vmatmul.msk.f32.vlgmr.msrb.gmra.mxu1 %vm203_vm0, %v771_v33 }
  0x33   : > { %778 = vmatmul.msk.f32.vlgmr.msra.gmra.mxu0 %vm203_vm0, %v777_v34 }
  0x34   : > { %780 = vmatmul.msk.f32.vlgmr.msra.gmra.mxu1 %vm203_vm0, %v779_v35 }
  0x90   : > { %v224_v37 = vpop.f32.mrf.mxu0 }
  0x91   : > { %v227_v38 = vadd.f32 %v794_v36, %v224_v37  ;;  %v250_v39 = vpop.f32.mrf.mxu1 }
  0x93   : > { %v253_v40 = vadd.f32 %v250_v39, %v227_v38 }
  0x95   : > { %v301_v43 = vpop.f32.mrf.mxu3 }
  0x96   : > { %v275_v41 = vpop.f32.mrf.mxu2 }
  0x97   : > { %v278_v42 = vadd.f32 %v275_v41, %v253_v40 }
  0x98   : > { %v327_v44 = vpop.f32.mrf.mxu0 }
  0x99   : > { %v304_v45 = vadd.f32 %v301_v43, %v278_v42  ;;  %v352_v46 = vpop.f32.mrf.mxu1 }
  0x9b   : > { %v330_v47 = vadd.f32 %v327_v44, %v304_v45 }
  0x9d   : > { %v355_v48 = vadd.f32 %v352_v46, %v330_v47  ;;  %v404_v51 = vpop.f32.mrf.mxu3 }
  0x9e   : > { %v378_v49 = vpop.f32.mrf.mxu2 }
  0x9f   : > { %v381_v50 = vadd.f32 %v378_v49, %v355_v48 }
  0xa0   : > { %v429_v52 = vpop.f32.mrf.mxu0 }
  0xa1   : > { %v407_v53 = vadd.f32 %v404_v51, %v381_v50  ;;  %v457_v54 = vpop.f32.mrf.mxu1 }
  0xa2   : > { %v460_v56 = vadd.f32 %v794_v36, %v457_v54 }
  0xa3   : > { %v432_v55 = vadd.f32 %v429_v52, %v407_v53 }
  0xa5   : > { %v433_v57 = vmax.f32 %v432_v55, 0.0  ;;  %v507_v60 = vpop.f32.mrf.mxu3 }
  0xa6   : > { %v482_v58 = vpop.f32.mrf.mxu2 }
  0xa7   : > { %435 = vst.msk [vmem:[%s170_s7] sm:$0x3] %vm434_vm1, %v433_v57  ;;  %v485_v59 = vadd.f32 %v482_v58, %v460_v56 }
  0xa8   : > { %v533_v61 = vpop.f32.mrf.mxu0 }
  0xa9   : > { %v510_v62 = vadd.f32 %v507_v60, %v485_v59  ;;  %v559_v63 = vpop.f32.mrf.mxu1 }
  0xab   : > { %v536_v0 = vadd.f32 %v533_v61, %v510_v62 }
  0xad   : > { %v562_v1 = vadd.f32 %v559_v63, %v536_v0  ;;  %v610_v4 = vpop.f32.mrf.mxu3 }
  0xae   : > { %v584_v2 = vpop.f32.mrf.mxu2 }
  0xaf   : > { %v587_v3 = vadd.f32 %v584_v2, %v562_v1 }
  0xb0   : > { %v636_v5 = vpop.f32.mrf.mxu0 }
  0xb1   : > { %v613_v6 = vadd.f32 %v610_v4, %v587_v3  ;;  %v661_v7 = vpop.f32.mrf.mxu1 }
  0xb3   : > { %v639_v8 = vadd.f32 %v636_v5, %v613_v6 }
  0xb5   : > { %v664_v9 = vadd.f32 %v661_v7, %v639_v8 }
  0xb7   : > { %v665_v10 = vmax.f32 %v664_v9, 0.0 }
  0xb9   : > { %781 = vst.msk [vmem:[%s170_s7 + $0x2] sm:$0x3] %vm434_vm1, %v665_v10 }
  0xba PF: > { %s13_s12 = sadd.s32 1, %s801_s12  }
  0xbb   : > { %p10_p4 = scmp.ge.s32.totalorder %s13_s12, 4  }
  0xbd   :  { %12 = sbr.rel (!%p10_p4) target bundleno = 1 (0x1), region = 80 }

// kernel: discriminator_forward.6
= control target key start
LH: loop header
LB: loop body
LE: loop exit
PB: predicated region body
PF: predicated region fallthrough
CT: control target
= control target key end

     0   :  { %s1308_s12 = smov 0   ;;  %s1503_s0 = inlined_call_operand.vmem [shape: f32[2,4,5,5,8], index: 0, kind: input, shape index: {}]   ;;  %s1504_s1 = inlined_call_operand.vmem [shape: f32[9,8,16], index: 1, kind: input, shape index: {}]   ;;  %s1505_s2 = inlined_call_operand.vmem [shape: f32[1,16], index: 2, kind: input, shape index: {}]   ;;  %s1506_s3 = inlined_call_operand.vmem [shape: f32[2,4,4,16], index: 3, kind: output, shape index: {}]  }
   0x1 LB: > { %s1178_s13 = sadd.s32 4294967295, %s1286_s12   ;;  %p1182_p0 = scmp.ge.s32.totalorder %s1286_s12, 1  ;;  %s1286_s12 = sphi %s1308_s12, %s13_s12  }
   0x2   : > { %p137_p1 = scmp.lt.s32.totalorder %s1286_s12, 3 }
   0x4   : > { %p138_p2 = pnand %p1182_p0, %p137_p1 }
   0x5   : > { %p161_p3 = scmp.lt.s32.totalorder (!%p138_p2), %s1178_s13, 1 }
   0x6   : > { %141 = sbr.rel (%p138_p2) target bundleno = 219 (0xdb), region = 32 }
   0xb   : > { %v1319_v0 = vld [vmem:[%s1504_s1 + $0x10] sm:$0xff]  ;;  %v1329_v2 = vld [vmem:[%s1504_s1] sm:$0xff]  ;;  %v1336_v3 = vld [vmem:[%s1504_s1 + $0x18] sm:$0xff]  ;;  %s1508_s13 = smov (!%p161_p3, %s1178_s13), 1  ;;  %vm194_vm0 = vcmask 64512   ;;  %vm425_vm1 = vcmask 125952  }
   0xc   : > { %v1324_v1 = vld [vmem:[%s1504_s1 + $0x30] sm:$0xff]  ;;  %264 = vmatpush.msra.mxu2 %v1319_v0  ;;  %213 = vmatpush.msra.mxu0 %v1329_v2  ;;  %v1341_v4 = vld [vmem:[%s1504_s1 + $0x20] sm:$0xff]  ;;  %v1346_v5 = vld [vmem:[%s1504_s1 + $0x38] sm:$0xff]  ;;  %s1270_s30 = smul.u32 160, %s1508_s13  ;;  %s1269_s11 = sshll.u32 %s1508_s13, 4 }
   0xd   : > { %290 = vmatpush.msra.mxu3 %v1336_v3  ;;  %v1355_v6 = vld [vmem:[%s1504_s1 + $0x8] sm:$0xff]  ;;  %v1375_v8 = vld [vmem:[%s1504_s1 + $0x40] sm:$0xff]  ;;  %s1488_s16 = scalar_lea.vmem %s1506_s3, %s1269_s11 }
   0xe   : > { %367 = vmatpush.msrb.mxu2 %v1324_v1  ;;  %v1360_v7 = vld [vmem:[%s1504_s1 + $0x28] sm:$0xff]  ;;  %316 = vmatpush.msrb.mxu0 %v1341_v4  ;;  %s1370_s6 = scalar_lea.vmem %s1503_s0, %s1270_s30  ;;  %v1480_v45 = vld [vmem:[%s1505_s2] ss:$0 sm:$0xff] }
   0xf   : > { %393 = vmatpush.msrb.mxu3 %v1346_v5  ;;  %239 = vmatpush.msra.mxu1 %v1355_v6  ;;  %v245_v9 = vld [vmem:[%s1370_s6 + $0x1] sm:$0xf]  ;;  %v1198_v11 = vld [vmem:[%s1370_s6 + $0x50] sm:$0xf]  ;;  %v1195_v12 = vld [vmem:[%s1370_s6 + $0x28] sm:$0xf] }
  0x10   : > { %v193_v10 = vld [vmem:[%s1370_s6] sm:$0xf]  ;;  %1197 = vmatmul.msk.f32.vlgmr.msra.gmra.mxu2 %vm194_vm0, %v245_v9  ;;  %1199 = vmatmul.msk.f32.vlgmr.msra.gmra.mxu3 %vm194_vm0, %v1198_v11  ;;  %v1204_v13 = vld [vmem:[%s1370_s6 + $0x8] sm:$0xf]  ;;  %v1200_v14 = vld [vmem:[%s1370_s6 + $0x78] sm:$0xf] }
  0x11   : > { %341 = vmatpush.msrb.mxu1 %v1360_v7  ;;  %1194 = vmatmul.msk.f32.vlgmr.msra.gmra.mxu0 %vm194_vm0, %v193_v10  ;;  %v1206_v15 = vld [vmem:[%s1370_s6 + $0x30] sm:$0xf]  ;;  %v1208_v18 = vld [vmem:[%s1370_s6 + $0x9] sm:$0xf]  ;;  %v1220_v21 = vld [vmem:[%s1370_s6 + $0x59] sm:$0xf] }
  0x12   : > { %1196 = vmatmul.msk.f32.vlgmr.msra.gmra.mxu1 %vm194_vm0, %v1195_v12  ;;  %471 = vmatpush.msra.mxu2 %v1355_v6  ;;  %v1202_v16 = vld [vmem:[%s1370_s6 + $0x51] sm:$0xf]  ;;  %v1214_v19 = vld [vmem:[%s1370_s6 + $0x9] sm:$0xf]  ;;  %v1216_v22 = vld [vmem:[%s1370_s6 + $0x58] sm:$0xf] }
  0x13   : > { %418 = vmatpush.msra.mxu0 %v1375_v8  ;;  %496 = vmatpush.msra.mxu3 %v1319_v0  ;;  %v1212_v17 = vld [vmem:[%s1370_s6 + $0x30] sm:$0xf]  ;;  %v1210_v20 = vld [vmem:[%s1370_s6 + $0x8] sm:$0xf]  ;;  %v1218_v24 = vld [vmem:[%s1370_s6 + $0x80] sm:$0xf] }
  0x14   : > { %446 = vmatpush.msra.mxu1 %v1329_v2  ;;  %v1222_v23 = vld [vmem:[%s1370_s6 + $0x10] sm:$0xf]  ;;  %v1224_v26 = vld [vmem:[%s1370_s6 + $0x38] sm:$0xf]  ;;  %v1237_v29 = vld [vmem:[%s1370_s6 + $0x88] sm:$0xf] }
  0x15   : > { %v1229_v25 = vld [vmem:[%s1370_s6 + $0x10] sm:$0xf]  ;;  %v1231_v27 = vld [vmem:[%s1370_s6 + $0x38] sm:$0xf]  ;;  %v1239_v31 = vld [vmem:[%s1370_s6 + $0x61] sm:$0xf] }
  0x16   : > { %v1226_v28 = vld [vmem:[%s1370_s6 + $0x11] sm:$0xf]  ;;  %v1235_v32 = vld [vmem:[%s1370_s6 + $0x60] sm:$0xf]  ;;  %v1245_v33 = vld [vmem:[%s1370_s6 + $0x19] sm:$0xf] }
  0x17   : > { %v1233_v30 = vld [vmem:[%s1370_s6 + $0x11] sm:$0xf]  ;;  %v1241_v34 = vld [vmem:[%s1370_s6 + $0x18] sm:$0xf]  ;;  %v1243_v36 = vld [vmem:[%s1370_s6 + $0x40] sm:$0xf] }
  0x18   : > { %1205 = vmatmul.msk.f32.vlgmr.msrb.gmra.mxu2 %vm194_vm0, %v1204_v13  ;;  %1207 = vmatmul.msk.f32.vlgmr.msrb.gmra.mxu3 %vm194_vm0, %v1206_v15  ;;  %v1248_v35 = vld [vmem:[%s1370_s6 + $0x18] sm:$0xf]  ;;  %v1254_v37 = vld [vmem:[%s1370_s6 + $0x68] sm:$0xf]  ;;  %v1250_v38 = vld [vmem:[%s1370_s6 + $0x40] sm:$0xf] }
  0x19   : > { %1201 = vmatmul.msk.f32.vlgmr.msrb.gmra.mxu0 %vm194_vm0, %v1200_v14  ;;  %573 = vmatpush.msrb.mxu2 %v1360_v7  ;;  %v1256_v39 = vld [vmem:[%s1370_s6 + $0x90] sm:$0xf]  ;;  %v1252_v40 = vld [vmem:[%s1370_s6 + $0x19] sm:$0xf]  ;;  %v1262_v41 = vld [vmem:[%s1370_s6 + $0x48] sm:$0xf] }
  0x1a   : > { %1203 = vmatmul.msk.f32.vlgmr.msrb.gmra.mxu1 %vm194_vm0, %v1202_v16  ;;  %522 = vmatpush.msrb.mxu0 %v1336_v3  ;;  %v1258_v42 = vld [vmem:[%s1370_s6 + $0x69] sm:$0xf]  ;;  %v1264_v43 = vld [vmem:[%s1370_s6 + $0x21] sm:$0xf] }
  0x1b   : > { %599 = vmatpush.msrb.mxu3 %v1324_v1  ;;  %548 = vmatpush.msrb.mxu1 %v1341_v4  ;;  %v1260_v44 = vld [vmem:[%s1370_s6 + $0x20] sm:$0xf] }
  0x20   : > { %1213 = vmatmul.msk.f32.vlgmr.msra.gmra.mxu2 %vm194_vm0, %v1212_v17  ;;  %1215 = vmatmul.msk.f32.vlgmr.msra.gmra.mxu3 %vm194_vm0, %v1214_v19 }
  0x21   : > { %1209 = vmatmul.msk.f32.vlgmr.msra.gmra.mxu0 %vm194_vm0, %v1208_v18  ;;  %678 = vmatpush.msra.mxu2 %v1329_v2 }
  0x22   : > { %1211 = vmatmul.msk.f32.vlgmr.msra.gmra.mxu1 %vm194_vm0, %v1210_v20  ;;  %625 = vmatpush.msra.mxu0 %v1346_v5 }
  0x23   : > { %703 = vmatpush.msra.mxu3 %v1355_v6  ;;  %650 = vmatpush.msra.mxu1 %v1375_v8 }
  0x28   : > { %1221 = vmatmul.msk.f32.vlgmr.msrb.gmra.mxu2 %vm194_vm0, %v1220_v21  ;;  %1223 = vmatmul.msk.f32.vlgmr.msrb.gmra.mxu3 %vm194_vm0, %v1222_v23 }
  0x29   : > { %1217 = vmatmul.msk.f32.vlgmr.msrb.gmra.mxu0 %vm194_vm0, %v1216_v22  ;;  %780 = vmatpush.msrb.mxu2 %v1341_v4 }
  0x2a   : > { %1219 = vmatmul.msk.f32.vlgmr.msrb.gmra.mxu1 %vm194_vm0, %v1218_v24  ;;  %728 = vmatpush.msrb.mxu0 %v1319_v0 }
  0x2b   : > { %805 = vmatpush.msrb.mxu3 %v1360_v7  ;;  %754 = vmatpush.msrb.mxu1 %v1336_v3 }
  0x30   : > { %1230 = vmatmul.msk.f32.vlgmr.msra.gmra.mxu2 %vm194_vm0, %v1229_v25  ;;  %1232 = vmatmul.msk.f32.vlgmr.msra.gmra.mxu3 %vm194_vm0, %v1231_v27 }
  0x31   : > { %1225 = vmatmul.msk.f32.vlgmr.msra.gmra.mxu0 %vm194_vm0, %v1224_v26  ;;  %882 = vmatpush.msra.mxu2 %v1375_v8 }
  0x32   : > { %1227 = vmatmul.msk.f32.vlgmr.msra.gmra.mxu1 %vm194_vm0, %v1226_v28  ;;  %831 = vmatpush.msra.mxu0 %v1324_v1 }
  0x33   : > { %910 = vmatpush.msra.mxu3 %v1329_v2  ;;  %857 = vmatpush.msra.mxu1 %v1346_v5 }
  0x38   : > { %1238 = vmatmul.msk.f32.vlgmr.msrb.gmra.mxu2 %vm194_vm0, %v1237_v29  ;;  %1240 = vmatmul.msk.f32.vlgmr.msrb.gmra.mxu3 %vm194_vm0, %v1239_v31 }
  0x39   : > { %1234 = vmatmul.msk.f32.vlgmr.msrb.gmra.mxu0 %vm194_vm0, %v1233_v30  ;;  %986 = vmatpush.msrb.mxu2 %v1336_v3 }
  0x3a   : > { %1236 = vmatmul.msk.f32.vlgmr.msrb.gmra.mxu1 %vm194_vm0, %v1235_v32  ;;  %935 = vmatpush.msrb.mxu0 %v1355_v6 }
  0x3b   : > { %1012 = vmatpush.msrb.mxu3 %v1341_v4  ;;  %960 = vmatpush.msrb.mxu1 %v1319_v0 }
  0x40   : > { %1246 = vmatmul.msk.f32.vlgmr.msra.gmra.mxu2 %vm194_vm0, %v1245_v33  ;;  %1249 = vmatmul.msk.f32.vlgmr.msra.gmra.mxu3 %vm194_vm0, %v1248_v35 }
  0x41   : > { %1242 = vmatmul.msk.f32.vlgmr.msra.gmra.mxu0 %vm194_vm0, %v1241_v34  ;;  %1089 = vmatpush.msra.mxu2 %v1346_v5 }
  0x42   : > { %1244 = vmatmul.msk.f32.vlgmr.msra.gmra.mxu1 %vm194_vm0, %v1243_v36  ;;  %1037 = vmatpush.msra.mxu0 %v1360_v7 }
  0x43   : > { %1114 = vmatpush.msra.mxu3 %v1375_v8  ;;  %1063 = vmatpush.msra.mxu1 %v1324_v1 }
  0x48   : > { %1255 = vmatmul.msk.f32.vlgmr.msrb.gmra.mxu2 %vm194_vm0, %v1254_v37  ;;  %1257 = vmatmul.msk.f32.vlgmr.msrb.gmra.mxu3 %vm194_vm0, %v1256_v39 }
  0x49   : > { %1251 = vmatmul.msk.f32.vlgmr.msrb.gmra.mxu0 %vm194_vm0, %v1250_v38 }
  0x4a   : > { %1253 = vmatmul.msk.f32.vlgmr.msrb.gmra.mxu1 %vm194_vm0, %v1252_v40 }
  0x50   : > { %1263 = vmatmul.msk.f32.vlgmr.msra.gmra.mxu2 %vm194_vm0, %v1262_v41  ;;  %1265 = vmatmul.msk.f32.vlgmr.msra.gmra.mxu3 %vm194_vm0, %v1264_v43 }
  0x51   : > { %1259 = vmatmul.msk.f32.vlgmr.msra.gmra.mxu0 %vm194_vm0, %v1258_v42 }
  0x52   : > { %1261 = vmatmul.msk.f32.vlgmr.msra.gmra.mxu1 %vm194_vm0, %v1260_v44 }
  0x8e   : > { %v215_v46 = vpop.f32.mrf.mxu0 }
  0x8f   : > { %v218_v47 = vadd.f32 %v1480_v45, %v215_v46  ;;  %v241_v48 = vpop.f32.mrf.mxu1 }
  0x91   : > { %v244_v49 = vadd.f32 %v241_v48, %v218_v47 }
  0x93   : > { %v266_v50 = vpop.f32.mrf.mxu2  ;;  %v292_v52 = vpop.f32.mrf.mxu3 }
  0x94   : > { %v269_v51 = vadd.f32 %v266_v50, %v244_v49 }
  0x96   : > { %v318_v53 = vpop.f32.mrf.mxu0  ;;  %v295_v54 = vadd.f32 %v292_v52, %v269_v51 }
  0x97   : > { %v343_v55 = vpop.f32.mrf.mxu1 }
  0x98   : > { %v321_v56 = vadd.f32 %v318_v53, %v295_v54 }
  0x9a   : > { %v346_v57 = vadd.f32 %v343_v55, %v321_v56 }
  0x9b   : > { %v369_v58 = vpop.f32.mrf.mxu2  ;;  %v395_v60 = vpop.f32.mrf.mxu3 }
  0x9c   : > { %v372_v59 = vadd.f32 %v369_v58, %v346_v57 }
  0x9e   : > { %v420_v61 = vpop.f32.mrf.mxu0  ;;  %v398_v62 = vadd.f32 %v395_v60, %v372_v59 }
  0x9f   : > { %v448_v63 = vpop.f32.mrf.mxu1 }
  0xa0   : > { %v423_v0 = vadd.f32 %v420_v61, %v398_v62  ;;  %v451_v1 = vadd.f32 %v1480_v45, %v448_v63 }
  0xa2   : > { %v424_v2 = vmax.f32 %v423_v0, 0.0 }
  0xa3   : > { %v473_v3 = vpop.f32.mrf.mxu2  ;;  %v498_v5 = vpop.f32.mrf.mxu3 }
  0xa4   : > { %426 = vst.msk [vmem:[%s1488_s16] sm:$0xf] %vm425_vm1, %v424_v2  ;;  %v476_v4 = vadd.f32 %v473_v3, %v451_v1 }
  0xa6   : > { %v524_v6 = vpop.f32.mrf.mxu0  ;;  %v501_v7 = vadd.f32 %v498_v5, %v476_v4 }
  0xa7   : > { %v550_v8 = vpop.f32.mrf.mxu1 }
  0xa8   : > { %v527_v9 = vadd.f32 %v524_v6, %v501_v7 }
  0xaa   : > { %v553_v10 = vadd.f32 %v550_v8, %v527_v9 }
  0xab   : > { %v575_v11 = vpop.f32.mrf.mxu2  ;;  %v601_v13 = vpop.f32.mrf.mxu3 }
  0xac   : > { %v578_v12 = vadd.f32 %v575_v11, %v553_v10 }
  0xae   : > { %v627_v14 = vpop.f32.mrf.mxu0  ;;  %v604_v15 = vadd.f32 %v601_v13, %v578_v12 }
  0xaf   : > { %v652_v16 = vpop.f32.mrf.mxu1 }
  0xb0   : > { %v630_v17 = vadd.f32 %v627_v14, %v604_v15 }
  0xb2   : > { %v655_v18 = vadd.f32 %v652_v16, %v630_v17 }
  0xb3   : > { %v680_v19 = vpop.f32.mrf.mxu2  ;;  %v705_v22 = vpop.f32.mrf.mxu3 }
  0xb4   : > { %v656_v20 = vmax.f32 %v655_v18, 0.0  ;;  %v683_v21 = vadd.f32 %v1480_v45, %v680_v19 }
  0xb6   : > { %v730_v23 = vpop.f32.mrf.mxu0  ;;  %1228 = vst.msk [vmem:[%s1488_s16 + $0x4] sm:$0xf] %vm425_vm1, %v656_v20  ;;  %v708_v24 = vadd.f32 %v705_v22, %v683_v21 }
  0xb7   : > { %v756_v25 = vpop.f32.mrf.mxu1 }
  0xb8   : > { %v733_v26 = vadd.f32 %v730_v23, %v708_v24 }
  0xba   : > { %v759_v27 = vadd.f32 %v756_v25, %v733_v26 }
  0xbb   : > { %v782_v28 = vpop.f32.mrf.mxu2  ;;  %v807_v30 = vpop.f32.mrf.mxu3 }
  0xbc   : > { %v785_v29 = vadd.f32 %v782_v28, %v759_v27 }
  0xbe   : > { %v833_v31 = vpop.f32.mrf.mxu0  ;;  %v810_v32 = vadd.f32 %v807_v30, %v785_v29 }
  0xbf   : > { %v859_v33 = vpop.f32.mrf.mxu1 }
  0xc0   : > { %v836_v34 = vadd.f32 %v833_v31, %v810_v32 }
  0xc2   : > { %v862_v35 = vadd.f32 %v859_v33, %v836_v34 }
  0xc3   : > { %v884_v36 = vpop.f32.mrf.mxu2  ;;  %v912_v38 = vpop.f32.mrf.mxu3 }
  0xc4   : > { %v887_v37 = vadd.f32 %v884_v36, %v862_v35  ;;  %v915_v39 = vadd.f32 %v1480_v45, %v912_v38 }
  0xc6   : > { %v937_v40 = vpop.f32.mrf.mxu0  ;;  %v888_v41 = vmax.f32 %v887_v37, 0.0 }
  0xc7   : > { %v962_v42 = vpop.f32.mrf.mxu1  ;;  %v940_v43 = vadd.f32 %v937_v40, %v915_v39 }
  0xc8   : > { %1247 = vst.msk [vmem:[%s1488_s16 + $0x8] sm:$0xf] %vm425_vm1, %v888_v41 }
  0xc9   : > { %v965_v44 = vadd.f32 %v962_v42, %v940_v43 }
  0xcb   : > { %v988_v46 = vpop.f32.mrf.mxu2  ;;  %v1014_v48 = vpop.f32.mrf.mxu3 }
  0xcc   : > { %v991_v47 = vadd.f32 %v988_v46, %v965_v44 }
  0xce   : > { %v1039_v49 = vpop.f32.mrf.mxu0  ;;  %v1017_v50 = vadd.f32 %v1014_v48, %v991_v47 }
  0xcf   : > { %v1065_v51 = vpop.f32.mrf.mxu1 }
  0xd0   : > { %v1042_v52 = vadd.f32 %v1039_v49, %v1017_v50 }
  0xd2   : > { %v1068_v53 = vadd.f32 %v1065_v51, %v1042_v52 }
  0xd3   : > { %v1091_v54 = vpop.f32.mrf.mxu2  ;;  %v1116_v56 = vpop.f32.mrf.mxu3 }
  0xd4   : > { %v1094_v55 = vadd.f32 %v1091_v54, %v1068_v53 }
  0xd6   : > { %v1119_v45 = vadd.f32 %v1116_v56, %v1094_v55 }
  0xd8   : > { %v1120_v57 = vmax.f32 %v1119_v45, 0.0 }
  0xda   : > { %1266 = vst.msk [vmem:[%s1488_s16 + $0xc] sm:$0xf] %vm425_vm1, %v1120_v57 }
  0xdb PF: > { %s13_s12 = sadd.s32 1, %s1286_s12  }
  0xdc   : > { %p10_p4 = scmp.ge.s32.totalorder %s13_s12, 4  }
  0xde   :  { %12 = sbr.rel (!%p10_p4) target bundleno = 1 (0x1), region = 90 }

// kernel: discriminator_forward.5
= control target key start
LH: loop header
LB: loop body
LE: loop exit
PB: predicated region body
PF: predicated region fallthrough
CT: control target
= control target key end

     0   :  { %s1056_s12 = smov 0   ;;  %s1284_s0 = inlined_call_operand.vmem [shape: f32[2,4,9,9,1], index: 0, kind: input, shape index: {}]   ;;  %s1285_s1 = inlined_call_operand.vmem [shape: f32[9,1,8], index: 1, kind: input, shape index: {}]   ;;  %s1286_s2 = inlined_call_operand.vmem [shape: f32[1,8], index: 2, kind: input, shape index: {}]   ;;  %s1287_s3 = inlined_call_operand.vmem [shape: f32[2,8,8,8], index: 3, kind: output, shape index: {}]  }
   0x1 LB: > { %s908_s13 = sadd.s32 4294967295, %s1033_s12   ;;  %p912_p0 = scmp.ge.s32.totalorder %s1033_s12, 1  ;;  %s1033_s12 = sphi %s1056_s12, %s13_s12  }
   0x2   : > { %p137_p1 = scmp.lt.s32.totalorder %s1033_s12, 3 }
   0x4   : > { %p138_p2 = pnand %p912_p0, %p137_p1 }
   0x5   : > { %p161_p3 = scmp.lt.s32.totalorder (!%p138_p2), %s908_s13, 1 }
   0x6   : > { %141 = sbr.rel (%p138_p2) target bundleno = 325 (0x145), region = 32 }
   0xb   : > { %v1035_v0 = vmov 0   ;;  %s1289_s13 = smov (!%p161_p3, %s908_s13), 1  ;;  %v1110_v40 = vld [vmem:[%s1285_s1] ss:$0 sm:$0xff]  ;;  %v1121_v43 = vld [vmem:[%s1285_s1 + $0x1] ss:$0 sm:$0xff] }
   0xc   : > { %1016 = vset.pattern.permute.xlu2 %v1035_v0  ;;  %1015 = vset.pattern.permute.xlu1 %v1035_v0  ;;  %s1004_s14 = smul.u32 576, %s1289_s13  ;;  %v1115_v41 = vld [vmem:[%s1286_s2] ss:$0 sm:$0xff]  ;;  %v1126_v44 = vld [vmem:[%s1285_s1 + $0x2] ss:$0 sm:$0xff]  ;;  %s1003_s11 = sshll.u32 %s1289_s13, 6 }
   0xd   : > { %1014 = vset.pattern.permute.xlu0 %v1035_v0  ;;  %v1134_v49 = vld [vmem:[%s1285_s1 + $0x3] ss:$0 sm:$0xff]  ;;  %v1142_v53 = vld [vmem:[%s1285_s1 + $0x4] ss:$0 sm:$0xff]  ;;  %v1149_v57 = vld [vmem:[%s1285_s1 + $0x5] ss:$0 sm:$0xff]  ;;  %s1180_s16 = scalar_lea.vmem %s1287_s3, %s1003_s11 }
   0xe   : > { %s1070_s17 = scalar_lea.vmem %s1284_s0, %s1004_s14  ;;  %v1156_v0 = vld [vmem:[%s1285_s1 + $0x6] ss:$0 sm:$0xff]  ;;  %vm298_vm0 = vcmask 64512  }
   0xf   : > { %v926_v1 = vld [vmem:[%s1070_s17 + $0x1b0] sm:$0xff]  ;;  %v216_v2 = vld [vmem:[%s1070_s17 + $0x1] sm:$0xff] }
  0x10   : > { %v193_v3 = vld [vmem:[%s1070_s17] sm:$0xff]  ;;  %243 = vperm.xlu2 %1016, %v926_v1   ;;  %219 = vperm.xlu1 %1015, %v216_v2   ;;  %v924_v6 = vld [vmem:[%s1070_s17 + $0x90] sm:$0xff] }
  0x11   : > { %196 = vperm.xlu0 %1014, %v193_v3   ;;  %v927_v4 = vld [vmem:[%s1070_s17 + $0x121] sm:$0xff]  ;;  %v930_v7 = vld [vmem:[%s1070_s17 + $0x11] sm:$0xff] }
  0x12   : > { %v925_v5 = vld [vmem:[%s1070_s17 + $0x120] sm:$0xff]  ;;  %v928_v9 = vld [vmem:[%s1070_s17 + $0x10] sm:$0xff] }
  0x13   : > { %v929_v8 = vld [vmem:[%s1070_s17 + $0xa0] sm:$0xff]  ;;  %v936_v10 = vld [vmem:[%s1070_s17 + $0x131] sm:$0xff] }
  0x14   : > { %v935_v11 = vld [vmem:[%s1070_s17 + $0x1c0] sm:$0xff]  ;;  %v934_v12 = vld [vmem:[%s1070_s17 + $0x130] sm:$0xff] }
  0x15   : > { %v939_v13 = vld [vmem:[%s1070_s17 + $0x21] sm:$0xff]  ;;  %v938_v14 = vld [vmem:[%s1070_s17 + $0xb0] sm:$0xff] }
  0x16   : > { %v937_v15 = vld [vmem:[%s1070_s17 + $0x20] sm:$0xff]  ;;  %v945_v17 = vld [vmem:[%s1070_s17 + $0x1d0] sm:$0xff] }
  0x17   : > { %v946_v16 = vld [vmem:[%s1070_s17 + $0x141] sm:$0xff]  ;;  %v949_v19 = vld [vmem:[%s1070_s17 + $0x31] sm:$0xff] }
  0x18   : > { %254 = vperm.xlu2 %1016, %v927_v4   ;;  %231 = vperm.xlu1 %1015, %v925_v5   ;;  %v944_v18 = vld [vmem:[%s1070_s17 + $0x140] sm:$0xff]  ;;  %v947_v21 = vld [vmem:[%s1070_s17 + $0x30] sm:$0xff] }
  0x19   : > { %208 = vperm.xlu0 %1014, %v924_v6   ;;  %v948_v20 = vld [vmem:[%s1070_s17 + $0xc0] sm:$0xff]  ;;  %v956_v22 = vld [vmem:[%s1070_s17 + $0x151] sm:$0xff] }
  0x1a   : > { %v955_v23 = vld [vmem:[%s1070_s17 + $0x1e0] sm:$0xff]  ;;  %v954_v24 = vld [vmem:[%s1070_s17 + $0x150] sm:$0xff] }
  0x1b   : > { %v959_v25 = vld [vmem:[%s1070_s17 + $0x41] sm:$0xff]  ;;  %v958_v26 = vld [vmem:[%s1070_s17 + $0xd0] sm:$0xff] }
  0x1c   : > { %v957_v27 = vld [vmem:[%s1070_s17 + $0x40] sm:$0xff]  ;;  %v965_v31 = vld [vmem:[%s1070_s17 + $0x1f0] sm:$0xff] }
  0x1d   : > { %v966_v30 = vld [vmem:[%s1070_s17 + $0x161] sm:$0xff]  ;;  %v969_v34 = vld [vmem:[%s1070_s17 + $0x51] sm:$0xff] }
  0x1e   : > { %v964_v32 = vld [vmem:[%s1070_s17 + $0x160] sm:$0xff]  ;;  %v967_v36 = vld [vmem:[%s1070_s17 + $0x50] sm:$0xff] }
  0x1f   : > { %v968_v35 = vld [vmem:[%s1070_s17 + $0xe0] sm:$0xff]  ;;  %v976_v51 = vld [vmem:[%s1070_s17 + $0x171] sm:$0xff] }
  0x20   : > { %289 = vperm.xlu2 %1016, %v930_v7   ;;  %278 = vperm.xlu1 %1015, %v929_v8   ;;  %v975_v52 = vld [vmem:[%s1070_s17 + $0x200] sm:$0xff]  ;;  %v974_v56 = vld [vmem:[%s1070_s17 + $0x170] sm:$0xff] }
  0x21   : > { %266 = vperm.xlu0 %1014, %v928_v9   ;;  %v1162_v3 = vld [vmem:[%s1285_s1 + $0x7] ss:$0 sm:$0xff]  ;;  %v978_v6 = vld [vmem:[%s1070_s17 + $0xf0] sm:$0xff] }
  0x22   : > { %v979_v5 = vld [vmem:[%s1070_s17 + $0x61] sm:$0xff] }
  0x28   : > { %319 = vperm.xlu2 %1016, %v930_v7   ;;  %311 = vperm.xlu1 %1015, %v929_v8   ;;  %v1169_v7 = vld [vmem:[%s1285_s1 + $0x8] ss:$0 sm:$0xff] }
  0x29   : > { %303 = vperm.xlu0 %1014, %v928_v9  }
  0x30   : > { %345 = vperm.xlu2 %1016, %v936_v10   ;;  %337 = vperm.xlu1 %1015, %v935_v11   ;;  %v977_v10 = vld [vmem:[%s1070_s17 + $0x60] sm:$0xff] }
  0x31   : > { %328 = vperm.xlu0 %1014, %v934_v12  }
  0x38   : > { %371 = vperm.xlu2 %1016, %v939_v13   ;;  %363 = vperm.xlu1 %1015, %v938_v14  }
  0x39   : > { %354 = vperm.xlu0 %1014, %v937_v15  }
  0x40   : > { %398 = vperm.xlu2 %1016, %v939_v13   ;;  %390 = vperm.xlu1 %1015, %v938_v14  }
  0x41   : > { %382 = vperm.xlu0 %1014, %v937_v15  }
  0x48   : > { %424 = vperm.xlu2 %1016, %v946_v16   ;;  %416 = vperm.xlu1 %1015, %v945_v17  }
  0x49   : > { %407 = vperm.xlu0 %1014, %v944_v18  }
  0x50   : > { %450 = vperm.xlu2 %1016, %v949_v19   ;;  %442 = vperm.xlu1 %1015, %v948_v20  }
  0x51   : > { %433 = vperm.xlu0 %1014, %v947_v21  }
  0x58   : > { %477 = vperm.xlu2 %1016, %v949_v19   ;;  %469 = vperm.xlu1 %1015, %v948_v20  }
  0x59   : > { %461 = vperm.xlu0 %1014, %v947_v21  }
  0x60   : > { %503 = vperm.xlu2 %1016, %v956_v22   ;;  %495 = vperm.xlu1 %1015, %v955_v23  }
  0x61   : > { %486 = vperm.xlu0 %1014, %v954_v24  }
  0x68   : > { %529 = vperm.xlu2 %1016, %v959_v25   ;;  %521 = vperm.xlu1 %1015, %v958_v26  }
  0x69   : > { %512 = vperm.xlu0 %1014, %v957_v27  }
  0x6a   : > { %v244_v28 = vpop.permute.xlu2 %243 }
  0x6b   : > { %v249_v60 = vmul.f32 %v1142_v53, %v244_v28 }
  0x70   : > { %556 = vperm.xlu2 %1016, %v959_v25   ;;  %548 = vperm.xlu1 %1015, %v958_v26  }
  0x71   : > { %540 = vperm.xlu0 %1014, %v957_v27  }
  0x72   : > { %v255_v29 = vpop.permute.xlu2 %254 }
  0x73   : > { %v260_v2 = vmul.f32 %v1149_v57, %v255_v29 }
  0x78   : > { %582 = vperm.xlu2 %1016, %v966_v30   ;;  %574 = vperm.xlu1 %1015, %v965_v31   ;;  %v986_v30 = vld [vmem:[%s1070_s17 + $0x181] sm:$0xff]  ;;  %v985_v31 = vld [vmem:[%s1070_s17 + $0x210] sm:$0xff] }
  0x79   : > { %565 = vperm.xlu0 %1014, %v964_v32  }
  0x7a   : > { %v290_v33 = vpop.permute.xlu2 %289 }
  0x7b   : > { %v295_v13 = vmul.f32 %v1169_v7, %v290_v33 }
  0x80   : > { %608 = vperm.xlu2 %1016, %v969_v34   ;;  %600 = vperm.xlu1 %1015, %v968_v35  }
  0x81   : > { %591 = vperm.xlu0 %1014, %v967_v36  }
  0x82   : > { %v1105_v37 = vpop.permute.xlu2 %319  ;;  %v220_v38 = vpop.permute.xlu1 %219 }
  0x83   : > { %v197_v39 = vpop.permute.xlu0 %196  ;;  %v225_v54 = vmul.f32 %v1126_v44, %v220_v38  ;;  %v322_v24 = vmul.f32 %v1126_v44, %v1105_v37 }
  0x84   : > { %v202_v42 = vmul.f32 %v1110_v40, %v197_v39 }
  0x86   : > { %v203_v48 = vadd.f32 %v1115_v41, %v202_v42 }
  0x88   : > { %635 = vperm.xlu2 %1016, %v969_v34   ;;  %627 = vperm.xlu1 %1015, %v968_v35   ;;  %v984_v34 = vld [vmem:[%s1070_s17 + $0x180] sm:$0xff] }
  0x89   : > { %619 = vperm.xlu0 %1014, %v967_v36  }
  0x8a   : > { %v1128_v45 = vpop.permute.xlu2 %345  ;;  %v232_v46 = vpop.permute.xlu1 %231 }
  0x8b   : > { %v209_v47 = vpop.permute.xlu0 %208  ;;  %v237_v58 = vmul.f32 %v1134_v49, %v232_v46  ;;  %v348_v36 = vmul.f32 %v1149_v57, %v1128_v45 }
  0x8c   : > { %v214_v50 = vmul.f32 %v1121_v43, %v209_v47  ;;  %v991_v47 = vld [vmem:[%s1070_s17 + $0x70] sm:$0xff] }
  0x8e   : > { %v215_v55 = vadd.f32 %v214_v50, %v203_v48  ;;  %v988_v48 = vld [vmem:[%s1070_s17 + $0x100] sm:$0xff] }
  0x90   : > { %v226_v59 = vadd.f32 %v225_v54, %v215_v55  ;;  %661 = vperm.xlu2 %1016, %v976_v51   ;;  %653 = vperm.xlu1 %1015, %v975_v52  }
  0x91   : > { %644 = vperm.xlu0 %1014, %v974_v56  }
  0x92   : > { %v238_v61 = vadd.f32 %v237_v58, %v226_v59  ;;  %v372_v62 = vpop.permute.xlu2 %371  ;;  %v279_v63 = vpop.permute.xlu1 %278 }
  0x93   : > { %v267_v1 = vpop.permute.xlu0 %266  ;;  %v284_v11 = vmul.f32 %v1162_v3, %v279_v63  ;;  %v374_v52 = vmul.f32 %v1169_v7, %v372_v62  ;;  %v993_v63 = vld [vmem:[%s1070_s17 + $0x71] sm:$0xff] }
  0x94   : > { %v250_v4 = vadd.f32 %v249_v60, %v238_v61  ;;  %v272_v9 = vmul.f32 %v1156_v0, %v267_v1  ;;  %v994_v61 = vld [vmem:[%s1070_s17 + $0x190] sm:$0xff] }
  0x96   : > { %v261_v8 = vadd.f32 %v260_v2, %v250_v4 }
  0x98   : > { %v273_v12 = vadd.f32 %v272_v9, %v261_v8  ;;  %687 = vperm.xlu2 %1016, %v979_v5   ;;  %679 = vperm.xlu1 %1015, %v978_v6  }
  0x99   : > { %670 = vperm.xlu0 %1014, %v977_v10  }
  0x9a   : > { %v285_v14 = vadd.f32 %v284_v11, %v273_v12  ;;  %v399_v15 = vpop.permute.xlu2 %398  ;;  %v312_v16 = vpop.permute.xlu1 %311  ;;  %v997_v11 = vld [vmem:[%s1070_s17 + $0x80] sm:$0xff]  ;;  %v996_v12 = vld [vmem:[%s1070_s17 + $0x191] sm:$0xff] }
  0x9b   : > { %v304_v17 = vpop.permute.xlu0 %303  ;;  %v314_v21 = vmul.f32 %v1121_v43, %v312_v16  ;;  %v401_v4 = vmul.f32 %v1126_v44, %v399_v15  ;;  %v995_v16 = vld [vmem:[%s1070_s17 + $0x220] sm:$0xff] }
  0x9c   : > { %v296_v18 = vadd.f32 %v295_v13, %v285_v14  ;;  %v306_v19 = vmul.f32 %v1110_v40, %v304_v17 }
  0x9e   : > { %v297_v20 = vmax.f32 %v296_v18, 0.0  ;;  %v307_v22 = vadd.f32 %v1115_v41, %v306_v19 }
  0xa0   : > { %299 = vst.msk [vmem:[%s1180_s16] sm:$0xff] %vm298_vm0, %v297_v20  ;;  %v315_v23 = vadd.f32 %v314_v21, %v307_v22  ;;  %714 = vperm.xlu2 %1016, %v979_v5   ;;  %706 = vperm.xlu1 %1015, %v978_v6  }
  0xa1   : > { %698 = vperm.xlu0 %1014, %v977_v10  }
  0xa2   : > { %v425_v25 = vpop.permute.xlu2 %424  ;;  %v338_v26 = vpop.permute.xlu1 %337  ;;  %v323_v28 = vadd.f32 %v322_v24, %v315_v23  ;;  %v999_v23 = vld [vmem:[%s1070_s17 + $0x81] sm:$0xff] }
  0xa3   : > { %v329_v27 = vpop.permute.xlu0 %328  ;;  %v340_v32 = vmul.f32 %v1142_v53, %v338_v26  ;;  %v427_v15 = vmul.f32 %v1149_v57, %v425_v25 }
  0xa4   : > { %v331_v29 = vmul.f32 %v1134_v49, %v329_v27  ;;  %v998_v27 = vld [vmem:[%s1070_s17 + $0x110] sm:$0xff] }
  0xa6   : > { %v332_v33 = vadd.f32 %v331_v29, %v323_v28 }
  0xa8   : > { %v341_v35 = vadd.f32 %v340_v32, %v332_v33  ;;  %740 = vperm.xlu2 %1016, %v986_v30   ;;  %732 = vperm.xlu1 %1015, %v985_v31  }
  0xa9   : > { %723 = vperm.xlu0 %1014, %v984_v34  }
  0xaa   : > { %v451_v37 = vpop.permute.xlu2 %450  ;;  %v364_v38 = vpop.permute.xlu1 %363  ;;  %v349_v42 = vadd.f32 %v348_v36, %v341_v35 }
  0xab   : > { %v355_v39 = vpop.permute.xlu0 %354  ;;  %v366_v50 = vmul.f32 %v1162_v3, %v364_v38  ;;  %v453_v28 = vmul.f32 %v1169_v7, %v451_v37 }
  0xac   : > { %v357_v46 = vmul.f32 %v1156_v0, %v355_v39 }
  0xae   : > { %v358_v51 = vadd.f32 %v357_v46, %v349_v42 }
  0xb0   : > { %v367_v54 = vadd.f32 %v366_v50, %v358_v51  ;;  %777 = vperm.xlu2 %1016, %v991_v47   ;;  %758 = vperm.xlu1 %1015, %v988_v48  }
  0xb1   : > { %749 = vperm.xlu0 %1014, %v991_v47  }
  0xb2   : > { %v375_v45 = vadd.f32 %v374_v52, %v367_v54  ;;  %v478_v55 = vpop.permute.xlu2 %477  ;;  %v391_v56 = vpop.permute.xlu1 %390 }
  0xb3   : > { %v383_v58 = vpop.permute.xlu0 %382  ;;  %v393_v1 = vmul.f32 %v1121_v43, %v391_v56  ;;  %v480_v37 = vmul.f32 %v1126_v44, %v478_v55 }
  0xb4   : > { %v376_v59 = vmax.f32 %v375_v45, 0.0  ;;  %v385_v60 = vmul.f32 %v1110_v40, %v383_v58 }
  0xb6   : > { %940 = vst.msk [vmem:[%s1180_s16 + $0x8] sm:$0xff] %vm298_vm0, %v376_v59  ;;  %v386_v62 = vadd.f32 %v1115_v41, %v385_v60 }
  0xb8   : > { %v394_v2 = vadd.f32 %v393_v1, %v386_v62  ;;  %802 = vperm.xlu2 %1016, %v994_v61   ;;  %793 = vperm.xlu1 %1015, %v993_v63  }
  0xb9   : > { %785 = vperm.xlu0 %1014, %v988_v48  }
  0xba   : > { %v504_v5 = vpop.permute.xlu2 %503  ;;  %v417_v6 = vpop.permute.xlu1 %416  ;;  %v402_v9 = vadd.f32 %v401_v4, %v394_v2 }
  0xbb   : > { %v408_v8 = vpop.permute.xlu0 %407  ;;  %v419_v13 = vmul.f32 %v1142_v53, %v417_v6  ;;  %v506_v54 = vmul.f32 %v1149_v57, %v504_v5 }
  0xbc   : > { %v410_v10 = vmul.f32 %v1134_v49, %v408_v8 }
  0xbe   : > { %v411_v14 = vadd.f32 %v410_v10, %v402_v9 }
  0xc0   : > { %v420_v17 = vadd.f32 %v419_v13, %v411_v14  ;;  %828 = vperm.xlu2 %1016, %v997_v11   ;;  %819 = vperm.xlu1 %1015, %v996_v12  }
  0xc1   : > { %811 = vperm.xlu0 %1014, %v995_v16  }
  0xc2   : > { %v443_v18 = vpop.permute.xlu1 %442  ;;  %v530_v19 = vpop.permute.xlu2 %529  ;;  %v428_v21 = vadd.f32 %v427_v15, %v420_v17 }
  0xc3   : > { %v434_v20 = vpop.permute.xlu0 %433  ;;  %v445_v24 = vmul.f32 %v1162_v3, %v443_v18  ;;  %v532_v61 = vmul.f32 %v1169_v7, %v530_v19 }
  0xc4   : > { %v436_v22 = vmul.f32 %v1156_v0, %v434_v20 }
  0xc6   : > { %v437_v26 = vadd.f32 %v436_v22, %v428_v21 }
  0xc8   : > { %v446_v29 = vadd.f32 %v445_v24, %v437_v26  ;;  %845 = vperm.xlu2 %1016, %v999_v23   ;;  %766 = vperm.xlu1 %1015, %v993_v63  }
  0xc9   : > { %837 = vperm.xlu0 %1014, %v998_v27  }
  0xca   : > { %v454_v30 = vadd.f32 %v453_v28, %v446_v29  ;;  %v470_v25 = vpop.permute.xlu1 %469  ;;  %v557_v34 = vpop.permute.xlu2 %556 }
  0xcb   : > { %v462_v31 = vpop.permute.xlu0 %461  ;;  %v472_v35 = vmul.f32 %v1121_v43, %v470_v25  ;;  %v559_v11 = vmul.f32 %v1126_v44, %v557_v34 }
  0xcc   : > { %v455_v32 = vmax.f32 %v454_v30, 0.0  ;;  %v464_v33 = vmul.f32 %v1110_v40, %v462_v31 }
  0xce   : > { %950 = vst.msk [vmem:[%s1180_s16 + $0x10] sm:$0xff] %vm298_vm0, %v455_v32  ;;  %v465_v36 = vadd.f32 %v1115_v41, %v464_v33 }
  0xd0   : > { %v473_v38 = vadd.f32 %v472_v35, %v465_v36 }
  0xd2   : > { %v496_v39 = vpop.permute.xlu1 %495  ;;  %v481_v46 = vadd.f32 %v480_v37, %v473_v38  ;;  %v583_v51 = vpop.permute.xlu2 %582 }
  0xd3   : > { %v487_v42 = vpop.permute.xlu0 %486  ;;  %v498_v48 = vmul.f32 %v1142_v53, %v496_v39  ;;  %v585_v20 = vmul.f32 %v1149_v57, %v583_v51 }
  0xd4   : > { %v489_v47 = vmul.f32 %v1134_v49, %v487_v42 }
  0xd6   : > { %v490_v50 = vadd.f32 %v489_v47, %v481_v46 }
  0xd8   : > { %v499_v52 = vadd.f32 %v498_v48, %v490_v50 }
  0xda   : > { %v522_v45 = vpop.permute.xlu1 %521  ;;  %v507_v58 = vadd.f32 %v506_v54, %v499_v52  ;;  %v609_v1 = vpop.permute.xlu2 %608 }
  0xdb   : > { %v513_v56 = vpop.permute.xlu0 %512  ;;  %v524_v55 = vmul.f32 %v1162_v3, %v522_v45  ;;  %v611_v29 = vmul.f32 %v1169_v7, %v609_v1 }
  0xdc   : > { %v515_v59 = vmul.f32 %v1156_v0, %v513_v56 }
  0xde   : > { %v516_v60 = vadd.f32 %v515_v59, %v507_v58 }
  0xe0   : > { %v525_v63 = vadd.f32 %v524_v55, %v516_v60 }
  0xe2   : > { %v533_v62 = vadd.f32 %v532_v61, %v525_v63  ;;  %v549_v2 = vpop.permute.xlu1 %548  ;;  %v636_v13 = vpop.permute.xlu2 %635 }
  0xe3   : > { %v541_v4 = vpop.permute.xlu0 %540  ;;  %v551_v5 = vmul.f32 %v1121_v43, %v549_v2  ;;  %v638_v39 = vmul.f32 %v1126_v44, %v636_v13 }
  0xe4   : > { %v534_v6 = vmax.f32 %v533_v62, 0.0  ;;  %v543_v8 = vmul.f32 %v1110_v40, %v541_v4 }
  0xe6   : > { %960 = vst.msk [vmem:[%s1180_s16 + $0x18] sm:$0xff] %vm298_vm0, %v534_v6  ;;  %v544_v9 = vadd.f32 %v1115_v41, %v543_v8 }
  0xe8   : > { %v552_v10 = vadd.f32 %v551_v5, %v544_v9 }
  0xea   : > { %v575_v12 = vpop.permute.xlu1 %574  ;;  %v560_v16 = vadd.f32 %v559_v11, %v552_v10  ;;  %v662_v26 = vpop.permute.xlu2 %661 }
  0xeb   : > { %v566_v14 = vpop.permute.xlu0 %565  ;;  %v577_v15 = vmul.f32 %v1142_v53, %v575_v12  ;;  %v664_v45 = vmul.f32 %v1149_v57, %v662_v26 }
  0xec   : > { %v568_v17 = vmul.f32 %v1134_v49, %v566_v14 }
  0xee   : > { %v569_v18 = vadd.f32 %v568_v17, %v560_v16 }
  0xf0   : > { %v578_v19 = vadd.f32 %v577_v15, %v569_v18 }
  0xf2   : > { %v601_v21 = vpop.permute.xlu1 %600  ;;  %v586_v23 = vadd.f32 %v585_v20, %v578_v19  ;;  %v688_v38 = vpop.permute.xlu2 %687 }
  0xf3   : > { %v592_v22 = vpop.permute.xlu0 %591  ;;  %v603_v27 = vmul.f32 %v1162_v3, %v601_v21  ;;  %v690_v63 = vmul.f32 %v1169_v7, %v688_v38 }
  0xf4   : > { %v594_v24 = vmul.f32 %v1156_v0, %v592_v22 }
  0xf6   : > { %v595_v28 = vadd.f32 %v594_v24, %v586_v23 }
  0xf8   : > { %v604_v30 = vadd.f32 %v603_v27, %v595_v28 }
  0xfa   : > { %v612_v25 = vadd.f32 %v611_v29, %v604_v30  ;;  %v628_v31 = vpop.permute.xlu1 %627  ;;  %v715_v54 = vpop.permute.xlu2 %714 }
  0xfb   : > { %v620_v32 = vpop.permute.xlu0 %619  ;;  %v630_v35 = vmul.f32 %v1121_v43, %v628_v31  ;;  %v717_v19 = vmul.f32 %v1126_v44, %v715_v54 }
  0xfc   : > { %v613_v33 = vmax.f32 %v612_v25, 0.0  ;;  %v622_v34 = vmul.f32 %v1110_v40, %v620_v32 }
  0xfe   : > { %970 = vst.msk [vmem:[%s1180_s16 + $0x20] sm:$0xff] %vm298_vm0, %v613_v33  ;;  %v623_v36 = vadd.f32 %v1115_v41, %v622_v34 }
 0x100   : > { %v631_v37 = vadd.f32 %v630_v35, %v623_v36 }
 0x102   : > { %v654_v42 = vpop.permute.xlu1 %653  ;;  %v639_v47 = vadd.f32 %v638_v39, %v631_v37  ;;  %v741_v4 = vpop.permute.xlu2 %740 }
 0x103   : > { %v645_v46 = vpop.permute.xlu0 %644  ;;  %v656_v50 = vmul.f32 %v1142_v53, %v654_v42  ;;  %v743_v34 = vmul.f32 %v1149_v57, %v741_v4 }
 0x104   : > { %v647_v48 = vmul.f32 %v1134_v49, %v645_v46 }
 0x106   : > { %v648_v51 = vadd.f32 %v647_v48, %v639_v47 }
 0x108   : > { %v657_v52 = vadd.f32 %v656_v50, %v648_v51 }
 0x10a   : > { %v680_v56 = vpop.permute.xlu1 %679  ;;  %v665_v59 = vadd.f32 %v664_v45, %v657_v52  ;;  %v778_v10 = vpop.permute.xlu2 %777 }
 0x10b   : > { %v671_v58 = vpop.permute.xlu0 %670  ;;  %v682_v60 = vmul.f32 %v1162_v3, %v680_v56  ;;  %v780_v18 = vmul.f32 %v1110_v40, %v778_v10 }
 0x10c   : > { %v673_v55 = vmul.f32 %v1156_v0, %v671_v58 }
 0x10d   : > { %v781_v24 = vadd.f32 %v1115_v41, %v780_v18 }
 0x10e   : > { %v674_v61 = vadd.f32 %v673_v55, %v665_v59 }
 0x110   : > { %v683_v1 = vadd.f32 %v682_v60, %v674_v61 }
 0x112   : > { %v691_v62 = vadd.f32 %v690_v63, %v683_v1  ;;  %v707_v2 = vpop.permute.xlu1 %706  ;;  %v803_v17 = vpop.permute.xlu2 %802 }
 0x113   : > { %v699_v6 = vpop.permute.xlu0 %698  ;;  %v709_v16 = vmul.f32 %v1121_v43, %v707_v2  ;;  %v805_v32 = vmul.f32 %v1134_v49, %v803_v17 }
 0x114   : > { %v692_v8 = vmax.f32 %v691_v62, 0.0  ;;  %v701_v11 = vmul.f32 %v1110_v40, %v699_v6 }
 0x116   : > { %980 = vst.msk [vmem:[%s1180_s16 + $0x28] sm:$0xff] %vm298_vm0, %v692_v8  ;;  %v702_v13 = vadd.f32 %v1115_v41, %v701_v11 }
 0x118   : > { %v710_v15 = vadd.f32 %v709_v16, %v702_v13 }
 0x11a   : > { %v733_v5 = vpop.permute.xlu1 %732  ;;  %v718_v22 = vadd.f32 %v717_v19, %v710_v15  ;;  %v829_v31 = vpop.permute.xlu2 %828 }
 0x11b   : > { %v724_v9 = vpop.permute.xlu0 %723  ;;  %v735_v30 = vmul.f32 %v1142_v53, %v733_v5 }
 0x11c   : > { %v726_v20 = vmul.f32 %v1134_v49, %v724_v9  ;;  %v831_v49 = vmul.f32 %v1156_v0, %v829_v31 }
 0x11e   : > { %v727_v27 = vadd.f32 %v726_v20, %v718_v22 }
 0x120   : > { %v736_v40 = vadd.f32 %v735_v30, %v727_v27 }
 0x122   : > { %v759_v12 = vpop.permute.xlu1 %758  ;;  %v744_v38 = vadd.f32 %v743_v34, %v736_v40  ;;  %v846_v48 = vpop.permute.xlu2 %845 }
 0x123   : > { %v750_v14 = vpop.permute.xlu0 %749  ;;  %v761_v46 = vmul.f32 %v1162_v3, %v759_v12 }
 0x124   : > { %v752_v35 = vmul.f32 %v1156_v0, %v750_v14 }
 0x126   : > { %v753_v39 = vadd.f32 %v752_v35, %v744_v38 }
 0x128   : > { %v762_v50 = vadd.f32 %v761_v46, %v753_v39 }
 0x12a   : > { %v794_v21 = vpop.permute.xlu1 %793 }
 0x12b   : > { %v786_v23 = vpop.permute.xlu0 %785  ;;  %v796_v28 = vmul.f32 %v1126_v44, %v794_v21 }
 0x12c   : > { %v788_v26 = vmul.f32 %v1121_v43, %v786_v23 }
 0x12e   : > { %v789_v29 = vadd.f32 %v788_v26, %v781_v24 }
 0x130   : > { %v797_v25 = vadd.f32 %v796_v28, %v789_v29 }
 0x132   : > { %v820_v33 = vpop.permute.xlu1 %819  ;;  %v806_v41 = vadd.f32 %v805_v32, %v797_v25 }
 0x133   : > { %v812_v36 = vpop.permute.xlu0 %811  ;;  %v822_v44 = vmul.f32 %v1149_v57, %v820_v33  ;;  %v848_v57 = vmul.f32 %v1169_v7, %v846_v48 }
 0x134   : > { %v814_v43 = vmul.f32 %v1142_v53, %v812_v36 }
 0x136   : > { %v815_v37 = vadd.f32 %v814_v43, %v806_v41 }
 0x138   : > { %v823_v42 = vadd.f32 %v822_v44, %v815_v37 }
 0x13a   : > { %v767_v47 = vpop.permute.xlu1 %766  ;;  %v832_v54 = vadd.f32 %v831_v49, %v823_v42 }
 0x13b   : > { %v769_v51 = vmul.f32 %v1169_v7, %v767_v47  ;;  %v838_v52 = vpop.permute.xlu0 %837 }
 0x13c   : > { %v840_v53 = vmul.f32 %v1162_v3, %v838_v52 }
 0x13d   : > { %v770_v45 = vadd.f32 %v769_v51, %v762_v50 }
 0x13e   : > { %v841_v56 = vadd.f32 %v840_v53, %v832_v54 }
 0x13f   : > { %v771_v58 = vmax.f32 %v770_v45, 0.0 }
 0x140   : > { %v849_v59 = vadd.f32 %v848_v57, %v841_v56 }
 0x141   : > { %990 = vst.msk [vmem:[%s1180_s16 + $0x30] sm:$0xff] %vm298_vm0, %v771_v58 }
 0x142   : > { %v850_v55 = vmax.f32 %v849_v59, 0.0 }
 0x144   : > { %1000 = vst.msk [vmem:[%s1180_s16 + $0x38] sm:$0xff] %vm298_vm0, %v850_v55 }
 0x145 PF: > { %s13_s12 = sadd.s32 1, %s1033_s12  }
 0x146   : > { %p10_p4 = scmp.ge.s32.totalorder %s13_s12, 4  }
 0x148   :  { %12 = sbr.rel (!%p10_p4) target bundleno = 1 (0x1), region = 110 }

// kernel: discriminator_forward.9
= control target key start
LH: loop header
LB: loop body
LE: loop exit
PB: predicated region body
PF: predicated region fallthrough
CT: control target
= control target key end

     0   :  { %s655_s14 = smov 0   ;;  %s922_s0 = inlined_call_operand.vmem [shape: f32[2,1,3,3,64], index: 0, kind: input, shape index: {}]   ;;  %s923_s1 = inlined_call_operand.vmem [shape: f32[9,64,1], index: 1, kind: input, shape index: {}]   ;;  %s924_s2 = inlined_call_operand.<no memory space> [shape: f32[1,1], index: 2, kind: input, shape index: {}]   ;;  %s925_s3 = inlined_call_operand.vmem [shape: f32[2,1,1,1], index: 3, kind: output, shape index: {}]  }
   0x1   :  { %v8_v0 = vstv %s924_s2 }
   0x2   :  { %9 = vst [vmem:[#allocation2] sm:$0x1] %v8_v0 }
   0x3 LB: > { %s528_s15 = sadd.s32 4294967295, %s630_s14   ;;  %p532_p0 = scmp.ge.s32.totalorder %s630_s14, 1  ;;  %s630_s14 = sphi %s655_s14, %s15_s14  }
   0x4   : > { %p139_p1 = scmp.lt.s32.totalorder %s630_s14, 3 }
   0x6   : > { %p140_p2 = pnand %p532_p0, %p139_p1 }
   0x7   : > { %p719_p3 = scmp.lt.s32.totalorder (!%p140_p2), %s528_s15, 1 }
   0x8   : > { %143 = sbr.rel (%p140_p2) target bundleno = 190 (0xbe), region = 32 }
   0xd   : > { %v178_v1 = vld [vmem:[%s923_s1 + $0x38] sm:$0xff]  ;;  %v177_v2 = vld [vmem:[%s923_s1 + $0x30] sm:$0xff]  ;;  %v176_v5 = vld [vmem:[%s923_s1 + $0x28] sm:$0xff]  ;;  %s928_s15 = smov (!%p719_p3, %s528_s15), 1  ;;  %vm252_vm0 = vcmask 523264   ;;  %vm479_vm1 = vcmask 0  }
   0xe   : > { %264 = vmatpush.msra.mxu0 %v178_v1  ;;  %v549_v3 = vld [vmem:[%s923_s1 + $0xb8] sm:$0xff]  ;;  %v548_v4 = vld [vmem:[%s923_s1 + $0xb0] sm:$0xff]  ;;  %v547_v8 = vld [vmem:[%s923_s1 + $0xa8] sm:$0xff]  ;;  %s615_s5 = smul.u32 12, %s928_s15  ;;  %s168_s10 = scalar_lea.vmem %s925_s3, %s928_s15 }
   0xf   : > { %314 = vmatpush.msra.mxu2 %v549_v3  ;;  %v557_v6 = vld [vmem:[%s923_s1 + $0xf8] sm:$0xff]  ;;  %v556_v9 = vld [vmem:[%s923_s1 + $0xf0] sm:$0xff]  ;;  %v175_v10 = vld [vmem:[%s923_s1 + $0x20] sm:$0xff] }
  0x10   : > { %v541_v7 = vld [vmem:[%s923_s1 + $0x78] sm:$0xff]  ;;  %265 = vmatpush.msra.mxu0 %v177_v2  ;;  %340 = vmatpush.msra.mxu3 %v557_v6  ;;  %v540_v11 = vld [vmem:[%s923_s1 + $0x70] sm:$0xff]  ;;  %v555_v12 = vld [vmem:[%s923_s1 + $0xe8] sm:$0xff]  ;;  %s805_s25 = scalar_lea.vmem %s922_s0, %s615_s5 }
  0x11   : > { %315 = vmatpush.msra.mxu2 %v548_v4  ;;  %289 = vmatpush.msra.mxu1 %v541_v7  ;;  %v546_v13 = vld [vmem:[%s923_s1 + $0xa0] sm:$0xff]  ;;  %v539_v14 = vld [vmem:[%s923_s1 + $0x68] sm:$0xff]  ;;  %v174_v15 = vld [vmem:[%s923_s1 + $0x18] sm:$0xff] }
  0x12   : > { %266 = vmatpush.msra.mxu0 %v176_v5  ;;  %341 = vmatpush.msra.mxu3 %v556_v9  ;;  %v554_v16 = vld [vmem:[%s923_s1 + $0xe0] sm:$0xff]  ;;  %v545_v17 = vld [vmem:[%s923_s1 + $0x98] sm:$0xff]  ;;  %v173_v19 = vld [vmem:[%s923_s1 + $0x10] sm:$0xff] }
  0x13   : > { %316 = vmatpush.msra.mxu2 %v547_v8  ;;  %290 = vmatpush.msra.mxu1 %v540_v11  ;;  %v538_v18 = vld [vmem:[%s923_s1 + $0x60] sm:$0xff]  ;;  %v553_v20 = vld [vmem:[%s923_s1 + $0xd8] sm:$0xff]  ;;  %v544_v21 = vld [vmem:[%s923_s1 + $0x90] sm:$0xff] }
  0x14   : > { %267 = vmatpush.msra.mxu0 %v175_v10  ;;  %342 = vmatpush.msra.mxu3 %v555_v12  ;;  %v537_v22 = vld [vmem:[%s923_s1 + $0x58] sm:$0xff]  ;;  %v172_v23 = vld [vmem:[%s923_s1 + $0x8] sm:$0xff]  ;;  %v552_v24 = vld [vmem:[%s923_s1 + $0xd0] sm:$0xff] }
  0x15   : > { %317 = vmatpush.msra.mxu2 %v546_v13  ;;  %291 = vmatpush.msra.mxu1 %v539_v14  ;;  %v543_v25 = vld [vmem:[%s923_s1 + $0x88] sm:$0xff]  ;;  %v536_v26 = vld [vmem:[%s923_s1 + $0x50] sm:$0xff]  ;;  %v171_v27 = vld [vmem:[%s923_s1] sm:$0xff] }
  0x16   : > { %268 = vmatpush.msra.mxu0 %v174_v15  ;;  %343 = vmatpush.msra.mxu3 %v554_v16  ;;  %v551_v28 = vld [vmem:[%s923_s1 + $0xc8] sm:$0xff]  ;;  %v565_v29 = vld [vmem:[%s923_s1 + $0x138] sm:$0xff]  ;;  %v542_v30 = vld [vmem:[%s923_s1 + $0x80] sm:$0xff] }
  0x17   : > { %318 = vmatpush.msra.mxu2 %v545_v17  ;;  %292 = vmatpush.msra.mxu1 %v538_v18  ;;  %v581_v31 = vld [vmem:[%s923_s1 + $0x1b8] sm:$0xff]  ;;  %v535_v32 = vld [vmem:[%s923_s1 + $0x48] sm:$0xff]  ;;  %v564_v33 = vld [vmem:[%s923_s1 + $0x130] sm:$0xff] }
  0x18   : > { %269 = vmatpush.msra.mxu0 %v173_v19  ;;  %344 = vmatpush.msra.mxu3 %v553_v20  ;;  %v550_v34 = vld [vmem:[%s923_s1 + $0xc0] sm:$0xff]  ;;  %v580_v35 = vld [vmem:[%s923_s1 + $0x1b0] sm:$0xff]  ;;  %v589_v36 = vld [vmem:[%s923_s1 + $0x1f8] sm:$0xff] }
  0x19   : > { %319 = vmatpush.msra.mxu2 %v544_v21  ;;  %293 = vmatpush.msra.mxu1 %v537_v22  ;;  %v563_v37 = vld [vmem:[%s923_s1 + $0x128] sm:$0xff]  ;;  %v534_v38 = vld [vmem:[%s923_s1 + $0x40] sm:$0xff]  ;;  %v573_v39 = vld [vmem:[%s923_s1 + $0x178] sm:$0xff] }
  0x1a   : > { %270 = vmatpush.msra.mxu0 %v172_v23  ;;  %345 = vmatpush.msra.mxu3 %v552_v24  ;;  %v579_v40 = vld [vmem:[%s923_s1 + $0x1a8] sm:$0xff]  ;;  %v562_v41 = vld [vmem:[%s923_s1 + $0x120] sm:$0xff]  ;;  %v588_v42 = vld [vmem:[%s923_s1 + $0x1f0] sm:$0xff] }
  0x1b   : > { %320 = vmatpush.msra.mxu2 %v543_v25  ;;  %294 = vmatpush.msra.mxu1 %v536_v26  ;;  %v572_v43 = vld [vmem:[%s923_s1 + $0x170] sm:$0xff]  ;;  %v578_v44 = vld [vmem:[%s923_s1 + $0x1a0] sm:$0xff]  ;;  %v561_v45 = vld [vmem:[%s923_s1 + $0x118] sm:$0xff] }
  0x1c   : > { %271 = vmatpush.msra.mxu0 %v171_v27  ;;  %346 = vmatpush.msra.mxu3 %v551_v28  ;;  %v587_v46 = vld [vmem:[%s923_s1 + $0x1e8] sm:$0xff]  ;;  %v302_v47 = vld [vmem:[%s805_s25 + $0x2] sm:$0x1]  ;;  %v560_v49 = vld [vmem:[%s923_s1 + $0x110] sm:$0xff] }
  0x1d   : > { %321 = vmatpush.msra.mxu2 %v542_v30  ;;  %295 = vmatpush.msra.mxu1 %v535_v32  ;;  %v571_v48 = vld [vmem:[%s923_s1 + $0x168] sm:$0xff]  ;;  %v577_v50 = vld [vmem:[%s923_s1 + $0x198] sm:$0xff]  ;;  %v586_v51 = vld [vmem:[%s923_s1 + $0x1e0] sm:$0xff] }
  0x1e   : > { %365 = vmatpush.msrb.mxu0 %v565_v29  ;;  %347 = vmatpush.msra.mxu3 %v550_v34  ;;  %v251_v52 = vld [vmem:[%s805_s25] sm:$0x1]  ;;  %v559_v53 = vld [vmem:[%s923_s1 + $0x108] sm:$0xff]  ;;  %v601_v54 = vld [vmem:[%s805_s25 + $0x4] sm:$0x1] }
  0x1f   : > { %416 = vmatpush.msrb.mxu2 %v581_v31  ;;  %296 = vmatpush.msra.mxu1 %v534_v38  ;;  %v570_v55 = vld [vmem:[%s923_s1 + $0x160] sm:$0xff]  ;;  %v576_v56 = vld [vmem:[%s923_s1 + $0x190] sm:$0xff]  ;;  %v585_v58 = vld [vmem:[%s923_s1 + $0x1d8] sm:$0xff] }
  0x20   : > { %366 = vmatpush.msrb.mxu0 %v564_v33  ;;  %441 = vmatpush.msrb.mxu3 %v589_v36  ;;  %v558_v57 = vld [vmem:[%s923_s1 + $0x100] sm:$0xff]  ;;  %v597_v59 = vld [vmem:[%s923_s1 + $0x238] sm:$0xff]  ;;  %v575_v62 = vld [vmem:[%s923_s1 + $0x188] sm:$0xff] }
  0x21   : > { %417 = vmatpush.msrb.mxu2 %v580_v35  ;;  %390 = vmatpush.msrb.mxu1 %v573_v39  ;;  %v277_v60 = vld [vmem:[%s805_s25 + $0x1] sm:$0x1]  ;;  %v569_v61 = vld [vmem:[%s923_s1 + $0x158] sm:$0xff]  ;;  %v584_v63 = vld [vmem:[%s923_s1 + $0x1d0] sm:$0xff] }
  0x22   : > { %367 = vmatpush.msrb.mxu0 %v563_v37  ;;  %442 = vmatpush.msrb.mxu3 %v588_v42  ;;  %v596_v0 = vld [vmem:[%s923_s1 + $0x230] sm:$0xff]  ;;  %v574_v2 = vld [vmem:[%s923_s1 + $0x180] sm:$0xff]  ;;  %v583_v3 = vld [vmem:[%s923_s1 + $0x1c8] sm:$0xff] }
  0x23   : > { %418 = vmatpush.msrb.mxu2 %v579_v40  ;;  %391 = vmatpush.msrb.mxu1 %v572_v43  ;;  %v568_v1 = vld [vmem:[%s923_s1 + $0x150] sm:$0xff]  ;;  %v595_v4 = vld [vmem:[%s923_s1 + $0x228] sm:$0xff]  ;;  %v582_v7 = vld [vmem:[%s923_s1 + $0x1c0] sm:$0xff] }
  0x24   : > { %368 = vmatpush.msrb.mxu0 %v562_v41  ;;  %443 = vmatpush.msrb.mxu3 %v587_v46  ;;  %v607_v5 = vld [vmem:[%s805_s25 + $0x8] sm:$0x1]  ;;  %v594_v8 = vld [vmem:[%s923_s1 + $0x220] sm:$0xff]  ;;  %v609_v10 = vld [vmem:[%s805_s25 + $0x9] sm:$0x1] }
  0x25   : > { %419 = vmatpush.msrb.mxu2 %v578_v44  ;;  %392 = vmatpush.msrb.mxu1 %v571_v48  ;;  %v567_v6 = vld [vmem:[%s923_s1 + $0x148] sm:$0xff]  ;;  %v603_v9 = vld [vmem:[%s805_s25 + $0x5] sm:$0x1]  ;;  %v593_v12 = vld [vmem:[%s923_s1 + $0x218] sm:$0xff] }
  0x26   : > { %369 = vmatpush.msrb.mxu0 %v561_v45  ;;  %600 = vmatmul.msk.f32.vlgmr.msra.gmra.mxu2 %vm252_vm0, %v302_v47  ;;  %v566_v11 = vld [vmem:[%s923_s1 + $0x140] sm:$0xff]  ;;  %v592_v14 = vld [vmem:[%s923_s1 + $0x210] sm:$0xff]  ;;  %v591_v15 = vld [vmem:[%s923_s1 + $0x208] sm:$0xff] }
  0x27   : > { %420 = vmatpush.msrb.mxu2 %v577_v50  ;;  %444 = vmatpush.msrb.mxu3 %v586_v51  ;;  %v605_v13 = vld [vmem:[%s805_s25 + $0x6] sm:$0x1]  ;;  %v611_v17 = vld [vmem:[%s805_s25 + $0xa] sm:$0x1]  ;;  %v169_v18 = vld [vmem:[#allocation2] sm:$0x1] }
  0x28   : > { %370 = vmatpush.msrb.mxu0 %v560_v49  ;;  %602 = vmatmul.msk.f32.vlgmr.msra.gmra.mxu3 %vm252_vm0, %v601_v54  ;;  %v590_v16 = vld [vmem:[%s923_s1 + $0x200] sm:$0xff] }
  0x29   : > { %598 = vmatmul.msk.f32.vlgmr.msra.gmra.mxu0 %vm252_vm0, %v251_v52  ;;  %393 = vmatpush.msrb.mxu1 %v570_v55 }
  0x2a   : > { %371 = vmatpush.msrb.mxu0 %v559_v53  ;;  %421 = vmatpush.msrb.mxu2 %v576_v56 }
  0x2b   : > { %445 = vmatpush.msrb.mxu3 %v585_v58  ;;  %599 = vmatmul.msk.f32.vlgmr.msra.gmra.mxu1 %vm252_vm0, %v277_v60 }
  0x2c   : > { %372 = vmatpush.msrb.mxu0 %v558_v57  ;;  %394 = vmatpush.msrb.mxu1 %v569_v61 }
  0x2d   : > { %422 = vmatpush.msrb.mxu2 %v575_v62  ;;  %446 = vmatpush.msrb.mxu3 %v584_v63 }
  0x2e   : > { %466 = vmatpush.msra.mxu0 %v597_v59  ;;  %395 = vmatpush.msrb.mxu1 %v568_v1 }
  0x2f   : > { %423 = vmatpush.msrb.mxu2 %v574_v2  ;;  %447 = vmatpush.msrb.mxu3 %v583_v3 }
  0x30   : > { %467 = vmatpush.msra.mxu0 %v596_v0  ;;  %608 = vmatmul.msk.f32.vlgmr.msrb.gmra.mxu2 %vm252_vm0, %v607_v5 }
  0x31   : > { %396 = vmatpush.msrb.mxu1 %v567_v6  ;;  %448 = vmatpush.msrb.mxu3 %v582_v7 }
  0x32   : > { %468 = vmatpush.msra.mxu0 %v595_v4  ;;  %610 = vmatmul.msk.f32.vlgmr.msrb.gmra.mxu3 %vm252_vm0, %v609_v10 }
  0x33   : > { %604 = vmatmul.msk.f32.vlgmr.msrb.gmra.mxu0 %vm252_vm0, %v603_v9  ;;  %397 = vmatpush.msrb.mxu1 %v566_v11 }
  0x34   : > { %469 = vmatpush.msra.mxu0 %v594_v8  ;;  %606 = vmatmul.msk.f32.vlgmr.msrb.gmra.mxu1 %vm252_vm0, %v605_v13 }
  0x36   : > { %470 = vmatpush.msra.mxu0 %v593_v12 }
  0x38   : > { %471 = vmatpush.msra.mxu0 %v592_v14 }
  0x3a   : > { %472 = vmatpush.msra.mxu0 %v591_v15 }
  0x3c   : > { %473 = vmatpush.msra.mxu0 %v590_v16 }
  0x3d   : > { %612 = vmatmul.msk.f32.vlgmr.msra.gmra.mxu0 %vm252_vm0, %v611_v17 }
  0xa6   : > { %v273_v19 = vpop.f32.mrf.mxu0 }
  0xa7   : > { %v276_v20 = vadd.f32 %v273_v19, %v169_v18 }
  0xa8   : > { %v298_v21 = vpop.f32.mrf.mxu1 }
  0xa9   : > { %v323_v22 = vpop.f32.mrf.mxu2  ;;  %v301_v23 = vadd.f32 %v298_v21, %v276_v20 }
  0xab   : > { %v326_v24 = vadd.f32 %v323_v22, %v301_v23  ;;  %v349_v25 = vpop.f32.mrf.mxu3 }
  0xad   : > { %v352_v26 = vadd.f32 %v349_v25, %v326_v24 }
  0xb0   : > { %v374_v27 = vpop.f32.mrf.mxu0 }
  0xb1   : > { %v377_v28 = vadd.f32 %v374_v27, %v352_v26  ;;  %v399_v29 = vpop.f32.mrf.mxu1 }
  0xb3   : > { %v402_v30 = vadd.f32 %v399_v29, %v377_v28  ;;  %v425_v31 = vpop.f32.mrf.mxu2 }
  0xb5   : > { %v428_v32 = vadd.f32 %v425_v31, %v402_v30  ;;  %v450_v33 = vpop.f32.mrf.mxu3 }
  0xb7   : > { %v453_v34 = vadd.f32 %v450_v33, %v428_v32 }
  0xba   : > { %v475_v35 = vpop.f32.mrf.mxu0 }
  0xbb   : > { %v478_v36 = vadd.f32 %v475_v35, %v453_v34 }
  0xbd   : > { %480 = vst.msk [vmem:[%s168_s10] sm:$0x1] %vm479_vm1, %v478_v36 }
  0xbe PF: > { %s15_s14 = sadd.s32 1, %s630_s14  }
  0xbf   : > { %p12_p4 = scmp.ge.s32.totalorder %s15_s14, 4  }
  0xc1   :  { %14 = sbr.rel (!%p12_p4) target bundleno = 3 (0x3), region = 72 }

</bundles_post_ra>
